<compile_context>
chip_gen: v7x
topology: tpu7x:2x2x1
jax: 0.10.0
libtpu: 0.0.40
codegen_flags: <defaults>
</compile_context>

<pallas_src>
import jax
import jax.numpy as jnp
import numpy as np
from jax import lax
from jax.experimental import pallas as pl
from jax.experimental.pallas import tpu as pltpu

_BN_EPS = 1e-5
_LANE = 128


def _res_module2d_kernel(x_ref, w0_ref, s0_ref, b0_ref, w1_ref, s1_ref, b1_ref,
                         out_ref, folded_ref):
    """Fused ResModule2D forward for one batch element (NHWC).

    x_ref     : (1, H, W, C)    f32 input block, UNPADDED channels
    w*_ref    : (3, 3*Cp, Cp)   bf16 conv taps folded along kx
                                (row index = kx*Cp + cin, one slab per ky)
    s*_ref    : (1, Cp)         folded BN scale = gamma / sqrt(var + eps)
    b*_ref    : (1, Cp)         folded BN shift = beta - mean * scale
    out_ref   : (1, H, W, C)
    folded_ref: (H+2, W, 3*Cp)  bf16 kx-folded activations with the 3x3 zero
                                halo baked in:
                                folded[y, x, kx*Cp + c] = pad_act[y, x+kx, c]
    """
    _, H, W, C = x_ref.shape
    Cp = s0_ref.shape[1]
    Hp = H + 2
    bf16 = folded_ref.dtype

    # ---- per-step zeroing of the (tiny) halo regions of the scratch --------
    # The grid axis is "parallel": each TensorCore's scratch starts out
    # uninitialized, so this must run every step.  The interior is fully
    # overwritten by build_folded() below; the halo stays zero for both convs.
    folded_ref[0:1, :, :] = jnp.zeros((1, W, 3 * Cp), bf16)
    folded_ref[Hp - 1:Hp, :, :] = jnp.zeros((1, W, 3 * Cp), bf16)
    folded_ref[1:1 + H, 0:1, 0:Cp] = jnp.zeros((H, 1, Cp), bf16)
    folded_ref[1:1 + H, W - 1:W, 2 * Cp:3 * Cp] = jnp.zeros((H, 1, Cp), bf16)

    def build_folded(act_b):
        # act_b: (H, W, Cp) bf16.  Writes the kx-folded interior.  The kx=1
        # store is fully aligned; kx=0/kx=2 are small sublane-shifted stores.
        folded_ref[1:1 + H, :, Cp:2 * Cp] = act_b                       # kx=1
        folded_ref[1:1 + H, 1:W, 0:Cp] = act_b[:, 0:W - 1, :]           # kx=0
        folded_ref[1:1 + H, 0:W - 1, 2 * Cp:3 * Cp] = act_b[:, 1:W, :]  # kx=2

    def conv3x3_bn(w_ref, s_ref, b_ref):
        # 3x3 conv as 3 MXU matmuls with contraction K = 3*Cp.  Each LHS is a
        # contiguous row-slice of the folded scratch (H is an outer dim, so the
        # slice + reshape is copy-free and unmasked).
        acc = jnp.zeros((H * W, Cp), jnp.float32)
        for ky in range(3):
            lhs = folded_ref[ky:ky + H, :, :].reshape(H * W, 3 * Cp)
            acc += jnp.dot(lhs, w_ref[ky], preferred_element_type=jnp.float32)
        return acc * s_ref[0] + b_ref[0]          # folded inference BatchNorm

    # Identity / conv0 input, channel-padded to Cp lanes in VMEM (nearly free;
    # avoids a Cp/C-times-larger input tensor in HBM).
    ident = x_ref[0].astype(jnp.float32)                       # (H, W, C)
    if Cp != C:
        ident = jnp.concatenate(
            [ident, jnp.zeros((H, W, Cp - C), jnp.float32)], axis=-1)

    # conv0 -> BN0 -> ReLU
    build_folded(ident.astype(bf16))
    y0 = jnp.maximum(conv3x3_bn(w0_ref, s0_ref, b0_ref), 0.0)

    # conv1 -> BN1 (no activation); overwrite the folded interior with y0.
    build_folded(y0.reshape(H, W, Cp).astype(bf16))
    y1 = conv3x3_bn(w1_ref, s1_ref, b1_ref)

    # residual add + ReLU in f32; padded channels are exact zeros, sliced off.
    out = jnp.maximum(ident + y1.reshape(H, W, Cp), 0.0)
    out_ref[0] = out[:, :, :C].astype(out_ref.dtype)


def _vmem_limit_bytes(H, W, C, Cp):
    f32, bf16 = 4, 2
    io = 2 * 2 * H * W * C * f32                   # in + out, double-buffered
    weights = 2 * 2 * (3 * 3 * Cp * Cp) * bf16     # two convs, double-buffered
    scratch = (H + 2) * W * (3 * Cp) * bf16        # kx-folded scratch
    interm = 10 * H * W * Cp * f32                 # ident/acc/y0/y1/lhs temps
    need = io + weights + scratch + interm
    try:
        # leave headroom vs. physical VMEM (v7x: 64 MiB -> cap ~48 MiB).
        cap = int(0.75 * pltpu.get_tpu_info().vmem_capacity_bytes)
    except Exception:
        cap = 48 * 1024 * 1024
    return int(min(max(2 * need, 32 * 1024 * 1024), cap))


def _res_module2d_pallas(x_nhwc, w0, s0, b0, w1, s1, b1):
    N, H, W, C = x_nhwc.shape
    Cp = s0.shape[1]
    Hp = H + 2
    # TODO(synk): for large H*W*Cp (v7x: 64 MiB VMEM) add an H-tile grid axis
    # with a 1-row halo (manual halo DMA) and tile the matmul M dimension so
    # blocks stay bounded and both TensorCores get work at small N.
    return pl.pallas_call(
        _res_module2d_kernel,
        out_shape=jax.ShapeDtypeStruct((N, H, W, C), x_nhwc.dtype),
        grid_spec=pltpu.PrefetchScalarGridSpec(
            num_scalar_prefetch=0,
            grid=(N,),
            in_specs=[
                pl.BlockSpec((1, H, W, C), lambda n: (n, 0, 0, 0)),
                # Weight / BN operands are grid-invariant (constant index_map);
                # double-buffering them costs ~1 MiB at Cp=128 -> left default.
                pl.BlockSpec((3, 3 * Cp, Cp), lambda n: (0, 0, 0)),
                pl.BlockSpec((1, Cp), lambda n: (0, 0)),
                pl.BlockSpec((1, Cp), lambda n: (0, 0)),
                pl.BlockSpec((3, 3 * Cp, Cp), lambda n: (0, 0, 0)),
                pl.BlockSpec((1, Cp), lambda n: (0, 0)),
                pl.BlockSpec((1, Cp), lambda n: (0, 0)),
            ],
            out_specs=pl.BlockSpec((1, H, W, C), lambda n: (n, 0, 0, 0)),
            scratch_shapes=[pltpu.VMEM((Hp, W, 3 * Cp), jnp.bfloat16)],
        ),
        compiler_params=pltpu.CompilerParams(
            dimension_semantics=("parallel",),
            vmem_limit_bytes=_vmem_limit_bytes(H, W, C, Cp)),
    )(x_nhwc, w0, s0, b0, w1, s1, b1)


def pack_params(w0_pt, bn0, w1_pt, bn1, eps=_BN_EPS):
    """Pack PyTorch-layout weights / BN params for the kernel.

    w*_pt : (Cout, Cin, 3, 3) conv weights (groups=1, no bias)
    bn*   : (gamma, beta, running_mean, running_var), each (C,)
    """
    C = w0_pt.shape[0]
    Cp = max(_LANE, ((C + _LANE - 1) // _LANE) * _LANE)

    def pack_w(w_pt):
        hwio = jnp.transpose(w_pt, (2, 3, 1, 0))                   # (3,3,Ci,Co)
        hwio = jnp.pad(hwio, ((0, 0), (0, 0), (0, Cp - C), (0, Cp - C)))
        return hwio.reshape(3, 3 * Cp, Cp).astype(jnp.bfloat16)    # row=kx*Cp+ci

    def fold_bn(gamma, beta, mean, var):
        scale = gamma / jnp.sqrt(var + eps)
        shift = beta - mean * scale
        scale = jnp.pad(scale, (0, Cp - C)).reshape(1, Cp).astype(jnp.float32)
        shift = jnp.pad(shift, (0, Cp - C)).reshape(1, Cp).astype(jnp.float32)
        return scale, shift

    s0, b0 = fold_bn(*bn0)
    s1, b1 = fold_bn(*bn1)
    return dict(w0=pack_w(w0_pt), s0=s0, b0=b0,
                w1=pack_w(w1_pt), s1=s1, b1=b1)


@jax.jit
def res_module2d_forward(x_nchw, params):
    """ResModule2D forward, NCHW in / NCHW out (matches the PyTorch module)."""
    x = jnp.transpose(x_nchw, (0, 2, 3, 1))                        # NCHW->NHWC
    y = _res_module2d_pallas(x, params["w0"], params["s0"], params["b0"],
                             params["w1"], params["s1"], params["b1"])
    return jnp.transpose(y, (0, 3, 1, 2))                          # NHWC->NCHW


# ----------------- pure-JAX f32 reference (correctness check) -----------------
def _ref_forward_nchw(x, w0, g0, b0, m0, v0, w1, g1, b1, m1, v1, eps=_BN_EPS):
    def conv_bn(x, w, g, b, m, v):
        y = lax.conv_general_dilated(
            x, w, window_strides=(1, 1), padding="SAME",
            dimension_numbers=("NCHW", "OIHW", "NCHW"))
        scale = (g / jnp.sqrt(v + eps)).reshape(1, -1, 1, 1)
        shift = (b - m * g / jnp.sqrt(v + eps)).reshape(1, -1, 1, 1)
        return y * scale + shift

    y = jnp.maximum(conv_bn(x, w0, g0, b0, m0, v0), 0.0)
    y = conv_bn(y, w1, g1, b1, m1, v1)
    return jnp.maximum(x + y, 0.0)


if __name__ == "__main__":
    # small, deterministic problem: x of shape (N, C, H, W) = (2, 4, 16, 16)
    N, C, H, W = 2, 4, 16, 16
    key = jax.random.PRNGKey(0)
    kx, kw0, kw1, km0, kv0, km1, kv1 = jax.random.split(key, 7)

    x_nchw = jax.random.normal(kx, (N, C, H, W), dtype=jnp.float32)

    # conv weights in PyTorch layout (Cout, Cin, kh, kw), deterministic
    w0_pt = 0.1 * jax.random.normal(kw0, (C, C, 3, 3), dtype=jnp.float32)
    w1_pt = 0.1 * jax.random.normal(kw1, (C, C, 3, 3), dtype=jnp.float32)

    # BatchNorm params (inference-mode folding), deterministic
    gamma0 = 1.0 + 0.1 * jnp.arange(C, dtype=jnp.float32)
    beta0 = 0.05 * jnp.arange(C, dtype=jnp.float32)
    mean0 = 0.1 * jax.random.normal(km0, (C,), dtype=jnp.float32)
    var0 = 1.0 + 0.1 * jax.random.uniform(kv0, (C,), dtype=jnp.float32)
    gamma1 = 1.0 - 0.05 * jnp.arange(C, dtype=jnp.float32)
    beta1 = -0.03 * jnp.arange(C, dtype=jnp.float32)
    mean1 = 0.1 * jax.random.normal(km1, (C,), dtype=jnp.float32)
    var1 = 1.0 + 0.1 * jax.random.uniform(kv1, (C,), dtype=jnp.float32)

    params = pack_params(w0_pt, (gamma0, beta0, mean0, var0),
                         w1_pt, (gamma1, beta1, mean1, var1))

    out_nchw = jax.block_until_ready(res_module2d_forward(x_nchw, params))

    ref_nchw = jax.block_until_ready(
        _ref_forward_nchw(x_nchw, w0_pt, gamma0, beta0, mean0, var0,
                          w1_pt, gamma1, beta1, mean1, var1))

    # bf16 matmul operands + bf16 activation scratch (f32 accumulation) ->
    # loosened tolerance vs the f32 reference.
    np.testing.assert_allclose(np.asarray(out_nchw), np.asarray(ref_nchw),
                               rtol=3e-2, atol=3e-2)

    print("KERNEL_OK")
</pallas_src>

<mosaic_0001>
module attributes {stable_mosaic.version = 11 : i64} {
  func.func @_res_module2d_kernel(%arg0: i32, %arg1: memref<1x16x16x4xf32, #tpu.memory_space<vmem>>, %arg2: memref<3x384x128xbf16, #tpu.memory_space<vmem>>, %arg3: memref<1x128xf32, #tpu.memory_space<vmem>>, %arg4: memref<1x128xf32, #tpu.memory_space<vmem>>, %arg5: memref<3x384x128xbf16, #tpu.memory_space<vmem>>, %arg6: memref<1x128xf32, #tpu.memory_space<vmem>>, %arg7: memref<1x128xf32, #tpu.memory_space<vmem>>, %arg8: memref<1x16x16x4xf32, #tpu.memory_space<vmem>>, %arg9: memref<18x16x384xbf16, #tpu.memory_space<vmem>>) attributes {dimension_semantics = [#tpu.dimension_semantics<parallel>], iteration_bounds = array<i64: 2>, scalar_prefetch = 0 : i64, scratch_operands = 1 : i64, tpu.core_type = #tpu.core_type<tc>, window_params = [{transform_indices = @transform_0, window_bounds = array<i64: 1, 16, 16, 4>}, {pipeline_mode = #tpu.pipeline_mode<synchronous>, transform_indices = @transform_1, window_bounds = array<i64: 3, 384, 128>}, {pipeline_mode = #tpu.pipeline_mode<synchronous>, transform_indices = @transform_2, window_bounds = array<i64: 1, 128>}, {pipeline_mode = #tpu.pipeline_mode<synchronous>, transform_indices = @transform_3, window_bounds = array<i64: 1, 128>}, {pipeline_mode = #tpu.pipeline_mode<synchronous>, transform_indices = @transform_4, window_bounds = array<i64: 3, 384, 128>}, {pipeline_mode = #tpu.pipeline_mode<synchronous>, transform_indices = @transform_5, window_bounds = array<i64: 1, 128>}, {pipeline_mode = #tpu.pipeline_mode<synchronous>, transform_indices = @transform_6, window_bounds = array<i64: 1, 128>}, {transform_indices = @transform_7, window_bounds = array<i64: 1, 16, 16, 4>}]} {
    %cst = arith.constant 0.000000e+00 : bf16
    %0 = vector.broadcast %cst : bf16 to vector<1x16x384xbf16>
    %c0 = arith.constant 0 : index
    %c0_0 = arith.constant 0 : index
    %c0_1 = arith.constant 0 : index
    %1 = vector.load %arg9[%c0, %c0_0, %c0_1] : memref<18x16x384xbf16, #tpu.memory_space<vmem>>, vector<1x16x384xbf16>
    tpu.vector_store %arg9[%c0, %c0_0, %c0_1], %0 {strides = array<i32>} : memref<18x16x384xbf16, #tpu.memory_space<vmem>>, vector<1x16x384xbf16>,
    %cst_2 = arith.constant 0.000000e+00 : bf16
    %2 = vector.broadcast %cst_2 : bf16 to vector<1x16x384xbf16>
    %c17 = arith.constant 17 : index
    %c0_3 = arith.constant 0 : index
    %c0_4 = arith.constant 0 : index
    %3 = vector.load %arg9[%c17, %c0_3, %c0_4] : memref<18x16x384xbf16, #tpu.memory_space<vmem>>, vector<1x16x384xbf16>
    tpu.vector_store %arg9[%c17, %c0_3, %c0_4], %2 {strides = array<i32>} : memref<18x16x384xbf16, #tpu.memory_space<vmem>>, vector<1x16x384xbf16>,
    %cst_5 = arith.constant 0.000000e+00 : bf16
    %4 = vector.broadcast %cst_5 : bf16 to vector<16x1x128xbf16>
    %c1 = arith.constant 1 : index
    %c0_6 = arith.constant 0 : index
    %c0_7 = arith.constant 0 : index
    %5 = vector.load %arg9[%c1, %c0_6, %c0_7] : memref<18x16x384xbf16, #tpu.memory_space<vmem>>, vector<16x1x128xbf16>
    tpu.vector_store %arg9[%c1, %c0_6, %c0_7], %4 {strides = array<i32>} : memref<18x16x384xbf16, #tpu.memory_space<vmem>>, vector<16x1x128xbf16>,
    %cst_8 = arith.constant 0.000000e+00 : bf16
    %6 = vector.broadcast %cst_8 : bf16 to vector<16x1x128xbf16>
    %c1_9 = arith.constant 1 : index
    %c15 = arith.constant 15 : index
    %c256 = arith.constant 256 : index
    %7 = vector.load %arg9[%c1_9, %c15, %c256] : memref<18x16x384xbf16, #tpu.memory_space<vmem>>, vector<16x1x128xbf16>
    tpu.vector_store %arg9[%c1_9, %c15, %c256], %6 {strides = array<i32>} : memref<18x16x384xbf16, #tpu.memory_space<vmem>>, vector<16x1x128xbf16>,
    %c0_10 = arith.constant 0 : index
    %c0_11 = arith.constant 0 : index
    %c0_12 = arith.constant 0 : index
    %c0_13 = arith.constant 0 : index
    %8 = vector.load %arg1[%c0_10, %c0_11, %c0_12, %c0_13] : memref<1x16x16x4xf32, #tpu.memory_space<vmem>>, vector<1x16x16x4xf32>
    %9 = vector.shape_cast %8 : vector<1x16x16x4xf32> to vector<16x16x4xf32>
    %cst_14 = arith.constant 0.000000e+00 : f32
    %10 = vector.broadcast %cst_14 : f32 to vector<16x16x124xf32>
    %11 = tpu.concatenate %9, %10 in 2 : vector<16x16x4xf32>, vector<16x16x124xf32> -> vector<16x16x128xf32>
    %12 = arith.truncf %11 : vector<16x16x128xf32> to vector<16x16x128xbf16>
    %c1_15 = arith.constant 1 : index
    %c0_16 = arith.constant 0 : index
    %c128 = arith.constant 128 : index
    %13 = vector.load %arg9[%c1_15, %c0_16, %c128] : memref<18x16x384xbf16, #tpu.memory_space<vmem>>, vector<16x16x128xbf16>
    tpu.vector_store %arg9[%c1_15, %c0_16, %c128], %12 {strides = array<i32>} : memref<18x16x384xbf16, #tpu.memory_space<vmem>>, vector<16x16x128xbf16>,
    %14 = vector.extract_strided_slice %12 {offsets = [0, 0, 0], sizes = [16, 15, 128], strides = [1, 1, 1]} : vector<16x16x128xbf16> to vector<16x15x128xbf16>
    %c1_17 = arith.constant 1 : index
    %c1_18 = arith.constant 1 : index
    %c0_19 = arith.constant 0 : index
    %15 = vector.load %arg9[%c1_17, %c1_18, %c0_19] : memref<18x16x384xbf16, #tpu.memory_space<vmem>>, vector<16x15x128xbf16>
    tpu.vector_store %arg9[%c1_17, %c1_18, %c0_19], %14 {strides = array<i32>} : memref<18x16x384xbf16, #tpu.memory_space<vmem>>, vector<16x15x128xbf16>,
    %16 = vector.extract_strided_slice %12 {offsets = [0, 1, 0], sizes = [16, 15, 128], strides = [1, 1, 1]} : vector<16x16x128xbf16> to vector<16x15x128xbf16>
    %c1_20 = arith.constant 1 : index
    %c0_21 = arith.constant 0 : index
    %c256_22 = arith.constant 256 : index
    %17 = vector.load %arg9[%c1_20, %c0_21, %c256_22] : memref<18x16x384xbf16, #tpu.memory_space<vmem>>, vector<16x15x128xbf16>
    tpu.vector_store %arg9[%c1_20, %c0_21, %c256_22], %16 {strides = array<i32>} : memref<18x16x384xbf16, #tpu.memory_space<vmem>>, vector<16x15x128xbf16>,
    %cst_23 = arith.constant 0.000000e+00 : f32
    %18 = vector.broadcast %cst_23 : f32 to vector<256x128xf32>
    %c0_24 = arith.constant 0 : index
    %c0_25 = arith.constant 0 : index
    %c0_26 = arith.constant 0 : index
    %19 = vector.load %arg9[%c0_24, %c0_25, %c0_26] : memref<18x16x384xbf16, #tpu.memory_space<vmem>>, vector<16x16x384xbf16>
    %20 = vector.shape_cast %19 : vector<16x16x384xbf16> to vector<256x384xbf16>
    %c0_27 = arith.constant 0 : index
    %c0_28 = arith.constant 0 : index
    %c0_29 = arith.constant 0 : index
    %21 = vector.load %arg2[%c0_27, %c0_28, %c0_29] : memref<3x384x128xbf16, #tpu.memory_space<vmem>>, vector<1x384x128xbf16>
    %22 = vector.shape_cast %21 : vector<1x384x128xbf16> to vector<384x128xbf16>
    %cst_30 = arith.constant dense<0.000000e+00> : vector<256x128xf32>
    %23 = tpu.matmul %20, %22, %cst_30 {dimension_numbers = #tpu.dot_dimension_numbers<[1], [0], [0], [1], [0, 0, 1, 1], [], []>} : vector<256x384xbf16>, vector<384x128xbf16>, vector<256x128xf32> -> vector<256x128xf32>
    %24 = arith.addf %18, %23 : vector<256x128xf32>
    %c1_31 = arith.constant 1 : index
    %c0_32 = arith.constant 0 : index
    %c0_33 = arith.constant 0 : index
    %25 = vector.load %arg9[%c1_31, %c0_32, %c0_33] : memref<18x16x384xbf16, #tpu.memory_space<vmem>>, vector<16x16x384xbf16>
    %26 = vector.shape_cast %25 : vector<16x16x384xbf16> to vector<256x384xbf16>
    %c1_34 = arith.constant 1 : index
    %c0_35 = arith.constant 0 : index
    %c0_36 = arith.constant 0 : index
    %27 = vector.load %arg2[%c1_34, %c0_35, %c0_36] : memref<3x384x128xbf16, #tpu.memory_space<vmem>>, vector<1x384x128xbf16>
    %28 = vector.shape_cast %27 : vector<1x384x128xbf16> to vector<384x128xbf16>
    %cst_37 = arith.constant dense<0.000000e+00> : vector<256x128xf32>
    %29 = tpu.matmul %26, %28, %cst_37 {dimension_numbers = #tpu.dot_dimension_numbers<[1], [0], [0], [1], [0, 0, 1, 1], [], []>} : vector<256x384xbf16>, vector<384x128xbf16>, vector<256x128xf32> -> vector<256x128xf32>
    %30 = arith.addf %24, %29 : vector<256x128xf32>
    %c2 = arith.constant 2 : index
    %c0_38 = arith.constant 0 : index
    %c0_39 = arith.constant 0 : index
    %31 = vector.load %arg9[%c2, %c0_38, %c0_39] : memref<18x16x384xbf16, #tpu.memory_space<vmem>>, vector<16x16x384xbf16>
    %32 = vector.shape_cast %31 : vector<16x16x384xbf16> to vector<256x384xbf16>
    %c2_40 = arith.constant 2 : index
    %c0_41 = arith.constant 0 : index
    %c0_42 = arith.constant 0 : index
    %33 = vector.load %arg2[%c2_40, %c0_41, %c0_42] : memref<3x384x128xbf16, #tpu.memory_space<vmem>>, vector<1x384x128xbf16>
    %34 = vector.shape_cast %33 : vector<1x384x128xbf16> to vector<384x128xbf16>
    %cst_43 = arith.constant dense<0.000000e+00> : vector<256x128xf32>
    %35 = tpu.matmul %32, %34, %cst_43 {dimension_numbers = #tpu.dot_dimension_numbers<[1], [0], [0], [1], [0, 0, 1, 1], [], []>} : vector<256x384xbf16>, vector<384x128xbf16>, vector<256x128xf32> -> vector<256x128xf32>
    %36 = arith.addf %30, %35 : vector<256x128xf32>
    %c0_44 = arith.constant 0 : index
    %c0_45 = arith.constant 0 : index
    %37 = vector.load %arg3[%c0_44, %c0_45] : memref<1x128xf32, #tpu.memory_space<vmem>>, vector<1x128xf32>
    %38 = vector.shape_cast %37 : vector<1x128xf32> to vector<128xf32>
    %39 = vector.shape_cast %38 : vector<128xf32> to vector<1x128xf32>
    %40 = vector.broadcast %39 : vector<1x128xf32> to vector<256x128xf32>
    %41 = arith.mulf %36, %40 : vector<256x128xf32>
    %c0_46 = arith.constant 0 : index
    %c0_47 = arith.constant 0 : index
    %42 = vector.load %arg4[%c0_46, %c0_47] : memref<1x128xf32, #tpu.memory_space<vmem>>, vector<1x128xf32>
    %43 = vector.shape_cast %42 : vector<1x128xf32> to vector<128xf32>
    %44 = vector.shape_cast %43 : vector<128xf32> to vector<1x128xf32>
    %45 = vector.broadcast %44 : vector<1x128xf32> to vector<256x128xf32>
    %46 = arith.addf %41, %45 : vector<256x128xf32>
    %cst_48 = arith.constant 0.000000e+00 : f32
    %47 = vector.broadcast %cst_48 : f32 to vector<256x128xf32>
    %48 = arith.maximumf %46, %47 : vector<256x128xf32>
    %49 = vector.shape_cast %48 : vector<256x128xf32> to vector<16x16x128xf32>
    %50 = arith.truncf %49 : vector<16x16x128xf32> to vector<16x16x128xbf16>
    %c1_49 = arith.constant 1 : index
    %c0_50 = arith.constant 0 : index
    %c128_51 = arith.constant 128 : index
    %51 = vector.load %arg9[%c1_49, %c0_50, %c128_51] : memref<18x16x384xbf16, #tpu.memory_space<vmem>>, vector<16x16x128xbf16>
    tpu.vector_store %arg9[%c1_49, %c0_50, %c128_51], %50 {strides = array<i32>} : memref<18x16x384xbf16, #tpu.memory_space<vmem>>, vector<16x16x128xbf16>,
    %52 = vector.extract_strided_slice %50 {offsets = [0, 0, 0], sizes = [16, 15, 128], strides = [1, 1, 1]} : vector<16x16x128xbf16> to vector<16x15x128xbf16>
    %c1_52 = arith.constant 1 : index
    %c1_53 = arith.constant 1 : index
    %c0_54 = arith.constant 0 : index
    %53 = vector.load %arg9[%c1_52, %c1_53, %c0_54] : memref<18x16x384xbf16, #tpu.memory_space<vmem>>, vector<16x15x128xbf16>
    tpu.vector_store %arg9[%c1_52, %c1_53, %c0_54], %52 {strides = array<i32>} : memref<18x16x384xbf16, #tpu.memory_space<vmem>>, vector<16x15x128xbf16>,
    %54 = vector.extract_strided_slice %50 {offsets = [0, 1, 0], sizes = [16, 15, 128], strides = [1, 1, 1]} : vector<16x16x128xbf16> to vector<16x15x128xbf16>
    %c1_55 = arith.constant 1 : index
    %c0_56 = arith.constant 0 : index
    %c256_57 = arith.constant 256 : index
    %55 = vector.load %arg9[%c1_55, %c0_56, %c256_57] : memref<18x16x384xbf16, #tpu.memory_space<vmem>>, vector<16x15x128xbf16>
    tpu.vector_store %arg9[%c1_55, %c0_56, %c256_57], %54 {strides = array<i32>} : memref<18x16x384xbf16, #tpu.memory_space<vmem>>, vector<16x15x128xbf16>,
    %cst_58 = arith.constant 0.000000e+00 : f32
    %56 = vector.broadcast %cst_58 : f32 to vector<256x128xf32>
    %c0_59 = arith.constant 0 : index
    %c0_60 = arith.constant 0 : index
    %c0_61 = arith.constant 0 : index
    %57 = vector.load %arg9[%c0_59, %c0_60, %c0_61] : memref<18x16x384xbf16, #tpu.memory_space<vmem>>, vector<16x16x384xbf16>
    %58 = vector.shape_cast %57 : vector<16x16x384xbf16> to vector<256x384xbf16>
    %c0_62 = arith.constant 0 : index
    %c0_63 = arith.constant 0 : index
    %c0_64 = arith.constant 0 : index
    %59 = vector.load %arg5[%c0_62, %c0_63, %c0_64] : memref<3x384x128xbf16, #tpu.memory_space<vmem>>, vector<1x384x128xbf16>
    %60 = vector.shape_cast %59 : vector<1x384x128xbf16> to vector<384x128xbf16>
    %cst_65 = arith.constant dense<0.000000e+00> : vector<256x128xf32>
    %61 = tpu.matmul %58, %60, %cst_65 {dimension_numbers = #tpu.dot_dimension_numbers<[1], [0], [0], [1], [0, 0, 1, 1], [], []>} : vector<256x384xbf16>, vector<384x128xbf16>, vector<256x128xf32> -> vector<256x128xf32>
    %62 = arith.addf %56, %61 : vector<256x128xf32>
    %c1_66 = arith.constant 1 : index
    %c0_67 = arith.constant 0 : index
    %c0_68 = arith.constant 0 : index
    %63 = vector.load %arg9[%c1_66, %c0_67, %c0_68] : memref<18x16x384xbf16, #tpu.memory_space<vmem>>, vector<16x16x384xbf16>
    %64 = vector.shape_cast %63 : vector<16x16x384xbf16> to vector<256x384xbf16>
    %c1_69 = arith.constant 1 : index
    %c0_70 = arith.constant 0 : index
    %c0_71 = arith.constant 0 : index
    %65 = vector.load %arg5[%c1_69, %c0_70, %c0_71] : memref<3x384x128xbf16, #tpu.memory_space<vmem>>, vector<1x384x128xbf16>
    %66 = vector.shape_cast %65 : vector<1x384x128xbf16> to vector<384x128xbf16>
    %cst_72 = arith.constant dense<0.000000e+00> : vector<256x128xf32>
    %67 = tpu.matmul %64, %66, %cst_72 {dimension_numbers = #tpu.dot_dimension_numbers<[1], [0], [0], [1], [0, 0, 1, 1], [], []>} : vector<256x384xbf16>, vector<384x128xbf16>, vector<256x128xf32> -> vector<256x128xf32>
    %68 = arith.addf %62, %67 : vector<256x128xf32>
    %c2_73 = arith.constant 2 : index
    %c0_74 = arith.constant 0 : index
    %c0_75 = arith.constant 0 : index
    %69 = vector.load %arg9[%c2_73, %c0_74, %c0_75] : memref<18x16x384xbf16, #tpu.memory_space<vmem>>, vector<16x16x384xbf16>
    %70 = vector.shape_cast %69 : vector<16x16x384xbf16> to vector<256x384xbf16>
    %c2_76 = arith.constant 2 : index
    %c0_77 = arith.constant 0 : index
    %c0_78 = arith.constant 0 : index
    %71 = vector.load %arg5[%c2_76, %c0_77, %c0_78] : memref<3x384x128xbf16, #tpu.memory_space<vmem>>, vector<1x384x128xbf16>
    %72 = vector.shape_cast %71 : vector<1x384x128xbf16> to vector<384x128xbf16>
    %cst_79 = arith.constant dense<0.000000e+00> : vector<256x128xf32>
    %73 = tpu.matmul %70, %72, %cst_79 {dimension_numbers = #tpu.dot_dimension_numbers<[1], [0], [0], [1], [0, 0, 1, 1], [], []>} : vector<256x384xbf16>, vector<384x128xbf16>, vector<256x128xf32> -> vector<256x128xf32>
    %74 = arith.addf %68, %73 : vector<256x128xf32>
    %c0_80 = arith.constant 0 : index
    %c0_81 = arith.constant 0 : index
    %75 = vector.load %arg6[%c0_80, %c0_81] : memref<1x128xf32, #tpu.memory_space<vmem>>, vector<1x128xf32>
    %76 = vector.shape_cast %75 : vector<1x128xf32> to vector<128xf32>
    %77 = vector.shape_cast %76 : vector<128xf32> to vector<1x128xf32>
    %78 = vector.broadcast %77 : vector<1x128xf32> to vector<256x128xf32>
    %79 = arith.mulf %74, %78 : vector<256x128xf32>
    %c0_82 = arith.constant 0 : index
    %c0_83 = arith.constant 0 : index
    %80 = vector.load %arg7[%c0_82, %c0_83] : memref<1x128xf32, #tpu.memory_space<vmem>>, vector<1x128xf32>
    %81 = vector.shape_cast %80 : vector<1x128xf32> to vector<128xf32>
    %82 = vector.shape_cast %81 : vector<128xf32> to vector<1x128xf32>
    %83 = vector.broadcast %82 : vector<1x128xf32> to vector<256x128xf32>
    %84 = arith.addf %79, %83 : vector<256x128xf32>
    %85 = vector.shape_cast %84 : vector<256x128xf32> to vector<16x16x128xf32>
    %86 = arith.addf %11, %85 : vector<16x16x128xf32>
    %cst_84 = arith.constant 0.000000e+00 : f32
    %87 = vector.broadcast %cst_84 : f32 to vector<16x16x128xf32>
    %88 = arith.maximumf %86, %87 : vector<16x16x128xf32>
    %89 = vector.extract_strided_slice %88 {offsets = [0, 0, 0], sizes = [16, 16, 4], strides = [1, 1, 1]} : vector<16x16x128xf32> to vector<16x16x4xf32>
    %c0_85 = arith.constant 0 : index
    %c0_86 = arith.constant 0 : index
    %c0_87 = arith.constant 0 : index
    %c0_88 = arith.constant 0 : index
    %90 = vector.load %arg8[%c0_85, %c0_86, %c0_87, %c0_88] : memref<1x16x16x4xf32, #tpu.memory_space<vmem>>, vector<1x16x16x4xf32>
    %91 = vector.shape_cast %90 : vector<1x16x16x4xf32> to vector<16x16x4xf32>
    %92 = vector.shape_cast %89 : vector<16x16x4xf32> to vector<1x16x16x4xf32>
    tpu.vector_store %arg8[%c0_85, %c0_86, %c0_87, %c0_88], %92 {strides = array<i32>} : memref<1x16x16x4xf32, #tpu.memory_space<vmem>>, vector<1x16x16x4xf32>,
    return
  }
  func.func @transform_0(%arg0: i32) -> (i32, i32, i32, i32) {
    %c0_i32 = arith.constant 0 : i32
    %c0_i32_0 = arith.constant 0 : i32
    %c0_i32_1 = arith.constant 0 : i32
    %c0_i32_2 = arith.constant 0 : i32
    return %arg0, %c0_i32, %c0_i32_0, %c0_i32_1 : i32, i32, i32, i32
  }
  func.func @transform_1(%arg0: i32) -> (i32, i32, i32) {
    %c0_i32 = arith.constant 0 : i32
    %c0_i32_0 = arith.constant 0 : i32
    %c0_i32_1 = arith.constant 0 : i32
    %c0_i32_2 = arith.constant 0 : i32
    return %c0_i32, %c0_i32_0, %c0_i32_1 : i32, i32, i32
  }
  func.func @transform_2(%arg0: i32) -> (i32, i32) {
    %c0_i32 = arith.constant 0 : i32
    %c0_i32_0 = arith.constant 0 : i32
    %c0_i32_1 = arith.constant 0 : i32
    return %c0_i32, %c0_i32_0 : i32, i32
  }
  func.func @transform_3(%arg0: i32) -> (i32, i32) {
    %c0_i32 = arith.constant 0 : i32
    %c0_i32_0 = arith.constant 0 : i32
    %c0_i32_1 = arith.constant 0 : i32
    return %c0_i32, %c0_i32_0 : i32, i32
  }
  func.func @transform_4(%arg0: i32) -> (i32, i32, i32) {
    %c0_i32 = arith.constant 0 : i32
    %c0_i32_0 = arith.constant 0 : i32
    %c0_i32_1 = arith.constant 0 : i32
    %c0_i32_2 = arith.constant 0 : i32
    return %c0_i32, %c0_i32_0, %c0_i32_1 : i32, i32, i32
  }
  func.func @transform_5(%arg0: i32) -> (i32, i32) {
    %c0_i32 = arith.constant 0 : i32
    %c0_i32_0 = arith.constant 0 : i32
    %c0_i32_1 = arith.constant 0 : i32
    return %c0_i32, %c0_i32_0 : i32, i32
  }
  func.func @transform_6(%arg0: i32) -> (i32, i32) {
    %c0_i32 = arith.constant 0 : i32
    %c0_i32_0 = arith.constant 0 : i32
    %c0_i32_1 = arith.constant 0 : i32
    return %c0_i32, %c0_i32_0 : i32, i32
  }
  func.func @transform_7(%arg0: i32) -> (i32, i32, i32, i32) {
    %c0_i32 = arith.constant 0 : i32
    %c0_i32_0 = arith.constant 0 : i32
    %c0_i32_1 = arith.constant 0 : i32
    %c0_i32_2 = arith.constant 0 : i32
    return %arg0, %c0_i32, %c0_i32_0, %c0_i32_1 : i32, i32, i32, i32
  }
}

</mosaic_0001>

<bundles_post_ra>
// kernel: res_module2d_forward.1
= control target key start
LH: loop header
LB: loop body
LE: loop exit
PB: predicated region body
PF: predicated region fallthrough
CT: control target
= control target key end

     0   :  { %12 = vsyncpa [#allocation4], 0  ;;  %s6915_s24 = smov 0   ;;  %s9241_s0 = inlined_call_operand.vmem [shape: f32[2,16,16,4], index: 0, kind: input, shape index: {}]   ;;  %s9242_s1 = inlined_call_operand.vmem [shape: bf16[3,384,128], index: 1, kind: input, shape index: {}]   ;;  %s9243_s2 = inlined_call_operand.vmem [shape: f32[1,128], index: 2, kind: input, shape index: {}]   ;;  %s9244_s3 = inlined_call_operand.vmem [shape: f32[1,128], index: 3, kind: input, shape index: {}]   ;;  %s9245_s4 = inlined_call_operand.hbm [shape: bf16[3,384,128], index: 4, kind: input, shape index: {}]   ;;  %s9246_s5 = inlined_call_operand.vmem [shape: f32[1,128], index: 5, kind: input, shape index: {}]   ;;  %s9247_s6 = inlined_call_operand.vmem [shape: f32[1,128], index: 6, kind: input, shape index: {}]   ;;  %s9248_s7 = inlined_call_operand.vmem [shape: f32[2,16,16,4], index: 7, kind: output, shape index: {}]  }
   0x1 LB: > { %s6921_s25 = sadd.s32 4294967295, %s6869_s24   ;;  %p4877_p0 = scmp.ge.s32.totalorder %s6869_s24, 1  ;;  %s6869_s24 = sphi %s6915_s24, %s18_s24  }
   0x2   : > { %p201_p1 = scmp.lt.s32.totalorder %s6869_s24, 3  ;;  %s6871_s26 = smov [#allocation3]  }
   0x3   : > { %s222_s27 = sshll.u32 %s6871_s26, 4  ;;  %p9249_p3 = scmp.eq.s32.totalorder %s6921_s25, 0  ;;  %s223_s27 = int_to_ptr.vmem [resolvable:$true] %s222_s27 }
   0x4   : > { %p6925_p2 = pnand %p4877_p0, %p201_p1  ;;  %s6831_s9 = scalar_lea.hbm %s9245_s4, 9216 }
   0x5   : > { %p6832_p6 = scmp.ne.s32.totalorder %s9245_s4, %s6831_s9  ;;  %p6838_p10 = scmp.lt.u32.totalorder %s6831_s9, %s9245_s4 }
   0x6   : > { %s9309_s28 = scalar_select %p6925_p2, 1, 0 }
   0x7   : > { %p6562_p4 = pneg %p6925_p2 }
   0x9   : > { %p6934_p5 = pnand %p9249_p3, %p6562_p4 }
   0xb   : > { %p6833_p7 = pneg %p6934_p5 }
   0xd   : > { %p6834_p8 = pnand %p6833_p7, %p6832_p6 }
   0xf   : > { %p6835_p9 = pneg %p6834_p8 }
  0x11   : > { %p6840_p11 = pnand %p6838_p10, %p6835_p9 }
  0x13   : > { %6843 = shalt.err (!%p6840_p11)
}
  0x14   : > { %s6844_s14 = scalar_lea.vmem %s223_s27, 9216  ;;  %p6852_p1 = scmp.lt.s32.totalorder %s223_s27, %s223_s27 }
  0x15   : > { %p6845_p12 = scmp.ne.s32.totalorder %s223_s27, %s6844_s14  ;;  %p6853_p4 = scmp.lt.s32.totalorder %s6844_s14, %s6844_s14 }
  0x17   : > { %p6847_p13 = pnand %p6845_p12, %p6833_p7  ;;  %p6854_p3 = por %p6853_p4, %p6852_p1 }
  0x19   : > { %p6848_p0 = pneg %p6847_p13 }
  0x1b   : > { %p6855_p2 = pnand %p6854_p3, %p6848_p0 }
  0x1d   : > { %6858 = shalt.err (!%p6855_p2)
}
  0x1e   : > { %s6872_s15 = smov 64   ;;  %s6873_s16 = smov 4  }
  0x1f   : > { %6565 = dma.hbm_to_vmem [thread:$0]  (!%p6934_p5), %s9245_s4, 9216, %s223_s27, [#allocation4], %s6872_s15, %s6872_s15, %s6873_s16  }
  0x20   : > { %p9311_p6 = scmp.ne.s32.totalorder %s9309_s28, 0 }
  0x22   : > { %252 = sbr.rel (%p9311_p6) target bundleno = 1111 (0x457), region = 48 }
  0x29   : > { %p9312_p8 = scmp.eq.s32.totalorder %s6921_s25, 0 }
  0x2b   : > { %6864 = dma.done.wait (%p9312_p8), [#allocation4], 9216   ;;  %p9313_p7 = pmov %p9312_p8 }
  0x2c   : > { %v6874_v0 = vmov 0   ;;  %v6580_v1 = vld [vmem:[%s9242_s1 + $0x100] sm:$0xff]   ;;  %v6584_v5 = vld [vmem:[%s9242_s1 + $0x108] sm:$0xff]   ;;  %v6588_v9 = vld [vmem:[%s9242_s1 + $0x110] sm:$0xff]   ;;  %vm304_vm0 = vsmask.f32 256 }
  0x2d   : > { %6866 = vsyncadd (%p9313_p7), [#allocation4], 4294958080  ;;  %296 = vst [vmem:[#allocation2 + $0x8] sm:$0xff] %v6874_v0  ;;  %1614 = vmatprep.mubr.bf16.mxu1 %v6874_v0  ;;  %v6581_v2 = vld [vmem:[%s9242_s1 + $0xc0] sm:$0xff]   ;;  %5134 = vmatprep.subr.bf16.mxu0 %v6580_v1  ;;  %v6585_v6 = vld [vmem:[%s9242_s1 + $0xc8] sm:$0xff]   ;;  %p284_p2 = scmp.lt.s32.totalorder %s6921_s25, 1 }
  0x2e   : > { %v6582_v3 = vld [vmem:[%s9242_s1 + $0x40] sm:$0xff]   ;;  %5135 = vmatpush3.bf16.msra.mxu0 %v6581_v2  ;;  %v6586_v7 = vld [vmem:[%s9242_s1 + $0x48] sm:$0xff]   ;;  %v6589_v10 = vld [vmem:[%s9242_s1 + $0xd0] sm:$0xff]   ;;  %vm303_vm1 = vcmask 1040384   ;;  %vm437_vm3 = vcmask 31744   ;;  %vm630_vm4 = vcmask 1047552  }
  0x2f   : > { %v6583_v4 = vld [vmem:[%s9242_s1] sm:$0xff]   ;;  %5270 = vmatprep.subr.bf16.mxu1 %v6582_v3  ;;  %5136 = vmatprep.subr.bf16.mxu0 %v6584_v5  ;;  %v6587_v8 = vld [vmem:[%s9242_s1 + $0x8] sm:$0xff]   ;;  %v6590_v11 = vld [vmem:[%s9242_s1 + $0x50] sm:$0xff]   ;;  %s9477_s25 = smov (!%p284_p2, %s6921_s25), 1  ;;  %vm631_vm5 = vsmask.f32 7938 }
  0x30   : > { %5271 = vmatpush3.bf16.msra.mxu1 %v6583_v4  ;;  %v6591_v12 = vld [vmem:[%s9242_s1 + $0x10] sm:$0xff]   ;;  %v6592_v13 = vld [vmem:[%s9242_s1 + $0x118] sm:$0xff]   ;;  %v6596_v17 = vld [vmem:[%s9242_s1 + $0x120] sm:$0xff]   ;;  %s5132_s10 = sshll.u32 %s9477_s25, 8  ;;  %v9324_v61 = vmov 0  ;;  %vm354_vm9 = vcmask 1047559  }
  0x31   : > { %5272 = vmatprep.subr.bf16.mxu1 %v6586_v7  ;;  %v6593_v14 = vld [vmem:[%s9242_s1 + $0xd8] sm:$0xff]   ;;  %v6597_v18 = vld [vmem:[%s9242_s1 + $0xe0] sm:$0xff]   ;;  %v6600_v21 = vld [vmem:[%s9242_s1 + $0x128] sm:$0xff]   ;;  %s7067_s19 = scalar_lea.vmem %s9241_s0, %s5132_s10  ;;  %vm355_vm8 = vsmask.f32 7966  ;;  %s9056_s18 = scalar_lea.vmem %s9248_s7, %s5132_s10 }
  0x32   : > { %5137 = vmatpush3.bf16.msra.mxu0 %v6585_v6  ;;  %v6594_v15 = vld [vmem:[%s9242_s1 + $0x58] sm:$0xff]   ;;  %v6598_v19 = vld [vmem:[%s9242_s1 + $0x60] sm:$0xff]   ;;  %v6601_v22 = vld [vmem:[%s9242_s1 + $0xe8] sm:$0xff]   ;;  %vm729_vm10 = vsmask.f32 7424 }
  0x33   : > { %5138 = vmatprep.subr.bf16.mxu0 %v6588_v9  ;;  %v6595_v16 = vld [vmem:[%s9242_s1 + $0x18] sm:$0xff]   ;;  %v6599_v20 = vld [vmem:[%s9242_s1 + $0x20] sm:$0xff]   ;;  %v6602_v23 = vld [vmem:[%s9242_s1 + $0x68] sm:$0xff]  }
  0x34   : > { %5273 = vmatpush3.bf16.msra.mxu1 %v6587_v8  ;;  %vm7036_vm2 = vmand %vm303_vm1, %vm304_vm0  ;;  %v6603_v25 = vld [vmem:[%s9242_s1 + $0x28] sm:$0xff]   ;;  %v6604_v26 = vld [vmem:[%s9242_s1 + $0x130] sm:$0xff]  }
  0x35   : > { %5274 = vmatprep.subr.bf16.mxu1 %v6590_v11  ;;  %v6605_v27 = vld [vmem:[%s9242_s1 + $0xf0] sm:$0xff]   ;;  %v6608_v30 = vld [vmem:[%s9242_s1 + $0x138] sm:$0xff]   ;;  %v405_v34 = vld [vmem:[%s7067_s19] sm:$0xff] }
  0x36   : > { %5139 = vmatpush3.bf16.msra.mxu0 %v6589_v10  ;;  %v6606_v28 = vld [vmem:[%s9242_s1 + $0x70] sm:$0xff]   ;;  %v6609_v31 = vld [vmem:[%s9242_s1 + $0xf8] sm:$0xff]   ;;  %v406_v35 = vld [vmem:[%s7067_s19 + $0x8] sm:$0xff]  ;;  %v7078_v37 = vsel %vm437_vm3, %v405_v34, 0.0 }
  0x37   : > { %5140 = vmatprep.subr.bf16.mxu0 %v6592_v13  ;;  %v6607_v29 = vld [vmem:[%s9242_s1 + $0x30] sm:$0xff]   ;;  %v6610_v32 = vld [vmem:[%s9242_s1 + $0x78] sm:$0xff]   ;;  %9316 = vst [vmem:[#allocation6_spill] sm:$0xff] %v7078_v37  ;;  %v7081_v38 = vsel %vm437_vm3, %v406_v35, 0.0  ;;  %v6612_v40 = vld [vmem:[%s9242_s1 + $0x140] sm:$0xff]   ;;  %v6733_v52 = vpack.c.bf16 %v406_v35, %v405_v34 }
  0x38   : > { %5275 = vmatpush3.bf16.msra.mxu1 %v6591_v12  ;;  %v6611_v33 = vld [vmem:[%s9242_s1 + $0x38] sm:$0xff]   ;;  %9317 = vst [vmem:[#allocation7_spill] sm:$0xff] %v7081_v38  ;;  %v7090_v41 = vpack.c.bf16 %v7081_v38, %v7078_v37  ;;  %v407_v42 = vld [vmem:[%s7067_s19 + $0x10] sm:$0xff]  ;;  %v7101_v47 = vld [vmem:[%s7067_s19 + $0x20] sm:$0xff] }
  0x39   : > { %5276 = vmatprep.subr.bf16.mxu1 %v6594_v15  ;;  %v306_v36 = vld [vmem:[#allocation2 + $0x18] sm:$0x1]  ;;  %v7095_v44 = vsel %vm437_vm3, %v407_v42, 0.0  ;;  %v309_v46 = vld [vmem:[#allocation2 + $0x30] sm:$0x1]  ;;  %v7104_v48 = vld [vmem:[%s7067_s19 + $0x28] sm:$0xff] }
  0x3a   : > { %5141 = vmatpush3.bf16.msra.mxu0 %v6593_v14  ;;  %v307_v39 = vsel %vm7036_vm2, 0, %v306_v36  ;;  %v408_v43 = vld [vmem:[%s7067_s19 + $0x18] sm:$0xff]  ;;  %9318 = vst [vmem:[#allocation8_spill] sm:$0xff] %v7095_v44  ;;  %v9260_v49 = vshrl.u32 %v7090_v41, 16  ;;  %v9263_v50 = vshll.u32 %v7090_v41, 16  ;;  %vm7110_vm6 = vmpackc.low %vm437_vm3, %vm437_vm3  ;;  %v310_v54 = vsel %vm7036_vm2, 0, %v309_v46 }
  0x3b   : > { %5142 = vmatprep.subr.bf16.mxu0 %v6596_v17  ;;  %308 = vst [vmem:[#allocation2 + $0x18] sm:$0x1] %v307_v39  ;;  %v7098_v45 = vsel %vm437_vm3, %v408_v43, 0.0  ;;  %6734 = vmatprep.mubr.msk.bf16.mxu0 %vm7110_vm6, %v6733_v52  ;;  %v312_v55 = vld [vmem:[#allocation2 + $0x48] sm:$0x1]  ;;  %v7127_v56 = vsel %vm437_vm3, %v7101_v47, 0.0  ;;  %vm7142_vm7 = vmand %vm630_vm4, %vm631_vm5 }
  0x3c   : > { %5277 = vmatpush3.bf16.msra.mxu1 %v6595_v16  ;;  %9319 = vst [vmem:[#allocation9_spill] sm:$0xff] %v7098_v45  ;;  %v7119_v53 = vpack.c.bf16 %v7098_v45, %v7095_v44  ;;  %311 = vst [vmem:[#allocation2 + $0x30] sm:$0x1] %v310_v54  ;;  %v7131_v57 = vsel %vm437_vm3, %v7104_v48, 0.0  ;;  %v313_v58 = vsel %vm7036_vm2, 0, %v312_v55  ;;  %v7136_v59 = vld [vmem:[%s7067_s19 + $0x30] sm:$0xff] }
  0x3d   : > { %5278 = vmatprep.subr.bf16.mxu1 %v6598_v19  ;;  %9322 = vst [vmem:[#allocation10_spill] sm:$0xff] %v7127_v56  ;;  %9323 = vst [vmem:[#allocation11_spill] sm:$0xff] %v7131_v57  ;;  %v505_v60 = vrot.slane %v9260_v49, 7  ;;  %v9325_v61 = vsel %vm7142_vm7, 4294967295, %v9324_v61  ;;  %v6613_v1 = vld [vmem:[%s9242_s1 + $0x148] sm:$0xff]   ;;  %v7157_v2 = vld [vmem:[%s7067_s19 + $0x38] sm:$0xff] }
  0x3e   : > { %5143 = vmatpush3.bf16.msra.mxu0 %v6597_v18  ;;  %9326 = vst [vmem:[#allocation12_spill] sm:$0xff] %v9325_v61  ;;  %487 = vst [vmem:[#allocation2 + $0x38] sm:$0xff] %v7119_v53  ;;  %v9256_v62 = vshrl.u32 %v7119_v53, 16  ;;  %v9262_v63 = vshll.u32 %v7119_v53, 16  ;;  %v7161_v3 = vsel %vm437_vm3, %v7136_v59, 0.0  ;;  %v7168_v7 = vld [vmem:[%s7067_s19 + $0x40] sm:$0xff] }
  0x3f   : > { %5144 = vmatprep.subr.bf16.mxu0 %v6600_v21  ;;  %314 = vst [vmem:[#allocation2 + $0x48] sm:$0x1] %v313_v58  ;;  %9327 = vst [vmem:[#allocation13_spill] sm:$0xff] %v7161_v3  ;;  %v315_v4 = vld [vmem:[#allocation2 + $0x60] sm:$0x1]  ;;  %v508_v5 = vor.u32 %v9263_v50, %v505_v60  ;;  %v7171_v8 = vld [vmem:[%s7067_s19 + $0x48] sm:$0xff] }
  0x40   : > { %5279 = vmatpush3.bf16.msra.mxu1 %v6599_v20  ;;  %v512_v6 = vrot.slane %v9256_v62, 7  ;;  %v318_v9 = vld [vmem:[#allocation2 + $0x78] sm:$0x1]  ;;  %v7178_v13 = vsel %vm437_vm3, %v7157_v2, 0.0  ;;  %v316_v14 = vsel %vm7036_vm2, 0, %v315_v4  ;;  %v7183_v15 = vld [vmem:[%s7067_s19 + $0x50] sm:$0xff]  ;;  %vm7639_vm11 = vmand %vm354_vm9, %vm355_vm8 }
  0x41   : > { %5280 = vmatprep.subr.bf16.mxu1 %v6602_v23  ;;  %9328 = vst [vmem:[#allocation14_spill] sm:$0xff] %v7178_v13  ;;  %v7191_v18 = vpack.c.bf16 %v7178_v13, %v7161_v3  ;;  %317 = vst [vmem:[#allocation2 + $0x60] sm:$0x1] %v316_v14  ;;  %v7194_v19 = vld [vmem:[%s7067_s19 + $0x58] sm:$0xff]  ;;  %v7200_v21 = vsel %vm437_vm3, %v7168_v7, 0.0  ;;  %v7229_v36 = vsel %vm437_vm3, %v7183_v15, 0.0 }
  0x42   : > { %5145 = vmatpush3.bf16.msra.mxu0 %v6601_v22  ;;  %v633_v10 = vld [vmem:[#allocation2 + $0x18] sm:$0xff]  ;;  %v515_v17 = vor.u32 %v9262_v63, %v512_v6  ;;  %9329 = vst [vmem:[#allocation15_spill] sm:$0xff] %v7200_v21  ;;  %v7204_v22 = vsel %vm437_vm3, %v7171_v8, 0.0  ;;  %v321_v23 = vld [vmem:[#allocation2 + $0x90] sm:$0x1]  ;;  %9331 = vst [vmem:[#allocation17_spill] sm:$0xff] %v7229_v36 }
  0x43   : > { %5146 = vmatprep.subr.bf16.mxu0 %v6604_v26  ;;  %v634_v16 = vsel %vm7142_vm7, %v508_v5, %v633_v10  ;;  %9330 = vst [vmem:[#allocation16_spill] sm:$0xff] %v7204_v22  ;;  %v636_v26 = vld [vmem:[#allocation2 + $0x30] sm:$0xff]  ;;  %489 = vst [vmem:[#allocation2 + $0x68] sm:$0xff] %v7191_v18  ;;  %v7233_v39 = vsel %vm437_vm3, %v7194_v19, 0.0  ;;  %v322_v58 = vsel %vm7036_vm2, 0, %v321_v23  ;;  %v7263_v5 = vld [vmem:[%s7067_s19 + $0x78] sm:$0xff] }
  0x44   : > { %5281 = vmatpush3.bf16.msra.mxu1 %v6603_v25  ;;  %635 = vst [vmem:[#allocation2 + $0x18] sm:$0xff] %v634_v16  ;;  %v6739_v25 = vpack.c.bf16 %v408_v43, %v407_v42  ;;  %9332 = vst [vmem:[#allocation18_spill] sm:$0xff] %v7233_v39  ;;  %v324_v42 = vld [vmem:[#allocation2 + $0xa8] sm:$0x1]  ;;  %v7251_v55 = vpack.c.bf16 %v7233_v39, %v7229_v36  ;;  %v7260_v4 = vld [vmem:[%s7067_s19 + $0x70] sm:$0xff]  ;;  %v6757_v39 = vpack.c.bf16 %v7171_v8, %v7168_v7 }
  0x45   : > { %5282 = vmatprep.subr.bf16.mxu1 %v6606_v28  ;;  %v9257_v28 = vshll.u32 %v7191_v18, 16  ;;  %323 = vst [vmem:[#allocation2 + $0x90] sm:$0x1] %v322_v58  ;;  %v6615_v14 = vld [vmem:[%s9242_s1 + $0x158] sm:$0xff]   ;;  %v7304_v58 = vsel %vm437_vm3, %v7263_v5, 0.0  ;;  %v7377_v63 = vld [vmem:[%s7067_s19 + $0xa0] sm:$0xff]  ;;  %vm7705_vm12 = vmand %vm630_vm4, %vm729_vm10 }
  0x46   : > { %5147 = vmatpush3.bf16.msra.mxu0 %v6605_v27  ;;  %v9252_v27 = vshrl.u32 %v7191_v18, 16  ;;  %v639_v35 = vld [vmem:[#allocation2 + $0x48] sm:$0xff]  ;;  %491 = vst [vmem:[#allocation2 + $0x98] sm:$0xff] %v7251_v55  ;;  %9336 = vst [vmem:[#allocation22_spill] sm:$0xff] %v7304_v58  ;;  %v7549_v7 = vld [vmem:[%s7067_s19 + $0xe0] sm:$0xff]  ;;  %v9367_v24 = vshll.u32 %v7090_v41, 16 }
  0x47   : > { %5148 = vmatprep.subr.bf16.mxu0 %v6608_v30  ;;  %v319_v30 = vsel %vm7036_vm2, 0, %v318_v9  ;;  %v7380_v50 = vld [vmem:[%s7067_s19 + $0xa8] sm:$0xff]  ;;  %v351_v13 = vld [vmem:[#allocation2 + $0x180] sm:$0x1]  ;;  %v360_v45 = vld [vmem:[#allocation2 + $0x40] sm:$0x80] }
  0x48   : > { %5283 = vmatpush3.bf16.msra.mxu1 %v6607_v29  ;;  %v7213_v29 = vpack.c.bf16 %v7204_v22, %v7200_v21  ;;  %320 = vst [vmem:[#allocation2 + $0x78] sm:$0x1] %v319_v30  ;;  %v526_v43 = vrot.slane %v9252_v27, 7  ;;  %v7290_v30 = vld [vmem:[%s7067_s19 + $0x88] sm:$0xff] }
  0x49   : > { %5284 = vmatprep.subr.bf16.mxu1 %v6610_v32  ;;  %v7221_v32 = vld [vmem:[%s7067_s19 + $0x60] sm:$0xff]  ;;  %v7333_v62 = vsel %vm437_vm3, %v7290_v30, 0.0  ;;  %v7562_v36 = vld [vmem:[%s7067_s19 + $0xe8] sm:$0xff] }
  0x4a   : > { %5149 = vmatpush3.bf16.msra.mxu0 %v6609_v31  ;;  %v6614_v31 = vld [vmem:[%s9242_s1 + $0x150] sm:$0xff]   ;;  %490 = vst [vmem:[#allocation2 + $0x80] sm:$0xff] %v7213_v29  ;;  %v9251_v46 = vshrl.u32 %v7213_v29, 16  ;;  %v7257_v60 = vsel %vm437_vm3, %v7221_v32, 0.0  ;;  %v529_v6 = vor.u32 %v9257_v28, %v526_v43  ;;  %v7300_v43 = vsel %vm437_vm3, %v7260_v4, 0.0  ;;  %9338 = vst [vmem:[#allocation24_spill] sm:$0xff] %v7333_v62 }
  0x4b   : > { %5950 = vmatprep.subr.bf16.mxu0 %v6612_v40  ;;  %9333 = vst [vmem:[#allocation19_spill] sm:$0xff] %v7257_v60  ;;  %9335 = vst [vmem:[#allocation21_spill] sm:$0xff] %v7300_v43  ;;  %v7347_v28 = vld [vmem:[%s7067_s19 + $0x90] sm:$0xff] }
  0x4c   : > { %5285 = vmatpush3.bf16.msra.mxu1 %v6611_v33  ;;  %v637_v33 = vsel %vm7142_vm7, %v515_v17, %v636_v26  ;;  %v533_v9 = vrot.slane %v9251_v46, 7  ;;  %v642_v17 = vld [vmem:[#allocation2 + $0x60] sm:$0xff]  ;;  %v6745_v46 = vpack.c.bf16 %v7104_v48, %v7101_v47  ;;  %v7368_v49 = vsel %vm437_vm3, %v7347_v28, 0.0 }
  0x4d   : > { %1149 = vmatmul.mubr.bf16.vlgmr.msra.gmra.mrb[0].mxu0 %v634_v16  ;;  %638 = vst [vmem:[#allocation2 + $0x30] sm:$0xff] %v637_v33  ;;  %v7287_v26 = vld [vmem:[%s7067_s19 + $0x80] sm:$0xff]  ;;  %9339 = vst [vmem:[#allocation25_spill] sm:$0xff] %v7368_v49 }
  0x4e   : > { %5951 = vmatpush3.bf16.msra.mxu0 %v6612_v40  ;;  %6740 = vmatprep.mubr.msk.bf16.mxu0 %vm7110_vm6, %v6739_v25  ;;  %v7236_v40 = vld [vmem:[%s7067_s19 + $0x68] sm:$0xff] }
  0x4f   : > { %1615 = vmatmul.mubr.bf16.vlgmr.msra.gmra.mrb[0].mxu1 %v6874_v0  ;;  %v7151_v0 = vpack.c.bf16 %v7131_v57, %v7127_v56  ;;  %5952 = vmatprep.subr.bf16.mxu0 %v6613_v1  ;;  %v7272_v10 = vsel %vm437_vm3, %v7236_v40, 0.0  ;;  %v645_v27 = vld [vmem:[#allocation2 + $0x78] sm:$0xff] }
  0x50   : > { %6737 = vmatprep.mubr.msk.bf16.mxu1 %vm7110_vm6, %v6733_v52  ;;  %v9255_v52 = vshll.u32 %v7213_v29, 16  ;;  %9334 = vst [vmem:[#allocation20_spill] sm:$0xff] %v7272_v10  ;;  %v7282_v23 = vpack.c.bf16 %v7272_v10, %v7257_v60  ;;  %v7472_v10 = vld [vmem:[%s7067_s19 + $0xc8] sm:$0xff] }
  0x51   : > { %488 = vst [vmem:[#allocation2 + $0x50] sm:$0xff] %v7151_v0  ;;  %v9254_v11 = vshrl.u32 %v7151_v0, 16  ;;  %v9261_v12 = vshll.u32 %v7151_v0, 16 }
  0x52   : > { %5953 = vmatpush3.bf16.msra.mxu0 %v6613_v1  ;;  %v9253_v1 = vshrl.u32 %v7251_v55, 16  ;;  %492 = vst [vmem:[#allocation2 + $0xb0] sm:$0xff] %v7282_v23 }
  0x53   : > { %v519_v20 = vrot.slane %v9254_v11, 7  ;;  %5954 = vmatprep.subr.bf16.mxu0 %v6614_v31 }
  0x55   : > { %v522_v34 = vor.u32 %v9261_v12, %v519_v20  ;;  %v9259_v20 = vshll.u32 %v7251_v55, 16  ;;  %1157 = vmatmul.mubr.bf16.gmra.mrb[4].mxu0 %v637_v33 }
  0x56   : > { %6746 = vmatprep.mubr.msk.bf16.mxu0 %vm7110_vm6, %v6745_v46  ;;  %5955 = vmatpush3.bf16.msra.mxu0 %v6614_v31 }
  0x57   : > { %1623 = vmatmul.mubr.bf16.gmra.mrb[4].mxu1 %v634_v16  ;;  %v7247_v54 = vsel %vm7142_vm7, %v522_v34, %v639_v35  ;;  %v327_v16 = vld [vmem:[#allocation2 + $0xc0] sm:$0x1]  ;;  %v7294_v34 = vsel %vm7142_vm7, %v529_v6, %v642_v17  ;;  %v536_v35 = vor.u32 %v9255_v52, %v533_v9  ;;  %v540_v6 = vrot.slane %v9253_v1, 7  ;;  %5956 = vmatprep.subr.bf16.mxu0 %v6615_v14 }
  0x58   : > { %6743 = vmatprep.mubr.msk.bf16.mxu1 %vm7110_vm6, %v6739_v25  ;;  %641 = vst [vmem:[#allocation2 + $0x48] sm:$0xff] %v7247_v54  ;;  %v325_v25 = vsel %vm7036_vm2, 0, %v324_v42  ;;  %v330_v42 = vld [vmem:[#allocation2 + $0xd8] sm:$0x1]  ;;  %644 = vst [vmem:[#allocation2 + $0x60] sm:$0xff] %v7294_v34  ;;  %v9258_v9 = vshrl.u32 %v7282_v23, 16  ;;  %v7323_v1 = vpack.c.bf16 %v7304_v58, %v7300_v43 }
  0x59   : > { %326 = vst [vmem:[#allocation2 + $0xa8] sm:$0x1] %v325_v25  ;;  %v9264_v17 = vshll.u32 %v7282_v23, 16  ;;  %v7315_v25 = vld [vmem:[%s9242_s1 + $0x160] sm:$0xff]   ;;  %v328_v11 = vsel %vm7036_vm2, 0, %v327_v16  ;;  %v7329_v52 = vsel %vm437_vm3, %v7287_v26, 0.0  ;;  %v7337_v47 = vsel %vm7142_vm7, %v536_v35, %v645_v27 }
  0x5a   : > { %9337 = vst [vmem:[#allocation23_spill] sm:$0xff] %v7329_v52  ;;  %v543_v48 = vor.u32 %v9259_v20, %v540_v6  ;;  %v547_v31 = vrot.slane %v9258_v9, 7  ;;  %329 = vst [vmem:[#allocation2 + $0xc0] sm:$0x1] %v328_v11  ;;  %v6617_v16 = vld [vmem:[%s9242_s1 + $0x80] sm:$0xff]   ;;  %v9266_v27 = vshrl.u32 %v7323_v1, 16  ;;  %v7357_v11 = vpack.c.bf16 %v7333_v62, %v7329_v52  ;;  %5957 = vmatpush3.bf16.msra.mxu0 %v6615_v14 }
  0x5b   : > { %647 = vst [vmem:[#allocation2 + $0x78] sm:$0xff] %v7337_v47  ;;  %493 = vst [vmem:[#allocation2 + $0xc8] sm:$0xff] %v7323_v1  ;;  %v331_v35 = vsel %vm7036_vm2, 0, %v330_v42  ;;  %v7362_v6 = vld [vmem:[%s7067_s19 + $0x98] sm:$0xff]  ;;  %v648_v9 = vld [vmem:[#allocation2 + $0x90] sm:$0xff]  ;;  %5998 = vmatprep.subr.bf16.mxu1 %v6617_v16  ;;  %5958 = vmatprep.subr.bf16.mxu0 %v7315_v25 }
  0x5c   : > { %v550_v20 = vor.u32 %v9264_v17, %v547_v31  ;;  %332 = vst [vmem:[#allocation2 + $0xd8] sm:$0x1] %v331_v35  ;;  %v7372_v12 = vsel %vm437_vm3, %v7362_v6, 0.0  ;;  %v7384_v31 = vsel %vm7142_vm7, %v543_v48, %v648_v9  ;;  %v554_v35 = vrot.slane %v9266_v27, 7  ;;  %494 = vst [vmem:[#allocation2 + $0xe0] sm:$0xff] %v7357_v11  ;;  %5999 = vmatpush3.bf16.msra.mxu1 %v6617_v16 }
  0x5d   : > { %9340 = vst [vmem:[#allocation26_spill] sm:$0xff] %v7372_v12  ;;  %v9270_v17 = vshrl.u32 %v7357_v11, 16  ;;  %650 = vst [vmem:[#allocation2 + $0x90] sm:$0xff] %v7384_v31  ;;  %v7398_v14 = vpack.c.bf16 %v7372_v12, %v7368_v49  ;;  %v7402_v48 = vsel %vm437_vm3, %v7377_v63, 0.0  ;;  %v7406_v16 = vsel %vm437_vm3, %v7380_v50, 0.0  ;;  %v6619_v49 = vld [vmem:[%s9242_s1 + $0x88] sm:$0xff]   ;;  %1165 = vmatmul.mubr.bf16.gmra.mrb[8].mxu0 %v7247_v54 }
  0x5e   : > { %9341 = vst [vmem:[#allocation27_spill] sm:$0xff] %v7402_v48  ;;  %9342 = vst [vmem:[#allocation28_spill] sm:$0xff] %v7406_v16  ;;  %v9343_v27 = vshll.u32 %v7323_v1, 16  ;;  %v7418_v12 = vpack.c.bf16 %v7406_v16, %v7402_v48  ;;  %v9344_v16 = vshll.u32 %v7357_v11, 16  ;;  %5959 = vmatpush3.bf16.msra.mxu0 %v7315_v25  ;;  %6000 = vmatprep.subr.bf16.mxu1 %v6619_v49 }
  0x5f   : > { %1631 = vmatmul.mubr.bf16.gmra.mrb[8].mxu1 %v637_v33  ;;  %v336_v33 = vld [vmem:[#allocation2 + $0x108] sm:$0x1]  ;;  %v561_v52 = vrot.slane %v9270_v17, 7  ;;  %495 = vst [vmem:[#allocation2 + $0xf8] sm:$0xff] %v7398_v14 }
  0x60   : > { %6749 = vmatprep.mubr.msk.bf16.mxu1 %vm7110_vm6, %v6745_v46  ;;  %v333_v46 = vld [vmem:[#allocation2 + $0xf0] sm:$0x1]  ;;  %v651_v62 = vld [vmem:[#allocation2 + $0xa8] sm:$0xff]  ;;  %v557_v9 = vor.u32 %v9343_v27, %v554_v35  ;;  %v337_v27 = vsel %vm7036_vm2, 0, %v336_v33  ;;  %v6751_v35 = vpack.c.bf16 %v7157_v2, %v7136_v59  ;;  %496 = vst [vmem:[#allocation2 + $0x110] sm:$0xff] %v7418_v12  ;;  %v7444_v59 = vld [vmem:[%s7067_s19 + $0xb8] sm:$0xff]  ;;  %6001 = vmatpush3.bf16.msra.mxu1 %v6619_v49 }
  0x61   : > { %v334_v42 = vsel %vm7036_vm2, 0, %v333_v46  ;;  %v6618_v46 = vld [vmem:[%s9242_s1 + $0x168] sm:$0xff]   ;;  %v654_v17 = vld [vmem:[#allocation2 + $0xc0] sm:$0xff]  ;;  %v564_v48 = vor.u32 %v9344_v16, %v561_v52  ;;  %338 = vst [vmem:[#allocation2 + $0x108] sm:$0x1] %v337_v27  ;;  %v7441_v33 = vld [vmem:[%s7067_s19 + $0xb0] sm:$0xff] }
  0x62   : > { %335 = vst [vmem:[#allocation2 + $0xf0] sm:$0x1] %v334_v42  ;;  %v7410_v42 = vsel %vm7142_vm7, %v550_v20, %v651_v62  ;;  %6752 = vmatprep.mubr.msk.bf16.mxu0 %vm7110_vm6, %v6751_v35  ;;  %v9277_v20 = vshrl.u32 %v7418_v12, 16  ;;  %v7449_v2 = vsel %vm7142_vm7, %v557_v9, %v654_v17  ;;  %v9345_v52 = vshrl.u32 %v7398_v14, 16  ;;  %5960 = vmatprep.subr.bf16.mxu0 %v6618_v46  ;;  %v339_v27 = vld [vmem:[#allocation2 + $0x120] sm:$0x1] }
  0x63   : > { %653 = vst [vmem:[#allocation2 + $0xa8] sm:$0xff] %v7410_v42  ;;  %v7455_v16 = vsel %vm437_vm3, %v7441_v33, 0.0  ;;  %v7458_v62 = vld [vmem:[%s7067_s19 + $0xc0] sm:$0xff]  ;;  %656 = vst [vmem:[#allocation2 + $0xc0] sm:$0xff] %v7449_v2  ;;  %v7467_v9 = vsel %vm437_vm3, %v7444_v59, 0.0  ;;  %5961 = vmatpush3.bf16.msra.mxu0 %v6618_v46  ;;  %v7493_v49 = vsel %vm437_vm3, %v7472_v10, 0.0 }
  0x64   : > { %v568_v25 = vrot.slane %v9345_v52, 7  ;;  %9346 = vst [vmem:[#allocation29_spill] sm:$0xff] %v7455_v16  ;;  %v575_v17 = vrot.slane %v9277_v20, 7  ;;  %9347 = vst [vmem:[#allocation30_spill] sm:$0xff] %v7467_v9  ;;  %v340_v52 = vsel %vm7036_vm2, 0, %v339_v27  ;;  %v7482_v20 = vpack.c.bf16 %v7467_v9, %v7455_v16  ;;  %v7516_v9 = vld [vmem:[%s7067_s19 + $0xd0] sm:$0xff] }
  0x65   : > { %341 = vst [vmem:[#allocation2 + $0x120] sm:$0x1] %v340_v52  ;;  %v7486_v22 = vsel %vm437_vm3, %v7458_v62, 0.0  ;;  %v342_v27 = vld [vmem:[#allocation2 + $0x138] sm:$0x1]  ;;  %9351 = vst [vmem:[#allocation32_spill] sm:$0xff] %v7493_v49  ;;  %1173 = vmatmul.mubr.bf16.gmra.mrb[12].mxu0 %v7294_v34 }
  0x66   : > { %9349 = vst [vmem:[#allocation31_spill] sm:$0xff] %v7486_v22  ;;  %v6620_v52 = vld [vmem:[%s9242_s1 + $0x170] sm:$0xff]   ;;  %497 = vst [vmem:[#allocation2 + $0x128] sm:$0xff] %v7482_v20  ;;  %v9284_v46 = vshrl.u32 %v7482_v20, 16  ;;  %v7519_v16 = vld [vmem:[%s7067_s19 + $0xd8] sm:$0xff]  ;;  %6758 = vmatprep.mubr.msk.bf16.mxu0 %vm7110_vm6, %v6757_v39  ;;  %v9354_v8 = vshll.u32 %v7482_v20, 16 }
  0x67   : > { %1639 = vmatmul.mubr.bf16.gmra.mrb[12].mxu1 %v7247_v54  ;;  %v657_v54 = vld [vmem:[#allocation2 + $0xd8] sm:$0xff]  ;;  %5962 = vmatprep.subr.bf16.mxu0 %v6620_v52 }
  0x68   : > { %6755 = vmatprep.mubr.msk.bf16.mxu1 %vm7110_vm6, %v6751_v35  ;;  %v7476_v58 = vsel %vm7142_vm7, %v564_v48, %v657_v54  ;;  %v9348_v35 = vshll.u32 %v7398_v14, 16  ;;  %v9350_v48 = vshll.u32 %v7418_v12, 16  ;;  %5963 = vmatpush3.bf16.msra.mxu0 %v6620_v52 }
  0x69   : > { %v660_v43 = vld [vmem:[#allocation2 + $0xf0] sm:$0xff]  ;;  %659 = vst [vmem:[#allocation2 + $0xd8] sm:$0xff] %v7476_v58 }
  0x6a   : > { %v571_v60 = vor.u32 %v9348_v35, %v568_v25  ;;  %v578_v54 = vor.u32 %v9350_v48, %v575_v17  ;;  %v343_v25 = vsel %vm7036_vm2, 0, %v342_v27  ;;  %v6621_v35 = vld [vmem:[%s9242_s1 + $0x90] sm:$0xff]   ;;  %v7512_v27 = vpack.c.bf16 %v7493_v49, %v7486_v22  ;;  %v6622_v22 = vld [vmem:[%s9242_s1 + $0x98] sm:$0xff]  }
  0x6b   : > { %344 = vst [vmem:[#allocation2 + $0x138] sm:$0x1] %v343_v25  ;;  %6002 = vmatprep.subr.bf16.mxu1 %v6621_v35  ;;  %v582_v48 = vrot.slane %v9284_v46, 7  ;;  %v7540_v49 = vsel %vm437_vm3, %v7516_v9, 0.0 }
  0x6c   : > { %v7505_v17 = vsel %vm7142_vm7, %v571_v60, %v660_v43  ;;  %v345_v60 = vld [vmem:[#allocation2 + $0x150] sm:$0x1]  ;;  %v663_v43 = vld [vmem:[#allocation2 + $0x108] sm:$0xff]  ;;  %498 = vst [vmem:[#allocation2 + $0x140] sm:$0xff] %v7512_v27  ;;  %6003 = vmatpush3.bf16.msra.mxu1 %v6621_v35  ;;  %9352 = vst [vmem:[#allocation33_spill] sm:$0xff] %v7540_v49  ;;  %v7544_v35 = vsel %vm437_vm3, %v7519_v16, 0.0 }
  0x6d   : > { %662 = vst [vmem:[#allocation2 + $0xf0] sm:$0xff] %v7505_v17  ;;  %v7536_v46 = vsel %vm7142_vm7, %v578_v54, %v663_v43  ;;  %9353 = vst [vmem:[#allocation34_spill] sm:$0xff] %v7544_v35  ;;  %v346_v25 = vsel %vm7036_vm2, 0, %v345_v60  ;;  %v585_v54 = vor.u32 %v9354_v8, %v582_v48  ;;  %v9355_v52 = vshrl.u32 %v7512_v27, 16  ;;  %6004 = vmatprep.subr.bf16.mxu1 %v6622_v22  ;;  %v666_v60 = vld [vmem:[#allocation2 + $0x120] sm:$0xff] }
  0x6e   : > { %665 = vst [vmem:[#allocation2 + $0x108] sm:$0xff] %v7536_v46  ;;  %v7559_v21 = vpack.c.bf16 %v7544_v35, %v7540_v49  ;;  %347 = vst [vmem:[#allocation2 + $0x150] sm:$0x1] %v346_v25  ;;  %v7571_v48 = vsel %vm437_vm3, %v7549_v7, 0.0  ;;  %v7575_v8 = vsel %vm437_vm3, %v7562_v36, 0.0  ;;  %1181 = vmatmul.mubr.bf16.gmra.mrb[16].mxu0 %v7337_v47 }
  0x6f   : > { %1647 = vmatmul.mubr.bf16.gmra.mrb[16].mxu1 %v7294_v34  ;;  %v589_v43 = vrot.slane %v9355_v52, 7  ;;  %v6623_v34 = vld [vmem:[%s9242_s1 + $0x178] sm:$0xff]   ;;  %9356 = vst [vmem:[#allocation35_spill] sm:$0xff] %v7571_v48  ;;  %9357 = vst [vmem:[#allocation36_spill] sm:$0xff] %v7575_v8  ;;  %v348_v25 = vld [vmem:[#allocation2 + $0x168] sm:$0x1]  ;;  %v7582_v35 = vsel %vm7142_vm7, %v585_v54, %v666_v60  ;;  %v7592_v54 = vpack.c.bf16 %v7575_v8, %v7571_v48 }
  0x70   : > { %6761 = vmatprep.mubr.msk.bf16.mxu1 %vm7110_vm6, %v6757_v39  ;;  %v6624_v52 = vld [vmem:[%s9242_s1 + $0xa0] sm:$0xff]   ;;  %v9358_v39 = vshll.u32 %v7512_v27, 16  ;;  %499 = vst [vmem:[#allocation2 + $0x158] sm:$0xff] %v7559_v21  ;;  %v9293_v57 = vshrl.u32 %v7559_v21, 16  ;;  %6005 = vmatpush3.bf16.msra.mxu1 %v6622_v22  ;;  %668 = vst [vmem:[#allocation2 + $0x120] sm:$0xff] %v7582_v35  ;;  %v7612_v8 = vld [vmem:[%s7067_s19 + $0xf8] sm:$0xff] }
  0x71   : > { %5964 = vmatprep.subr.bf16.mxu0 %v6623_v34  ;;  %6006 = vmatprep.subr.bf16.mxu1 %v6624_v52  ;;  %9360 = vst [vmem:[#allocation38_spill] sm:$0xff] %v7612_v8  ;;  %v9364_v3 = vshrl.u32 %v7592_v54, 16 }
  0x72   : > { %v592_v49 = vor.u32 %v9358_v39, %v589_v43  ;;  %v669_v56 = vld [vmem:[#allocation2 + $0x138] sm:$0xff]  ;;  %v349_v43 = vsel %vm7036_vm2, 0, %v348_v25  ;;  %5965 = vmatpush3.bf16.msra.mxu0 %v6623_v34  ;;  %v596_v22 = vrot.slane %v9293_v57, 7  ;;  %v6625_v34 = vld [vmem:[%s9242_s1 + $0xa8] sm:$0xff]   ;;  %v7609_v25 = vld [vmem:[%s7067_s19 + $0xf0] sm:$0xff]  ;;  %v7623_v57 = vsel %vm437_vm3, %v7612_v8, 0.0 }
  0x73   : > { %350 = vst [vmem:[#allocation2 + $0x168] sm:$0x1] %v349_v43  ;;  %9359 = vst [vmem:[#allocation37_spill] sm:$0xff] %v7609_v25  ;;  %v7619_v43 = vsel %vm437_vm3, %v7609_v25, 0.0  ;;  %v6763_v39 = vpack.c.bf16 %v7194_v19, %v7183_v15  ;;  %v9368_v19 = vshll.u32 %v7592_v54, 16 }
  0x74   : > { %v7598_v60 = vsel %vm7142_vm7, %v592_v49, %v669_v56  ;;  %v9361_v56 = vshll.u32 %v7559_v21, 16  ;;  %6007 = vmatpush3.bf16.msra.mxu1 %v6624_v52  ;;  %9362 = vst [vmem:[#allocation39_spill] sm:$0xff] %v7619_v43  ;;  %9363 = vst [vmem:[#allocation40_spill] sm:$0xff] %v7623_v57  ;;  %v7633_v52 = vpack.c.bf16 %v7623_v57, %v7619_v43  ;;  %v9369_v43 = vshll.u32 %v7119_v53, 16  ;;  %v366_v8 = vld [vmem:[#allocation2 + $0x70] sm:$0x80] }
  0x75   : > { %671 = vst [vmem:[#allocation2 + $0x138] sm:$0xff] %v7598_v60  ;;  %6764 = vmatprep.mubr.msk.bf16.mxu0 %vm7110_vm6, %v6763_v39  ;;  %v672_v48 = vld [vmem:[#allocation2 + $0x150] sm:$0xff]  ;;  %6008 = vmatprep.subr.bf16.mxu1 %v6625_v34 }
  0x76   : > { %v599_v49 = vor.u32 %v9361_v56, %v596_v22  ;;  %v603_v22 = vrot.slane %v9364_v3, 7  ;;  %v352_v56 = vsel %vm7036_vm2, 0, %v351_v13  ;;  %v6626_v3 = vld [vmem:[%s9242_s1 + $0xb0] sm:$0xff]   ;;  %v681_v13 = vrot.slane %v9367_v24, 1  ;;  %1189 = vmatmul.mubr.bf16.gmra.mrb[20].mxu0 %v7384_v31 }
  0x77   : > { %1655 = vmatmul.mubr.bf16.gmra.mrb[20].mxu1 %v7337_v47  ;;  %353 = vst [vmem:[#allocation2 + $0x180] sm:$0x1] %v352_v56  ;;  %v9301_v57 = vshrl.u32 %v7633_v52, 16  ;;  %v6628_v56 = vld [vmem:[%s9242_s1 + $0x1c0] sm:$0xff]   ;;  %v683_v24 = vrot.slane %v9369_v43, 1 }
  0x78   : > { %v7646_v15 = vsel %vm7142_vm7, %v599_v49, %v672_v48  ;;  %6767 = vmatprep.mubr.msk.bf16.mxu1 %vm7110_vm6, %v6763_v39  ;;  %v606_v47 = vor.u32 %v9368_v19, %v603_v22  ;;  %v357_v49 = vld [vmem:[#allocation2 + $0x28] sm:$0x80]  ;;  %6009 = vmatpush3.bf16.msra.mxu1 %v6625_v34  ;;  %v6627_v19 = vld [vmem:[%s9242_s1 + $0xb8] sm:$0xff]   ;;  %v361_v48 = vsel %vm7639_vm11, 0, %v360_v45  ;;  %v9372_v45 = vshrl.u32 %v7090_v41, 16 }
  0x79   : > { %674 = vst [vmem:[#allocation2 + $0x150] sm:$0xff] %v7646_v15  ;;  %v358_v39 = vsel %vm7639_vm11, 0, %v357_v49  ;;  %v610_v22 = vrot.slane %v9301_v57, 7  ;;  %6010 = vmatprep.subr.bf16.mxu1 %v6626_v3  ;;  %5406 = vmatprep.subr.bf16.mxu0 %v6628_v56  ;;  %362 = vst [vmem:[#allocation2 + $0x40] sm:$0x80] %v361_v48  ;;  %v9370_v49 = vshll.u32 %v7633_v52, 16 }
  0x7a   : > { %v675_v37 = vld [vmem:[#allocation2 + $0x168] sm:$0xff]  ;;  %359 = vst [vmem:[#allocation2 + $0x28] sm:$0x80] %v358_v39  ;;  %v363_v43 = vld [vmem:[#allocation2 + $0x58] sm:$0x80]  ;;  %v9371_v39 = vshll.u32 %v7151_v0, 16 }
  0x7b   : > { %v7676_v34 = vsel %vm7142_vm7, %v606_v47, %v675_v37  ;;  %v613_v57 = vor.u32 %v9370_v49, %v610_v22  ;;  %v364_v44 = vsel %vm7639_vm11, 0, %v363_v43  ;;  %v367_v37 = vsel %vm7639_vm11, 0, %v366_v8  ;;  %v372_v8 = vld [vmem:[#allocation2 + $0xa0] sm:$0x80] }
  0x7c   : > { %677 = vst [vmem:[#allocation2 + $0x168] sm:$0xff] %v7676_v34  ;;  %v685_v25 = vrot.slane %v9371_v39, 1  ;;  %6011 = vmatpush3.bf16.msra.mxu1 %v6626_v3  ;;  %365 = vst [vmem:[#allocation2 + $0x58] sm:$0x80] %v364_v44  ;;  %v682_v47 = vor.u32 %v681_v13, %v9372_v45  ;;  %v9373_v48 = vshll.u32 %v7191_v18, 16  ;;  %v6769_v22 = vpack.c.bf16 %v7236_v40, %v7221_v32 }
  0x7d   : > { %6012 = vmatprep.subr.bf16.mxu1 %v6627_v19  ;;  %368 = vst [vmem:[#allocation2 + $0x70] sm:$0x80] %v367_v37  ;;  %v369_v3 = vld [vmem:[#allocation2 + $0x88] sm:$0x80]  ;;  %v9374_v44 = vshrl.u32 %v7119_v53, 16  ;;  %v9375_v32 = vmov 0 }
  0x7e   : > { %v687_v56 = vrot.slane %v9373_v48, 1  ;;  %6770 = vmatprep.mubr.msk.bf16.mxu0 %vm7110_vm6, %v6769_v22  ;;  %v678_v43 = vld [vmem:[#allocation2 + $0x180] sm:$0xff]  ;;  %v9376_v32 = vsel %vm7705_vm12, 4294967295, %v9375_v32  ;;  %v370_v40 = vsel %vm7639_vm11, 0, %v369_v3  ;;  %v9378_v13 = vshll.u32 %v7213_v29, 16 }
  0x7f   : > { %v684_v49 = vor.u32 %v683_v24, %v9374_v44  ;;  %1663 = vmatmul.mubr.bf16.gmra.mrb[24].mxu1 %v7384_v31  ;;  %v7701_v41 = vsel %vm7142_vm7, %v613_v57, %v678_v43  ;;  %9377 = vst [vmem:[#allocation41_spill] sm:$0xff] %v9376_v32  ;;  %371 = vst [vmem:[#allocation2 + $0x88] sm:$0x80] %v370_v40  ;;  %v373_v57 = vsel %vm7639_vm11, 0, %v372_v8  ;;  %v9379_v31 = vshll.u32 %v7251_v55, 16 }
  0x80   : > { %v689_v53 = vrot.slane %v9378_v13, 1  ;;  %6773 = vmatprep.mubr.msk.bf16.mxu1 %vm7110_vm6, %v6769_v22  ;;  %680 = vst [vmem:[#allocation2 + $0x180] sm:$0xff] %v7701_v41  ;;  %6013 = vmatpush3.bf16.msra.mxu1 %v6627_v19  ;;  %v9380_v37 = vshrl.u32 %v7151_v0, 16  ;;  %374 = vst [vmem:[#allocation2 + $0xa0] sm:$0x80] %v373_v57  ;;  %v734_v22 = vld [vmem:[#allocation2 + $0x40] sm:$0xff] }
  0x81   : > { %v691_v24 = vrot.slane %v9379_v31, 1  ;;  %v731_v39 = vld [vmem:[#allocation2 + $0x28] sm:$0xff]  ;;  %v375_v48 = vld [vmem:[#allocation2 + $0xb8] sm:$0x80]  ;;  %v9381_v3 = vshrl.u32 %v7191_v18, 16  ;;  %v9382_v19 = vshll.u32 %v7282_v23, 16  ;;  %v7735_v0 = vsel %vm7705_vm12, %v684_v49, %v734_v22  ;;  %1197 = vmatmul.mubr.bf16.gmra.mrb[24].mxu0 %v7410_v42 }
  0x82   : > { %v686_v45 = vor.u32 %v685_v25, %v9380_v37  ;;  %v7724_v43 = vsel %vm7705_vm12, %v682_v47, %v731_v39  ;;  %v376_v40 = vsel %vm7639_vm11, 0, %v375_v48  ;;  %v378_v8 = vld [vmem:[#allocation2 + $0xd0] sm:$0x80]  ;;  %v9383_v18 = vshll.u32 %v7323_v1, 16  ;;  %736 = vst [vmem:[#allocation2 + $0x40] sm:$0xff] %v7735_v0 }
  0x83   : > { %v688_v44 = vor.u32 %v687_v56, %v9381_v3  ;;  %v693_v13 = vrot.slane %v9382_v19, 1  ;;  %733 = vst [vmem:[#allocation2 + $0x28] sm:$0xff] %v7724_v43  ;;  %377 = vst [vmem:[#allocation2 + $0xb8] sm:$0x80] %v376_v40  ;;  %v379_v25 = vsel %vm7639_vm11, 0, %v378_v8  ;;  %v737_v56 = vld [vmem:[#allocation2 + $0x58] sm:$0xff]  ;;  %v6775_v40 = vpack.c.bf16 %v7263_v5, %v7260_v4 }
  0x84   : > { %v695_v47 = vrot.slane %v9383_v18, 1  ;;  %v9384_v57 = vshrl.u32 %v7213_v29, 16  ;;  %380 = vst [vmem:[#allocation2 + $0xd0] sm:$0x80] %v379_v25  ;;  %v7747_v49 = vsel %vm7705_vm12, %v686_v45, %v737_v56  ;;  %v740_v39 = vld [vmem:[#allocation2 + $0x70] sm:$0xff]  ;;  %v9385_v37 = vshrl.u32 %v7251_v55, 16 }
  0x85   : > { %v381_v22 = vld [vmem:[#allocation2 + $0xe8] sm:$0x80]  ;;  %v384_v3 = vld [vmem:[#allocation2 + $0x100] sm:$0x80]  ;;  %6776 = vmatprep.mubr.msk.bf16.mxu0 %vm7110_vm6, %v6775_v40  ;;  %739 = vst [vmem:[#allocation2 + $0x58] sm:$0xff] %v7747_v49  ;;  %v7758_v29 = vsel %vm7705_vm12, %v688_v44, %v740_v39  ;;  %v9387_v5 = vshll.u32 %v7398_v14, 16 }
  0x86   : > { %v690_v31 = vor.u32 %v689_v53, %v9384_v57  ;;  %v692_v48 = vor.u32 %v691_v24, %v9385_v37  ;;  %v382_v53 = vsel %vm7639_vm11, 0, %v381_v22  ;;  %v385_v55 = vsel %vm7639_vm11, 0, %v384_v3  ;;  %742 = vst [vmem:[#allocation2 + $0x70] sm:$0xff] %v7758_v29  ;;  %v743_v8 = vld [vmem:[#allocation2 + $0x88] sm:$0xff]  ;;  %v387_v22 = vld [vmem:[#allocation2 + $0x118] sm:$0x80] }
  0x87   : > { %1671 = vmatmul.mubr.bf16.gmra.mrb[28].mxu1 %v7410_v42  ;;  %v9386_v24 = vshll.u32 %v7357_v11, 16  ;;  %v699_v45 = vrot.slane %v9387_v5, 1  ;;  %v9388_v44 = vshrl.u32 %v7282_v23, 16  ;;  %383 = vst [vmem:[#allocation2 + $0xe8] sm:$0x80] %v382_v53  ;;  %v746_v25 = vld [vmem:[#allocation2 + $0xa0] sm:$0xff] }
  0x88   : > { %386 = vst [vmem:[#allocation2 + $0x100] sm:$0x80] %v385_v55  ;;  %6779 = vmatprep.mubr.msk.bf16.mxu1 %vm7110_vm6, %v6775_v40  ;;  %v7776_v42 = vsel %vm7705_vm12, %v690_v31, %v743_v8  ;;  %v9389_v18 = vshrl.u32 %v7323_v1, 16  ;;  %v7783_v57 = vsel %vm7705_vm12, %v692_v48, %v746_v25  ;;  %v7788_v23 = vld [vmem:[%s9242_s1 + $0x200] sm:$0xff]   ;;  %v9391_v37 = vshrl.u32 %v7398_v14, 16 }
  0x89   : > { %v697_v4 = vrot.slane %v9386_v24, 1  ;;  %v694_v19 = vor.u32 %v693_v13, %v9388_v44  ;;  %745 = vst [vmem:[#allocation2 + $0x88] sm:$0xff] %v7776_v42  ;;  %748 = vst [vmem:[#allocation2 + $0xa0] sm:$0xff] %v7783_v57  ;;  %6046 = vmatprep.subr.bf16.mxu1 %v7788_v23  ;;  %v388_v40 = vsel %vm7639_vm11, 0, %v387_v22  ;;  %v390_v53 = vld [vmem:[#allocation2 + $0x130] sm:$0x80]  ;;  %1205 = vmatmul.mubr.bf16.gmra.mrb[28].mxu0 %v7449_v2 }
  0x8a   : > { %v696_v56 = vor.u32 %v695_v47, %v9389_v18  ;;  %v749_v13 = vld [vmem:[#allocation2 + $0xb8] sm:$0xff]  ;;  %v9390_v47 = vshrl.u32 %v7357_v11, 16  ;;  %v700_v48 = vor.u32 %v699_v45, %v9391_v37  ;;  %v9392_v11 = vshll.u32 %v7418_v12, 16  ;;  %389 = vst [vmem:[#allocation2 + $0x118] sm:$0x80] %v388_v40 }
  0x8b   : > { %v7793_v31 = vsel %vm7705_vm12, %v694_v19, %v749_v13  ;;  %v752_v1 = vld [vmem:[#allocation2 + $0xd0] sm:$0xff]  ;;  %v391_v14 = vsel %vm7639_vm11, 0, %v390_v53  ;;  %v6781_v24 = vpack.c.bf16 %v7290_v30, %v7287_v26  ;;  %v9394_v26 = vshll.u32 %v7512_v27, 16  ;;  %v393_v18 = vld [vmem:[#allocation2 + $0x148] sm:$0x80] }
  0x8c   : > { %v698_v39 = vor.u32 %v697_v4, %v9390_v47  ;;  %751 = vst [vmem:[#allocation2 + $0xb8] sm:$0xff] %v7793_v31  ;;  %v7803_v3 = vsel %vm7705_vm12, %v696_v56, %v752_v1  ;;  %v701_v55 = vrot.slane %v9392_v11, 1  ;;  %v9393_v4 = vshll.u32 %v7482_v20, 16  ;;  %392 = vst [vmem:[#allocation2 + $0x130] sm:$0x80] %v391_v14 }
  0x8d   : > { %754 = vst [vmem:[#allocation2 + $0xd0] sm:$0xff] %v7803_v3  ;;  %6782 = vmatprep.mubr.msk.bf16.mxu0 %vm7110_vm6, %v6781_v24  ;;  %v705_v30 = vrot.slane %v9394_v26, 1  ;;  %v396_v56 = vld [vmem:[#allocation2 + $0x160] sm:$0x80]  ;;  %v9396_v13 = vshll.u32 %v7559_v21, 16  ;;  %v9397_v47 = vshrl.u32 %v7482_v20, 16  ;;  %v6787_v20 = vpack.c.bf16 %v7362_v6, %v7347_v28 }
  0x8e   : > { %v703_v5 = vrot.slane %v9393_v4, 1  ;;  %v755_v45 = vld [vmem:[#allocation2 + $0xe8] sm:$0xff]  ;;  %v394_v37 = vsel %vm7639_vm11, 0, %v393_v18  ;;  %v399_v11 = vld [vmem:[#allocation2 + $0x178] sm:$0x80]  ;;  %v9398_v14 = vshrl.u32 %v7512_v27, 16 }
  0x8f   : > { %v758_v8 = vld [vmem:[#allocation2 + $0x100] sm:$0xff]  ;;  %1679 = vmatmul.mubr.bf16.gmra.mrb[32].mxu1 %v7449_v2  ;;  %v7822_v44 = vsel %vm7705_vm12, %v698_v39, %v755_v45  ;;  %v9395_v2 = vshrl.u32 %v7418_v12, 16  ;;  %v707_v1 = vrot.slane %v9396_v13, 1  ;;  %395 = vst [vmem:[#allocation2 + $0x148] sm:$0x80] %v394_v37  ;;  %v9399_v28 = vshrl.u32 %v7559_v21, 16 }
  0x90   : > { %v7826_v19 = vsel %vm7705_vm12, %v700_v48, %v758_v8  ;;  %6785 = vmatprep.mubr.msk.bf16.mxu1 %vm7110_vm6, %v6781_v24  ;;  %757 = vst [vmem:[#allocation2 + $0xe8] sm:$0xff] %v7822_v44  ;;  %v704_v39 = vor.u32 %v703_v5, %v9397_v47  ;;  %v397_v48 = vsel %vm7639_vm11, 0, %v396_v56  ;;  %v706_v24 = vor.u32 %v705_v30, %v9398_v14  ;;  %v6636_v37 = vld [vmem:[%s9242_s1 + $0x1e0] sm:$0xff]   ;;  %v6645_v14 = vld [vmem:[%s9242_s1 + $0x1b0] sm:$0xff]  }
  0x91   : > { %760 = vst [vmem:[#allocation2 + $0x100] sm:$0xff] %v7826_v19  ;;  %v702_v25 = vor.u32 %v701_v55, %v9395_v2  ;;  %398 = vst [vmem:[#allocation2 + $0x160] sm:$0x80] %v397_v48  ;;  %v761_v22 = vld [vmem:[#allocation2 + $0x118] sm:$0xff]  ;;  %1213 = vmatmul.mubr.bf16.gmra.mrb[32].mxu0 %v7476_v58  ;;  %v402_v55 = vld [vmem:[#allocation2 + $0x190] sm:$0x80]  ;;  %v708_v6 = vor.u32 %v707_v1, %v9399_v28  ;;  %v6793_v13 = vpack.c.bf16 %v7380_v50, %v7377_v63 }
  0x92   : > { %6788 = vmatprep.mubr.msk.bf16.mxu0 %vm7110_vm6, %v6787_v20  ;;  %v400_v4 = vsel %vm7639_vm11, 0, %v399_v11  ;;  %v403_v5 = vsel %vm7639_vm11, 0, %v402_v55  ;;  %v9400_v45 = vshll.u32 %v7592_v54, 16  ;;  %v9401_v8 = vshll.u32 %v7633_v52, 16  ;;  %v6650_v48 = vld [vmem:[%s9242_s1 + $0x230] sm:$0xff]   ;;  %v6641_v11 = vld [vmem:[%s9242_s1 + $0x1a8] sm:$0xff]  }
  0x93   : > { %v7847_v12 = vsel %vm7705_vm12, %v702_v25, %v761_v22  ;;  %v764_v40 = vld [vmem:[#allocation2 + $0x130] sm:$0xff]  ;;  %401 = vst [vmem:[#allocation2 + $0x178] sm:$0x80] %v400_v4  ;;  %404 = vst [vmem:[#allocation2 + $0x190] sm:$0x80] %v403_v5  ;;  %v9402_v2 = vshrl.u32 %v7592_v54, 16  ;;  %v6799_v50 = vpack.c.bf16 %v7444_v59, %v7441_v33  ;;  %v6805_v63 = vpack.c.bf16 %v7472_v10, %v7458_v62 }
  0x94   : > { %763 = vst [vmem:[#allocation2 + $0x118] sm:$0xff] %v7847_v12  ;;  %v7856_v53 = vsel %vm7705_vm12, %v704_v39, %v764_v40  ;;  %v711_v26 = vrot.slane %v9401_v8, 1  ;;  %v9403_v18 = vshrl.u32 %v7633_v52, 16  ;;  %v6811_v33 = vpack.c.bf16 %v7519_v16, %v7516_v9  ;;  %v9404_v62 = vld [vmem:[#allocation37_spill] sm:$0xff]  ;;  %v9405_v59 = vld [vmem:[#allocation38_spill] sm:$0xff]  ;;  %v6635_v39 = vld [vmem:[%s9242_s1 + $0x198] sm:$0xff]  }
  0x95   : > { %766 = vst [vmem:[#allocation2 + $0x130] sm:$0xff] %v7856_v53  ;;  %v7933_v10 = vpack.c.bf16 %v7562_v36, %v7549_v7  ;;  %v7945_v16 = vpack.c.bf16 %v9405_v59, %v9404_v62  ;;  %v7951_v36 = vld [vmem:[#allocation2 + $0x8] sm:$0xff]  ;;  %v6643_v7 = vld [vmem:[%s9242_s1 + $0x218] sm:$0xff]   ;;  %v6637_v22 = vld [vmem:[%s9242_s1 + $0x1a0] sm:$0xff]  }
  0x96   : > { %v767_v27 = vld [vmem:[#allocation2 + $0x148] sm:$0xff]  ;;  %v712_v56 = vor.u32 %v711_v26, %v9403_v18  ;;  %v6644_v55 = vld [vmem:[%s9242_s1 + $0x1f0] sm:$0xff]   ;;  %v6649_v28 = vld [vmem:[%s9242_s1 + $0x1b8] sm:$0xff]  }
  0x97   : > { %1687 = vmatmul.mubr.bf16.gmra.mrb[36].mxu1 %v7476_v58  ;;  %v709_v58 = vrot.slane %v9400_v45, 1  ;;  %v7876_v30 = vsel %vm7705_vm12, %v706_v24, %v767_v27  ;;  %v6639_v9 = vld [vmem:[%s9242_s1 + $0x208] sm:$0xff]   ;;  %v6648_v24 = vld [vmem:[%s9242_s1 + $0x1f8] sm:$0xff]   ;;  %v1905_v4 = vld [vmem:[#allocation2 + $0x30] sm:$0xff] }
  0x98   : > { %6791 = vmatprep.mubr.msk.bf16.mxu1 %vm7110_vm6, %v6787_v20  ;;  %v770_v21 = vld [vmem:[#allocation2 + $0x160] sm:$0xff]  ;;  %769 = vst [vmem:[#allocation2 + $0x148] sm:$0xff] %v7876_v30  ;;  %v6640_v40 = vld [vmem:[%s9242_s1 + $0x1e8] sm:$0xff]   ;;  %v6651_v20 = vld [vmem:[%s9242_s1 + $0x238] sm:$0xff]  }
  0x99   : > { %v7880_v38 = vsel %vm7705_vm12, %v708_v6, %v770_v21  ;;  %v710_v25 = vor.u32 %v709_v58, %v9402_v2  ;;  %1221 = vmatmul.mubr.bf16.gmra.mrb[36].mxu0 %v7505_v17  ;;  %v1906_v6 = vld [vmem:[#allocation2 + $0x38] sm:$0xff]  ;;  %v1909_v5 = vld [vmem:[#allocation2 + $0x50] sm:$0xff]  ;;  %v1908_v45 = vld [vmem:[#allocation2 + $0x48] sm:$0xff] }
  0x9a   : > { %772 = vst [vmem:[#allocation2 + $0x160] sm:$0xff] %v7880_v38  ;;  %6794 = vmatprep.mubr.msk.bf16.mxu0 %vm7110_vm6, %v6793_v13  ;;  %v773_v1 = vld [vmem:[#allocation2 + $0x178] sm:$0xff]  ;;  %v776_v47 = vld [vmem:[#allocation2 + $0x190] sm:$0xff]  ;;  %v1912_v58 = vld [vmem:[#allocation2 + $0x68] sm:$0xff] }
  0x9b   : > { %v7898_v54 = vsel %vm7705_vm12, %v710_v25, %v773_v1  ;;  %v7902_v52 = vsel %vm7705_vm12, %v712_v56, %v776_v47 }
  0x9c   : > { %775 = vst [vmem:[#allocation2 + $0x178] sm:$0xff] %v7898_v54  ;;  %778 = vst [vmem:[#allocation2 + $0x190] sm:$0xff] %v7902_v52 }
  0x9f   : > { %1695 = vmatmul.mubr.bf16.gmra.mrb[40].mxu1 %v7505_v17  ;;  %v6642_v17 = vld [vmem:[%s9242_s1 + $0x210] sm:$0xff]  }
  0xa0   : > { %6797 = vmatprep.mubr.msk.bf16.mxu1 %vm7110_vm6, %v6793_v13  ;;  %v1918_v13 = vld [vmem:[#allocation2 + $0x98] sm:$0xff] }
  0xa1   : > { %1229 = vmatmul.mubr.bf16.gmra.mrb[40].mxu0 %v7536_v46 }
  0xa2   : > { %6800 = vmatprep.mubr.msk.bf16.mxu0 %vm7110_vm6, %v6799_v50 }
  0xa7   : > { %1703 = vmatmul.mubr.bf16.gmra.mrb[44].mxu1 %v7536_v46  ;;  %v6629_v46 = vld [vmem:[%s9242_s1 + $0x180] sm:$0xff]  }
  0xa8   : > { %6803 = vmatprep.mubr.msk.bf16.mxu1 %vm7110_vm6, %v6799_v50 }
  0xa9   : > { %1237 = vmatmul.mubr.bf16.gmra.mrb[44].mxu0 %v7582_v35 }
  0xaa   : > { %6806 = vmatprep.mubr.msk.bf16.mxu0 %vm7110_vm6, %v6805_v63 }
  0xaf   : > { %1711 = vmatmul.mubr.bf16.gmra.mrb[48].mxu1 %v7582_v35  ;;  %v6630_v35 = vld [vmem:[%s9242_s1 + $0x1c8] sm:$0xff]  }
  0xb0   : > { %6809 = vmatprep.mubr.msk.bf16.mxu1 %vm7110_vm6, %v6805_v63 }
  0xb1   : > { %1245 = vmatmul.mubr.bf16.gmra.mrb[48].mxu0 %v7598_v60 }
  0xb2   : > { %6812 = vmatprep.mubr.msk.bf16.mxu0 %vm7110_vm6, %v6811_v33 }
  0xb7   : > { %1719 = vmatmul.mubr.bf16.gmra.mrb[52].mxu1 %v7598_v60  ;;  %v6631_v60 = vld [vmem:[%s9242_s1 + $0x188] sm:$0xff]  }
  0xb8   : > { %6815 = vmatprep.mubr.msk.bf16.mxu1 %vm7110_vm6, %v6811_v33 }
  0xb9   : > { %1253 = vmatmul.mubr.bf16.gmra.mrb[52].mxu0 %v7646_v15 }
  0xba   : > { %6818 = vmatprep.mubr.msk.bf16.mxu0 %vm7110_vm6, %v7933_v10 }
  0xbf   : > { %1727 = vmatmul.mubr.bf16.gmra.mrb[56].mxu1 %v7646_v15  ;;  %v6632_v15 = vld [vmem:[%s9242_s1 + $0x1d0] sm:$0xff]  }
  0xc0   : > { %6821 = vmatprep.mubr.msk.bf16.mxu1 %vm7110_vm6, %v7933_v10 }
  0xc1   : > { %1261 = vmatmul.mubr.bf16.gmra.mrb[56].mxu0 %v7676_v34 }
  0xc2   : > { %6824 = vmatprep.mubr.msk.bf16.mxu0 %vm7110_vm6, %v7945_v16 }
  0xc7   : > { %1735 = vmatmul.mubr.bf16.gmra.mrb[60].mxu1 %v7676_v34  ;;  %v6646_v34 = vld [vmem:[%s9242_s1 + $0x220] sm:$0xff]  }
  0xc8   : > { %6014 = vmatprep.mubr.bf16.mxu1 %v7951_v36 }
  0xc9   : > { %1269 = vmatmul.mubr.bf16.gmra.mrb[60].mxu0 %v7701_v41  ;;  %v6633_v41 = vld [vmem:[%s9242_s1 + $0x190] sm:$0xff]  }
  0xca   : > { %5966 = vmatprep.mubr.bf16.mxu0 %v7724_v43 }
  0xcf   : > { %6015 = vmatmul.mubr.bf16.vlgmr.msra.gmra.mrb[64].mxu1 %v7724_v43  ;;  %v6634_v43 = vld [vmem:[%s9242_s1 + $0x1d8] sm:$0xff]  }
  0xd0   : > { %6018 = vmatprep.mubr.bf16.mxu1 %v7735_v0  ;;  %6047 = vmatpush3.bf16.msra.mxu1 %v7788_v23  ;;  %v6647_v23 = vld [vmem:[%s9242_s1 + $0x228] sm:$0xff]  }
  0xd1   : > { %6048 = vmatprep.subr.bf16.mxu1 %v6639_v9  ;;  %5967 = vmatmul.mubr.bf16.vlgmr.msra.gmra.mrb[64].mxu0 %v7735_v0 }
  0xd2   : > { %5407 = vmatpush3.bf16.msra.mxu0 %v6629_v46  ;;  %5970 = vmatprep.mubr.bf16.mxu0 %v7747_v49 }
  0xd3   : > { %5408 = vmatprep.subr.bf16.mxu0 %v6630_v35 }
  0xd4   : > { %6049 = vmatpush3.bf16.msra.mxu1 %v6639_v9  ;;  %v1917_v9 = vld [vmem:[#allocation2 + $0x90] sm:$0xff] }
  0xd5   : > { %6050 = vmatprep.subr.bf16.mxu1 %v6642_v17 }
  0xd6   : > { %5409 = vmatpush3.bf16.msra.mxu0 %v6631_v60 }
  0xd7   : > { %6019 = vmatmul.mubr.bf16.gmra.mrb[68].mxu1 %v7747_v49  ;;  %5410 = vmatprep.subr.bf16.mxu0 %v6632_v15 }
  0xd8   : > { %6022 = vmatprep.mubr.bf16.mxu1 %v7758_v29  ;;  %6051 = vmatpush3.bf16.msra.mxu1 %v6642_v17 }
  0xd9   : > { %6052 = vmatprep.subr.bf16.mxu1 %v6643_v7  ;;  %5971 = vmatmul.mubr.bf16.gmra.mrb[68].mxu0 %v7758_v29 }
  0xda   : > { %5974 = vmatprep.mubr.bf16.mxu0 %v7776_v42  ;;  %5411 = vmatpush3.bf16.msra.mxu0 %v6633_v41 }
  0xdb   : > { %5412 = vmatprep.subr.bf16.mxu0 %v6634_v43 }
  0xdc   : > { %6053 = vmatpush3.bf16.msra.mxu1 %v6643_v7  ;;  %v1921_v7 = vld [vmem:[#allocation2 + $0xb0] sm:$0xff] }
  0xdd   : > { %6054 = vmatprep.subr.bf16.mxu1 %v6646_v34 }
  0xde   : > { %5413 = vmatpush3.bf16.msra.mxu0 %v6635_v39 }
  0xdf   : > { %6023 = vmatmul.mubr.bf16.gmra.mrb[72].mxu1 %v7776_v42  ;;  %5414 = vmatprep.subr.bf16.mxu0 %v6636_v37  ;;  %v1920_v37 = vld [vmem:[#allocation2 + $0xa8] sm:$0xff] }
  0xe0   : > { %6026 = vmatprep.mubr.bf16.mxu1 %v7783_v57  ;;  %6055 = vmatpush3.bf16.msra.mxu1 %v6646_v34 }
  0xe1   : > { %6056 = vmatprep.subr.bf16.mxu1 %v6647_v23  ;;  %5975 = vmatmul.mubr.bf16.gmra.mrb[72].mxu0 %v7783_v57 }
  0xe2   : > { %5978 = vmatprep.mubr.bf16.mxu0 %v7793_v31  ;;  %5415 = vmatpush3.bf16.msra.mxu0 %v6637_v22 }
  0xe3   : > { %5416 = vmatprep.subr.bf16.mxu0 %v6640_v40 }
  0xe4   : > { %6057 = vmatpush3.bf16.msra.mxu1 %v6647_v23 }
  0xe5   : > { %6058 = vmatprep.subr.bf16.mxu1 %v6650_v48 }
  0xe6   : > { %5417 = vmatpush3.bf16.msra.mxu0 %v6641_v11 }
  0xe7   : > { %6027 = vmatmul.mubr.bf16.gmra.mrb[76].mxu1 %v7793_v31  ;;  %5418 = vmatprep.subr.bf16.mxu0 %v6644_v55 }
  0xe8   : > { %6030 = vmatprep.mubr.bf16.mxu1 %v7803_v3  ;;  %6059 = vmatpush3.bf16.msra.mxu1 %v6650_v48 }
  0xe9   : > { %6060 = vmatprep.subr.bf16.mxu1 %v6651_v20  ;;  %5979 = vmatmul.mubr.bf16.gmra.mrb[76].mxu0 %v7803_v3 }
  0xea   : > { %5982 = vmatprep.mubr.bf16.mxu0 %v7822_v44  ;;  %5419 = vmatpush3.bf16.msra.mxu0 %v6645_v14 }
  0xeb   : > { %5420 = vmatprep.subr.bf16.mxu0 %v6648_v24 }
  0xec   : > { %6061 = vmatpush3.bf16.msra.mxu1 %v6651_v20  ;;  %v1924_v20 = vld [vmem:[#allocation2 + $0xc8] sm:$0xff] }
  0xee   : > { %5421 = vmatpush3.bf16.msra.mxu0 %v6649_v28 }
  0xef   : > { %6031 = vmatmul.mubr.bf16.gmra.mrb[80].mxu1 %v7822_v44 }
  0xf0   : > { %6034 = vmatprep.mubr.bf16.mxu1 %v7826_v19 }
  0xf1   : > { %5983 = vmatmul.mubr.bf16.gmra.mrb[80].mxu0 %v7826_v19 }
  0xf2   : > { %5986 = vmatprep.mubr.bf16.mxu0 %v7847_v12 }
  0xf7   : > { %6035 = vmatmul.mubr.bf16.gmra.mrb[84].mxu1 %v7847_v12 }
  0xf8   : > { %6038 = vmatprep.mubr.bf16.mxu1 %v7856_v53 }
  0xf9   : > { %5987 = vmatmul.mubr.bf16.gmra.mrb[84].mxu0 %v7856_v53 }
  0xfa   : > { %5990 = vmatprep.mubr.bf16.mxu0 %v7876_v30 }
  0xff   : > { %6039 = vmatmul.mubr.bf16.gmra.mrb[88].mxu1 %v7876_v30 }
 0x100   : > { %6042 = vmatprep.mubr.bf16.mxu1 %v7880_v38 }
 0x101   : > { %5991 = vmatmul.mubr.bf16.gmra.mrb[88].mxu0 %v7880_v38 }
 0x102   : > { %5994 = vmatprep.mubr.bf16.mxu0 %v7898_v54 }
 0x107   : > { %6043 = vmatmul.mubr.bf16.gmra.mrb[92].mxu1 %v7898_v54 }
 0x108   : > { %6062 = vmatprep.mubr.bf16.mxu1 %v7735_v0 }
 0x109   : > { %5995 = vmatmul.mubr.bf16.gmra.mrb[92].mxu0 %v7902_v52 }
 0x10a   : > { %2178 = vmatprep.mubr.bf16.mxu0 %v1906_v6 }
 0x10f   : > { %6063 = vmatmul.mubr.bf16.vlgmr.msra.gmra.mrb[64].mxu1 %v7747_v49  ;;  %v1911_v49 = vld [vmem:[#allocation2 + $0x60] sm:$0xff] }
 0x110   : > { %6066 = vmatprep.mubr.bf16.mxu1 %v7758_v29  ;;  %v1915_v29 = vld [vmem:[#allocation2 + $0x80] sm:$0xff] }
 0x111   : > { %2179 = vmatmul.mubr.bf16.vlgmr.msra.gmra.mrb[96].mxu0 %v1905_v4 }
 0x112   : > { %2186 = vmatprep.mubr.bf16.mxu0 %v1909_v5  ;;  %v1923_v5 = vld [vmem:[#allocation2 + $0xc0] sm:$0xff] }
 0x117   : > { %6067 = vmatmul.mubr.bf16.gmra.mrb[68].mxu1 %v7776_v42 }
 0x118   : > { %6070 = vmatprep.mubr.bf16.mxu1 %v7783_v57 }
 0x119   : > { %2187 = vmatmul.mubr.bf16.gmra.mrb[100].mxu0 %v1908_v45 }
 0x11a   : > { %2194 = vmatprep.mubr.bf16.mxu0 %v1912_v58 }
 0x11f   : > { %6071 = vmatmul.mubr.bf16.gmra.mrb[72].mxu1 %v7793_v31 }
 0x120   : > { %6074 = vmatprep.mubr.bf16.mxu1 %v7803_v3  ;;  %v5150_v57 = vpop.f32.mrb[0].mxu0  ;;  %v1914_v3 = vld [vmem:[#allocation2 + $0x78] sm:$0xff] }
 0x121   : > { %2195 = vmatmul.mubr.bf16.gmra.mrb[104].mxu0 %v1911_v49  ;;  %v5151_v31 = vpop.f32.mrb[1].mxu0  ;;  %v1927_v49 = vld [vmem:[#allocation2 + $0xe0] sm:$0xff] }
 0x122   : > { %v5286_v0 = vpop.f32.mrb[0].mxu1  ;;  %2202 = vmatprep.mubr.bf16.mxu0 %v1915_v29  ;;  %v5153_v2 = vpop.f32.mrb[2].mxu0  ;;  %v8066_v18 = vadd.f32 %v5151_v31, %v5150_v57 }
 0x123   : > { %v5287_v8 = vpop.f32.mrb[1].mxu1  ;;  %v5154_v56 = vpop.f32.mrb[3].mxu0 }
 0x124   : > { %v8060_v26 = vadd.f32 %v5287_v8, %v5286_v0  ;;  %v5289_v27 = vpop.f32.mrb[2].mxu1  ;;  %v8070_v63 = vadd.f32 %v5154_v56, %v5153_v2 }
 0x125   : > { %v5290_v21 = vpop.f32.mrb[3].mxu1 }
 0x126   : > { %v8062_v42 = vadd.f32 %v5290_v21, %v5289_v27 }
 0x127   : > { %6075 = vmatmul.mubr.bf16.gmra.mrb[76].mxu1 %v7822_v44 }
 0x128   : > { %6078 = vmatprep.mubr.bf16.mxu1 %v7826_v19  ;;  %v5156_v19 = vpop.f32.mrb[4].mxu0 }
 0x129   : > { %2203 = vmatmul.mubr.bf16.gmra.mrb[108].mxu0 %v1914_v3  ;;  %v5157_v62 = vpop.f32.mrb[5].mxu0  ;;  %v1926_v3 = vld [vmem:[#allocation2 + $0xd8] sm:$0xff] }
 0x12a   : > { %v5292_v25 = vpop.f32.mrb[4].mxu1  ;;  %2210 = vmatprep.mubr.bf16.mxu0 %v1918_v13  ;;  %v5159_v59 = vpop.f32.mrb[6].mxu0  ;;  %v8076_v46 = vadd.f32 %v5157_v62, %v5156_v19 }
 0x12b   : > { %v5293_v1 = vpop.f32.mrb[5].mxu1  ;;  %v5160_v35 = vpop.f32.mrb[7].mxu0 }
 0x12c   : > { %v8068_v47 = vadd.f32 %v5293_v1, %v5292_v25  ;;  %v5295_v50 = vpop.f32.mrb[6].mxu1  ;;  %v8080_v41 = vadd.f32 %v5160_v35, %v5159_v59  ;;  %v1930_v1 = vld [vmem:[#allocation2 + $0xf8] sm:$0xff] }
 0x12d   : > { %v5296_v33 = vpop.f32.mrb[7].mxu1 }
 0x12e   : > { %v8072_v44 = vadd.f32 %v5296_v33, %v5295_v50 }
 0x12f   : > { %6079 = vmatmul.mubr.bf16.gmra.mrb[80].mxu1 %v7847_v12 }
 0x130   : > { %6082 = vmatprep.mubr.bf16.mxu1 %v7856_v53  ;;  %v5162_v53 = vpop.f32.mrb[8].mxu0 }
 0x131   : > { %2211 = vmatmul.mubr.bf16.gmra.mrb[112].mxu0 %v1917_v9  ;;  %v5163_v23 = vpop.f32.mrb[9].mxu0 }
 0x132   : > { %v5298_v17 = vpop.f32.mrb[8].mxu1  ;;  %2218 = vmatprep.mubr.bf16.mxu0 %v1921_v7  ;;  %v5165_v39 = vpop.f32.mrb[10].mxu0  ;;  %v8086_v22 = vadd.f32 %v5163_v23, %v5162_v53  ;;  %v1933_v23 = vld [vmem:[#allocation2 + $0x110] sm:$0xff] }
 0x133   : > { %v5299_v60 = vpop.f32.mrb[9].mxu1  ;;  %v5166_v40 = vpop.f32.mrb[11].mxu0 }
 0x134   : > { %v8078_v15 = vadd.f32 %v5299_v60, %v5298_v17  ;;  %v5301_v34 = vpop.f32.mrb[10].mxu1  ;;  %v8090_v24 = vadd.f32 %v5166_v40, %v5165_v39  ;;  %v1929_v60 = vld [vmem:[#allocation2 + $0xf0] sm:$0xff] }
 0x135   : > { %v5302_v43 = vpop.f32.mrb[11].mxu1 }
 0x136   : > { %v8082_v12 = vadd.f32 %v5302_v43, %v5301_v34 }
 0x137   : > { %6083 = vmatmul.mubr.bf16.gmra.mrb[84].mxu1 %v7876_v30 }
 0x138   : > { %6086 = vmatprep.mubr.bf16.mxu1 %v7880_v38  ;;  %v5168_v38 = vpop.f32.mrb[12].mxu0 }
 0x139   : > { %2219 = vmatmul.mubr.bf16.gmra.mrb[116].mxu0 %v1920_v37  ;;  %v5169_v6 = vpop.f32.mrb[13].mxu0 }
 0x13a   : > { %v5304_v48 = vpop.f32.mrb[12].mxu1  ;;  %2226 = vmatprep.mubr.bf16.mxu0 %v1924_v20  ;;  %v5171_v4 = vpop.f32.mrb[14].mxu0  ;;  %v8096_v58 = vadd.f32 %v5169_v6, %v5168_v38  ;;  %v1932_v6 = vld [vmem:[#allocation2 + $0x108] sm:$0xff] }
 0x13b   : > { %v5305_v11 = vpop.f32.mrb[13].mxu1  ;;  %v5172_v0 = vpop.f32.mrb[15].mxu0 }
 0x13c   : > { %v8088_v55 = vadd.f32 %v5305_v11, %v5304_v48  ;;  %v5307_v14 = vpop.f32.mrb[14].mxu1  ;;  %v8100_v21 = vadd.f32 %v5172_v0, %v5171_v4  ;;  %v1936_v0 = vld [vmem:[#allocation2 + $0x128] sm:$0xff] }
 0x13d   : > { %v5308_v28 = vpop.f32.mrb[15].mxu1 }
 0x13e   : > { %v8092_v30 = vadd.f32 %v5308_v28, %v5307_v14 }
 0x13f   : > { %6087 = vmatmul.mubr.bf16.gmra.mrb[88].mxu1 %v7898_v54 }
 0x140   : > { %6090 = vmatprep.mubr.bf16.mxu1 %v7902_v52 }
 0x141   : > { %2227 = vmatmul.mubr.bf16.gmra.mrb[120].mxu0 %v1923_v5  ;;  %v5174_v52 = vpop.f32.mrb[16].mxu0 }
 0x142   : > { %v5310_v45 = vpop.f32.mrb[16].mxu1  ;;  %2234 = vmatprep.mubr.bf16.mxu0 %v1927_v49  ;;  %v5175_v31 = vpop.f32.mrb[17].mxu0 }
 0x143   : > { %v5311_v8 = vpop.f32.mrb[17].mxu1  ;;  %v5177_v2 = vpop.f32.mrb[18].mxu0  ;;  %v8105_v56 = vadd.f32 %v5175_v31, %v5174_v52 }
 0x144   : > { %v8098_v29 = vadd.f32 %v5311_v8, %v5310_v45  ;;  %v5313_v27 = vpop.f32.mrb[18].mxu1  ;;  %v5178_v13 = vpop.f32.mrb[19].mxu0 }
 0x145   : > { %v5314_v57 = vpop.f32.mrb[19].mxu1  ;;  %v8109_v62 = vadd.f32 %v5178_v13, %v5177_v2  ;;  %v6652_v2 = vld [vmem:[#allocation3 + $0x100] sm:$0xff]  }
 0x146   : > { %v8102_v54 = vadd.f32 %v5314_v57, %v5313_v27  ;;  %5542 = vmatprep.subr.bf16.mxu0 %v6652_v2  ;;  %v1942_v2 = vld [vmem:[#allocation2 + $0x158] sm:$0xff] }
 0x147   : > { %6091 = vmatmul.mubr.bf16.gmra.mrb[92].mxu1 %v7951_v36 }
 0x149   : > { %2235 = vmatmul.mubr.bf16.gmra.mrb[124].mxu0 %v1926_v3  ;;  %v5180_v17 = vpop.f32.mrb[20].mxu0 }
 0x14a   : > { %v5316_v25 = vpop.f32.mrb[20].mxu1  ;;  %2242 = vmatprep.mubr.bf16.mxu0 %v1930_v1  ;;  %v5181_v35 = vpop.f32.mrb[21].mxu0 }
 0x14b   : > { %v5317_v50 = vpop.f32.mrb[21].mxu1  ;;  %v5183_v7 = vpop.f32.mrb[22].mxu0  ;;  %v8113_v43 = vadd.f32 %v5181_v35, %v5180_v17  ;;  %v1939_v35 = vld [vmem:[#allocation2 + $0x140] sm:$0xff] }
 0x14c   : > { %v8107_v33 = vadd.f32 %v5317_v50, %v5316_v25  ;;  %v5319_v19 = vpop.f32.mrb[22].mxu1  ;;  %v5184_v53 = vpop.f32.mrb[23].mxu0  ;;  %v6653_v25 = vld [vmem:[#allocation3 + $0xc0] sm:$0xff]   ;;  %v1935_v50 = vld [vmem:[#allocation2 + $0x120] sm:$0xff] }
 0x14d   : > { %v5320_v59 = vpop.f32.mrb[23].mxu1  ;;  %v8117_v40 = vadd.f32 %v5184_v53, %v5183_v7  ;;  %5543 = vmatpush3.bf16.msra.mxu0 %v6653_v25  ;;  %v6659_v25 = vld [vmem:[#allocation3 + $0x118] sm:$0xff]  }
 0x14e   : > { %v8111_v9 = vadd.f32 %v5320_v59, %v5319_v19 }
 0x151   : > { %2243 = vmatmul.mubr.bf16.gmra.mrb[128].mxu0 %v1929_v60  ;;  %v6654_v60 = vld [vmem:[#allocation3 + $0x108] sm:$0xff]  }
 0x152   : > { %v5322_v34 = vpop.f32.mrb[24].mxu1  ;;  %2250 = vmatprep.mubr.bf16.mxu0 %v1933_v23  ;;  %5544 = vmatprep.subr.bf16.mxu0 %v6654_v60 }
 0x153   : > { %v5323_v39 = vpop.f32.mrb[25].mxu1 }
 0x154   : > { %v8115_v37 = vadd.f32 %v5323_v39, %v5322_v34  ;;  %v5325_v48 = vpop.f32.mrb[26].mxu1  ;;  %v5186_v14 = vpop.f32.mrb[24].mxu0  ;;  %v6655_v39 = vld [vmem:[#allocation3 + $0xc8] sm:$0xff]  }
 0x155   : > { %v5326_v20 = vpop.f32.mrb[27].mxu1  ;;  %v5187_v28 = vpop.f32.mrb[25].mxu0  ;;  %5545 = vmatpush3.bf16.msra.mxu0 %v6655_v39  ;;  %v6663_v39 = vld [vmem:[#allocation3 + $0x150] sm:$0xff]  }
 0x156   : > { %v8119_v11 = vadd.f32 %v5326_v20, %v5325_v48  ;;  %v5189_v38 = vpop.f32.mrb[26].mxu0  ;;  %v8121_v5 = vadd.f32 %v5187_v28, %v5186_v14  ;;  %v6656_v14 = vld [vmem:[#allocation3 + $0x110] sm:$0xff]   ;;  %v6657_v28 = vld [vmem:[#allocation3 + $0x140] sm:$0xff]  }
 0x157   : > { %v5190_v45 = vpop.f32.mrb[27].mxu0  ;;  %5546 = vmatprep.subr.bf16.mxu0 %v6656_v14  ;;  %6094 = vmatprep.subr.bf16.mxu1 %v6657_v28  ;;  %v6664_v14 = vld [vmem:[#allocation3 + $0xe0] sm:$0xff]  }
 0x158   : > { %v8125_v57 = vadd.f32 %v5190_v45, %v5189_v38  ;;  %6095 = vmatpush3.bf16.msra.mxu1 %v6657_v28 }
 0x159   : > { %2251 = vmatmul.mubr.bf16.gmra.mrb[132].mxu0 %v1932_v6  ;;  %v6658_v6 = vld [vmem:[#allocation3 + $0xd0] sm:$0xff]  }
 0x15a   : > { %v5328_v4 = vpop.f32.mrb[28].mxu1  ;;  %2258 = vmatprep.mubr.bf16.mxu0 %v1936_v0  ;;  %5547 = vmatpush3.bf16.msra.mxu0 %v6658_v6 }
 0x15b   : > { %v5329_v49 = vpop.f32.mrb[29].mxu1  ;;  %5548 = vmatprep.subr.bf16.mxu0 %v6659_v25  ;;  %v6725_v25 = vld [vmem:[#allocation2 + $0x150] sm:$0xff] }
 0x15c   : > { %v8123_v8 = vadd.f32 %v5329_v49, %v5328_v4  ;;  %v5331_v27 = vpop.f32.mrb[30].mxu1  ;;  %v5192_v3 = vpop.f32.mrb[28].mxu0  ;;  %v1938_v49 = vld [vmem:[#allocation2 + $0x138] sm:$0xff] }
 0x15d   : > { %v5332_v52 = vpop.f32.mrb[31].mxu1  ;;  %v5193_v13 = vpop.f32.mrb[29].mxu0 }
 0x15e   : > { %v8127_v31 = vadd.f32 %v5332_v52, %v5331_v27  ;;  %v5195_v1 = vpop.f32.mrb[30].mxu0  ;;  %v8129_v59 = vadd.f32 %v5193_v13, %v5192_v3  ;;  %v6660_v13 = vld [vmem:[#allocation3 + $0x148] sm:$0xff]  }
 0x15f   : > { %v5196_v17 = vpop.f32.mrb[31].mxu0  ;;  %6096 = vmatprep.subr.bf16.mxu1 %v6660_v13 }
 0x160   : > { %v8133_v23 = vadd.f32 %v5196_v17, %v5195_v1  ;;  %v6661_v17 = vld [vmem:[#allocation3 + $0xd8] sm:$0xff]   ;;  %6097 = vmatpush3.bf16.msra.mxu1 %v6660_v13 }
 0x161   : > { %2259 = vmatmul.mubr.bf16.gmra.mrb[136].mxu0 %v1935_v50  ;;  %6098 = vmatprep.subr.bf16.mxu1 %v6663_v39 }
 0x162   : > { %v5334_v19 = vpop.f32.mrb[32].mxu1  ;;  %2266 = vmatprep.mubr.bf16.mxu0 %v1939_v35  ;;  %5549 = vmatpush3.bf16.msra.mxu0 %v6661_v17 }
 0x163   : > { %v5335_v7 = vpop.f32.mrb[33].mxu1 }
 0x164   : > { %v8131_v34 = vadd.f32 %v5335_v7, %v5334_v19  ;;  %v5337_v53 = vpop.f32.mrb[34].mxu1  ;;  %v5198_v38 = vpop.f32.mrb[32].mxu0  ;;  %6099 = vmatpush3.bf16.msra.mxu1 %v6663_v39 }
 0x165   : > { %v5338_v48 = vpop.f32.mrb[35].mxu1  ;;  %v5199_v4 = vpop.f32.mrb[33].mxu0 }
 0x166   : > { %v8135_v20 = vadd.f32 %v5338_v48, %v5337_v53  ;;  %v8137_v45 = vadd.f32 %v5199_v4, %v5198_v38  ;;  %v5201_v0 = vpop.f32.mrb[34].mxu0  ;;  %v6662_v53 = vld [vmem:[#allocation3 + $0x120] sm:$0xff]  }
 0x167   : > { %v5202_v52 = vpop.f32.mrb[35].mxu0  ;;  %5550 = vmatprep.subr.bf16.mxu0 %v6662_v53  ;;  %v6669_v53 = vld [vmem:[#allocation3 + $0x160] sm:$0xff]  }
 0x168   : > { %v8139_v1 = vadd.f32 %v5202_v52, %v5201_v0  ;;  %5551 = vmatpush3.bf16.msra.mxu0 %v6664_v14 }
 0x169   : > { %2267 = vmatmul.mubr.bf16.gmra.mrb[140].mxu0 %v1938_v49 }
 0x16a   : > { %v5340_v27 = vpop.f32.mrb[36].mxu1  ;;  %2274 = vmatprep.mubr.bf16.mxu0 %v1942_v2  ;;  %v6665_v2 = vld [vmem:[#allocation3 + $0x128] sm:$0xff]  }
 0x16b   : > { %v5341_v3 = vpop.f32.mrb[37].mxu1  ;;  %5552 = vmatprep.subr.bf16.mxu0 %v6665_v2 }
 0x16c   : > { %v8141_v50 = vadd.f32 %v5341_v3, %v5340_v27  ;;  %v5343_v19 = vpop.f32.mrb[38].mxu1  ;;  %v5204_v60 = vpop.f32.mrb[36].mxu0  ;;  %v6666_v3 = vld [vmem:[#allocation3 + $0x158] sm:$0xff]  }
 0x16d   : > { %v5344_v35 = vpop.f32.mrb[39].mxu1  ;;  %v5205_v48 = vpop.f32.mrb[37].mxu0  ;;  %6100 = vmatprep.subr.bf16.mxu1 %v6666_v3 }
 0x16e   : > { %v8143_v7 = vadd.f32 %v5344_v35, %v5343_v19  ;;  %v8145_v28 = vadd.f32 %v5205_v48, %v5204_v60  ;;  %v5207_v38 = vpop.f32.mrb[38].mxu0  ;;  %v6667_v19 = vld [vmem:[#allocation3 + $0xe8] sm:$0xff]   ;;  %6101 = vmatpush3.bf16.msra.mxu1 %v6666_v3  ;;  %v6668_v60 = vld [vmem:[#allocation3 + $0x130] sm:$0xff]   ;;  %v6671_v3 = vld [vmem:[#allocation3 + $0x138] sm:$0xff]  }
 0x16f   : > { %v5208_v4 = vpop.f32.mrb[39].mxu0  ;;  %5553 = vmatpush3.bf16.msra.mxu0 %v6667_v19  ;;  %v6670_v48 = vld [vmem:[#allocation3 + $0xf0] sm:$0xff]   ;;  %6102 = vmatprep.subr.bf16.mxu1 %v6669_v53 }
 0x170   : > { %v8147_v49 = vadd.f32 %v5208_v4, %v5207_v38  ;;  %5554 = vmatprep.subr.bf16.mxu0 %v6668_v60 }
 0x171   : > { %2275 = vmatmul.mubr.bf16.gmra.mrb[144].mxu0 %v6725_v25  ;;  %v6672_v25 = vld [vmem:[#allocation3 + $0x168] sm:$0xff]  }
 0x172   : > { %v5346_v6 = vpop.f32.mrb[40].mxu1  ;;  %6827 = vmatprep.mubr.msk.bf16.mxu0 %vm7110_vm6, %v7933_v10  ;;  %6103 = vmatpush3.bf16.msra.mxu1 %v6669_v53 }
 0x173   : > { %v5347_v0 = vpop.f32.mrb[41].mxu1  ;;  %5555 = vmatpush3.bf16.msra.mxu0 %v6670_v48  ;;  %6104 = vmatprep.subr.bf16.mxu1 %v6672_v25  ;;  %v6674_v48 = vld [vmem:[#allocation3 + $0x170] sm:$0xff]  }
 0x174   : > { %v8149_v27 = vadd.f32 %v5347_v0, %v5346_v6  ;;  %v5349_v52 = vpop.f32.mrb[42].mxu1  ;;  %v5210_v35 = vpop.f32.mrb[40].mxu0  ;;  %5556 = vmatprep.subr.bf16.mxu0 %v6671_v3  ;;  %v6727_v3 = vld [vmem:[#allocation2 + $0x180] sm:$0xff] }
 0x175   : > { %v5350_v13 = vpop.f32.mrb[43].mxu1  ;;  %v5211_v39 = vpop.f32.mrb[41].mxu0 }
 0x176   : > { %v8154_v17 = vadd.f32 %v5350_v13, %v5349_v52  ;;  %v8156_v14 = vadd.f32 %v5211_v39, %v5210_v35  ;;  %v5213_v38 = vpop.f32.mrb[42].mxu0  ;;  %v6726_v13 = vld [vmem:[#allocation2 + $0x168] sm:$0xff]  ;;  %6105 = vmatpush3.bf16.msra.mxu1 %v6672_v25 }
 0x177   : > { %v5214_v4 = vpop.f32.mrb[43].mxu0  ;;  %v6673_v35 = vld [vmem:[#allocation3 + $0xf8] sm:$0xff]   ;;  %6106 = vmatprep.subr.bf16.mxu1 %v6674_v48 }
 0x178   : > { %9406 = vst [vmem:[#allocation37_spill] sm:$0xff] %v8154_v17  ;;  %v8158_v10 = vadd.f32 %v5214_v4, %v5213_v38  ;;  %5557 = vmatpush3.bf16.msra.mxu0 %v6673_v35 }
 0x179   : > { %2283 = vmatmul.mubr.bf16.gmra.mrb[148].mxu0 %v6726_v13 }
 0x17a   : > { %v5352_v6 = vpop.f32.mrb[44].mxu1  ;;  %6830 = vmatprep.mubr.msk.bf16.mxu0 %vm7110_vm6, %v7945_v16  ;;  %6107 = vmatpush3.bf16.msra.mxu1 %v6674_v48 }
 0x17b   : > { %v5353_v0 = vpop.f32.mrb[45].mxu1 }
 0x17c   : > { %v8160_v52 = vadd.f32 %v5353_v0, %v5352_v6  ;;  %v5355_v2 = vpop.f32.mrb[46].mxu1  ;;  %v5216_v39 = vpop.f32.mrb[44].mxu0 }
 0x17d   : > { %v5356_v19 = vpop.f32.mrb[47].mxu1  ;;  %v5217_v38 = vpop.f32.mrb[45].mxu0 }
 0x17e   : > { %v8165_v60 = vadd.f32 %v5356_v19, %v5355_v2  ;;  %v8167_v53 = vadd.f32 %v5217_v38, %v5216_v39  ;;  %v5219_v6 = vpop.f32.mrb[46].mxu0  ;;  %v6675_v2 = vld [vmem:[#allocation3 + $0x178] sm:$0xff]  }
 0x17f   : > { %v5220_v0 = vpop.f32.mrb[47].mxu0  ;;  %6108 = vmatprep.subr.bf16.mxu1 %v6675_v2 }
 0x180   : > { %9407 = vst [vmem:[#allocation38_spill] sm:$0xff] %v8165_v60  ;;  %v8169_v32 = vadd.f32 %v5220_v0, %v5219_v6  ;;  %6109 = vmatpush3.bf16.msra.mxu1 %v6675_v2 }
 0x181   : > { %2291 = vmatmul.mubr.bf16.gmra.mrb[152].mxu0 %v6727_v3 }
 0x182   : > { %v5358_v4 = vpop.f32.mrb[48].mxu1  ;;  %2298 = vmatprep.mubr.bf16.mxu0 %v7951_v36 }
 0x183   : > { %v5359_v13 = vpop.f32.mrb[49].mxu1 }
 0x184   : > { %v8171_v51 = vadd.f32 %v5359_v13, %v5358_v4  ;;  %v5361_v16 = vpop.f32.mrb[50].mxu1  ;;  %v5222_v35 = vpop.f32.mrb[48].mxu0 }
 0x185   : > { %v5362_v19 = vpop.f32.mrb[51].mxu1  ;;  %v5223_v39 = vpop.f32.mrb[49].mxu0 }
 0x186   : > { %9408 = vst [vmem:[#allocation42_spill] sm:$0xff] %v8171_v51  ;;  %v8174_v25 = vadd.f32 %v5362_v19, %v5361_v16  ;;  %v8176_v38 = vadd.f32 %v5223_v39, %v5222_v35  ;;  %v5225_v6 = vpop.f32.mrb[50].mxu0 }
 0x187   : > { %v5226_v4 = vpop.f32.mrb[51].mxu0 }
 0x188   : > { %9409 = vst [vmem:[#allocation43_spill] sm:$0xff] %v8174_v25  ;;  %9410 = vst [vmem:[#allocation44_spill] sm:$0xff] %v8176_v38  ;;  %v8178_v61 = vadd.f32 %v5226_v4, %v5225_v6 }
 0x189   : > { %2299 = vmatmul.mubr.bf16.gmra.mrb[156].mxu0 %v7951_v36 }
 0x18a   : > { %v5364_v0 = vpop.f32.mrb[52].mxu1  ;;  %9411 = vst [vmem:[#allocation45_spill] sm:$0xff] %v8178_v61 }
 0x18b   : > { %v5365_v13 = vpop.f32.mrb[53].mxu1 }
 0x18c   : > { %v8180_v48 = vadd.f32 %v5365_v13, %v5364_v0  ;;  %v5367_v3 = vpop.f32.mrb[54].mxu1  ;;  %v5228_v19 = vpop.f32.mrb[52].mxu0 }
 0x18d   : > { %v5368_v51 = vpop.f32.mrb[55].mxu1  ;;  %v5229_v25 = vpop.f32.mrb[53].mxu0 }
 0x18e   : > { %9412 = vst [vmem:[#allocation46_spill] sm:$0xff] %v8180_v48  ;;  %v8183_v16 = vadd.f32 %v5368_v51, %v5367_v3  ;;  %v8185_v2 = vadd.f32 %v5229_v25, %v5228_v19  ;;  %v5231_v35 = vpop.f32.mrb[54].mxu0 }
 0x18f   : > { %v5232_v38 = vpop.f32.mrb[55].mxu0 }
 0x190   : > { %9413 = vst [vmem:[#allocation47_spill] sm:$0xff] %v8183_v16  ;;  %9414 = vst [vmem:[#allocation48_spill] sm:$0xff] %v8185_v2  ;;  %v8187_v60 = vadd.f32 %v5232_v38, %v5231_v35 }
 0x192   : > { %v5370_v39 = vpop.f32.mrb[56].mxu1  ;;  %9415 = vst [vmem:[#allocation49_spill] sm:$0xff] %v8187_v60 }
 0x193   : > { %v5371_v17 = vpop.f32.mrb[57].mxu1 }
 0x194   : > { %v8189_v6 = vadd.f32 %v5371_v17, %v5370_v39  ;;  %v5373_v0 = vpop.f32.mrb[58].mxu1  ;;  %v5234_v36 = vpop.f32.mrb[56].mxu0 }
 0x195   : > { %v5374_v4 = vpop.f32.mrb[59].mxu1  ;;  %v5235_v61 = vpop.f32.mrb[57].mxu0 }
 0x196   : > { %9416 = vst [vmem:[#allocation50_spill] sm:$0xff] %v8189_v6  ;;  %v8191_v13 = vadd.f32 %v5374_v4, %v5373_v0  ;;  %v8193_v51 = vadd.f32 %v5235_v61, %v5234_v36  ;;  %v5237_v3 = vpop.f32.mrb[58].mxu0 }
 0x197   : > { %v5238_v25 = vpop.f32.mrb[59].mxu0 }
 0x198   : > { %9417 = vst [vmem:[#allocation51_spill] sm:$0xff] %v8191_v13  ;;  %9418 = vst [vmem:[#allocation52_spill] sm:$0xff] %v8193_v51  ;;  %v8195_v48 = vadd.f32 %v5238_v25, %v5237_v3 }
 0x19a   : > { %v5376_v16 = vpop.f32.mrb[60].mxu1 }
 0x19b   : > { %v5377_v19 = vpop.f32.mrb[61].mxu1 }
 0x19c   : > { %v8197_v2 = vadd.f32 %v5377_v19, %v5376_v16  ;;  %v5379_v38 = vpop.f32.mrb[62].mxu1  ;;  %v5240_v39 = vpop.f32.mrb[60].mxu0 }
 0x19d   : > { %v5380_v35 = vpop.f32.mrb[63].mxu1  ;;  %v5241_v6 = vpop.f32.mrb[61].mxu0 }
 0x19e   : > { %v8199_v17 = vadd.f32 %v5380_v35, %v5379_v38  ;;  %v8201_v0 = vadd.f32 %v5241_v6, %v5240_v39  ;;  %v5243_v4 = vpop.f32.mrb[62].mxu0 }
 0x19f   : > { %v5244_v13 = vpop.f32.mrb[63].mxu0 }
 0x1a0   : > { %v8203_v61 = vadd.f32 %v5244_v13, %v5243_v4 }
 0x1a4   : > { %v5968_v36 = vpop.f32.mrb[64].mxu0 }
 0x1a5   : > { %v1320_v51 = vadd.f32 %v5968_v36, %v8076_v46  ;;  %v1311_v60 = vpop.f32.mrb[65].mxu0 }
 0x1a6   : > { %v1312_v3 = vadd.f32 %v8066_v18, %v1311_v60  ;;  %v5969_v16 = vpop.f32.mrb[66].mxu0 }
 0x1a7   : > { %v8208_v25 = vadd.f32 %v8068_v47, %v1320_v51  ;;  %v1323_v19 = vadd.f32 %v5969_v16, %v8080_v41  ;;  %v1314_v38 = vpop.f32.mrb[67].mxu0 }
 0x1a8   : > { %v8212_v6 = vadd.f32 %v8060_v26, %v1312_v3  ;;  %v1315_v35 = vadd.f32 %v8070_v63, %v1314_v38 }
 0x1a9   : > { %v8216_v13 = vadd.f32 %v8072_v44, %v1323_v19 }
 0x1aa   : > { %v8219_v46 = vadd.f32 %v8062_v42, %v1315_v35 }
 0x1ac   : > { %v5972_v39 = vpop.f32.mrb[68].mxu0 }
 0x1ad   : > { %v1336_v18 = vadd.f32 %v5972_v39, %v8096_v58  ;;  %v1327_v60 = vpop.f32.mrb[69].mxu0 }
 0x1ae   : > { %v1328_v47 = vadd.f32 %v8086_v22, %v1327_v60  ;;  %v5973_v51 = vpop.f32.mrb[70].mxu0 }
 0x1af   : > { %v8224_v41 = vadd.f32 %v8088_v55, %v1336_v18  ;;  %v1339_v26 = vadd.f32 %v5973_v51, %v8100_v21  ;;  %v1330_v4 = vpop.f32.mrb[71].mxu0 }
 0x1b0   : > { %v8228_v63 = vadd.f32 %v8078_v15, %v1328_v47  ;;  %v1331_v44 = vadd.f32 %v8090_v24, %v1330_v4 }
 0x1b1   : > { %v8232_v42 = vadd.f32 %v8092_v30, %v1339_v26 }
 0x1b2   : > { %v8235_v58 = vadd.f32 %v8082_v12, %v1331_v44 }
 0x1b4   : > { %v5976_v36 = vpop.f32.mrb[72].mxu0 }
 0x1b5   : > { %v1352_v22 = vadd.f32 %v5976_v36, %v8113_v43  ;;  %v1343_v3 = vpop.f32.mrb[73].mxu0 }
 0x1b6   : > { %v1344_v55 = vadd.f32 %v8105_v56, %v1343_v3  ;;  %v5977_v16 = vpop.f32.mrb[74].mxu0 }
 0x1b7   : > { %v8240_v21 = vadd.f32 %v8107_v33, %v1352_v22  ;;  %v1355_v15 = vadd.f32 %v5977_v16, %v8117_v40  ;;  %v1346_v19 = vpop.f32.mrb[75].mxu0 }
 0x1b8   : > { %v8244_v24 = vadd.f32 %v8098_v29, %v1344_v55  ;;  %v1347_v30 = vadd.f32 %v8109_v62, %v1346_v19  ;;  %v9420_v55 = vld [vmem:[#allocation37_spill] sm:$0xff] }
 0x1b9   : > { %v8248_v12 = vadd.f32 %v8111_v9, %v1355_v15 }
 0x1ba   : > { %v8251_v43 = vadd.f32 %v8102_v54, %v1347_v30 }
 0x1bc   : > { %v5980_v38 = vpop.f32.mrb[76].mxu0 }
 0x1bd   : > { %v1368_v56 = vadd.f32 %v5980_v38, %v8129_v59  ;;  %v1359_v35 = vpop.f32.mrb[77].mxu0 }
 0x1be   : > { %v1360_v33 = vadd.f32 %v8121_v5, %v1359_v35  ;;  %v5981_v39 = vpop.f32.mrb[78].mxu0  ;;  %v9424_v35 = vld [vmem:[#allocation49_spill] sm:$0xff] }
 0x1bf   : > { %v8256_v40 = vadd.f32 %v8123_v8, %v1368_v56  ;;  %v1371_v29 = vadd.f32 %v5981_v39, %v8133_v23  ;;  %v1362_v18 = vpop.f32.mrb[79].mxu0  ;;  %v9423_v56 = vld [vmem:[#allocation46_spill] sm:$0xff] }
 0x1c0   : > { %v8260_v62 = vadd.f32 %v8115_v37, %v1360_v33  ;;  %v1363_v9 = vadd.f32 %v8125_v57, %v1362_v18  ;;  %v9425_v39 = vld [vmem:[#allocation42_spill] sm:$0xff]  ;;  %v9426_v18 = vld [vmem:[#allocation45_spill] sm:$0xff] }
 0x1c1   : > { %v8264_v54 = vadd.f32 %v8127_v31, %v1371_v29 }
 0x1c2   : > { %v8267_v59 = vadd.f32 %v8119_v11, %v1363_v9 }
 0x1c4   : > { %v5984_v60 = vpop.f32.mrb[80].mxu0 }
 0x1c5   : > { %v1384_v5 = vadd.f32 %v5984_v60, %v8145_v28  ;;  %v1375_v47 = vpop.f32.mrb[81].mxu0  ;;  %v9427_v60 = vld [vmem:[#allocation47_spill] sm:$0xff] }
 0x1c6   : > { %v1376_v8 = vadd.f32 %v8137_v45, %v1375_v47  ;;  %v5985_v51 = vpop.f32.mrb[82].mxu0  ;;  %v9429_v47 = vld [vmem:[#allocation43_spill] sm:$0xff] }
 0x1c7   : > { %v8272_v23 = vadd.f32 %v8141_v50, %v1384_v5  ;;  %v1387_v37 = vadd.f32 %v5985_v51, %v8147_v49  ;;  %v1378_v26 = vpop.f32.mrb[83].mxu0 }
 0x1c8   : > { %v8276_v57 = vadd.f32 %v8131_v34, %v1376_v8  ;;  %v1379_v31 = vadd.f32 %v8139_v1, %v1378_v26 }
 0x1c9   : > { %v8280_v11 = vadd.f32 %v8143_v7, %v1387_v37  ;;  %v6680_v37 = vld [vmem:[#allocation3 + $0x40] sm:$0xff]  }
 0x1ca   : > { %v8283_v28 = vadd.f32 %v8135_v20, %v1379_v31  ;;  %v9419_v20 = vld [vmem:[#allocation38_spill] sm:$0xff]  ;;  %5678 = vmatprep.subr.bf16.mxu0 %v6680_v37 }
 0x1cc   : > { %v5988_v4 = vpop.f32.mrb[84].mxu0 }
 0x1cd   : > { %v1400_v45 = vadd.f32 %v5988_v4, %v8167_v53  ;;  %v1391_v44 = vpop.f32.mrb[85].mxu0  ;;  %v9430_v4 = vld [vmem:[#allocation52_spill] sm:$0xff] }
 0x1ce   : > { %v1392_v50 = vadd.f32 %v8156_v14, %v1391_v44  ;;  %v5989_v36 = vpop.f32.mrb[86].mxu0  ;;  %v9421_v14 = vld [vmem:[#allocation48_spill] sm:$0xff] }
 0x1cf   : > { %v8288_v49 = vadd.f32 %v8160_v52, %v1400_v45  ;;  %v1403_v34 = vadd.f32 %v5989_v36, %v8169_v32  ;;  %v1394_v22 = vpop.f32.mrb[87].mxu0  ;;  %v9422_v52 = vld [vmem:[#allocation44_spill] sm:$0xff]  ;;  %v8303_v32 = vld [vmem:[#allocation3 + $0x80] sm:$0xff]  }
 0x1d0   : > { %v8292_v1 = vadd.f32 %v8149_v27, %v1392_v50  ;;  %v1395_v7 = vadd.f32 %v8158_v10, %v1394_v22  ;;  %6142 = vmatprep.subr.bf16.mxu1 %v8303_v32 }
 0x1d1   : > { %v8296_v3 = vadd.f32 %v9419_v20, %v1403_v34  ;;  %v9432_v20 = vld [vmem:[#allocation50_spill] sm:$0xff] }
 0x1d2   : > { %v8299_v53 = vadd.f32 %v9420_v55, %v1395_v7 }
 0x1d4   : > { %v5992_v16 = vpop.f32.mrb[88].mxu0 }
 0x1d5   : > { %v1416_v15 = vadd.f32 %v5992_v16, %v9421_v14  ;;  %v1407_v19 = vpop.f32.mrb[89].mxu0 }
 0x1d6   : > { %v1408_v30 = vadd.f32 %v9422_v52, %v1407_v19  ;;  %v5993_v38 = vpop.f32.mrb[90].mxu0  ;;  %v9435_v19 = vld [vmem:[#allocation51_spill] sm:$0xff] }
 0x1d7   : > { %v8306_v27 = vadd.f32 %v9423_v56, %v1416_v15  ;;  %v1419_v10 = vadd.f32 %v5993_v38, %v9424_v35  ;;  %v1410_v33 = vpop.f32.mrb[91].mxu0 }
 0x1d8   : > { %v8310_v29 = vadd.f32 %v9425_v39, %v1408_v30  ;;  %v1411_v9 = vadd.f32 %v9426_v18, %v1410_v33 }
 0x1d9   : > { %v8315_v5 = vadd.f32 %v9427_v60, %v1419_v10 }
 0x1da   : > { %v8318_v8 = vadd.f32 %v9429_v47, %v1411_v9  ;;  %v8352_v47 = vld [vmem:[%s9244_s3] ss:$0 sm:$0xff] }
 0x1db   : > { %9428 = vst [vmem:[#allocation38_spill] sm:$0xff] %v8315_v5 }
 0x1dc   : > { %v5996_v51 = vpop.f32.mrb[92].mxu0 }
 0x1dd   : > { %v1432_v26 = vadd.f32 %v5996_v51, %v8201_v0  ;;  %v1423_v31 = vpop.f32.mrb[93].mxu0 }
 0x1de   : > { %v1424_v45 = vadd.f32 %v9430_v4, %v1423_v31  ;;  %v5997_v44 = vpop.f32.mrb[94].mxu0 }
 0x1df   : > { %v8323_v36 = vadd.f32 %v8197_v2, %v1432_v26  ;;  %v1435_v34 = vadd.f32 %v5997_v44, %v8203_v61  ;;  %v1426_v22 = vpop.f32.mrb[95].mxu0 }
 0x1e0   : > { %v8327_v55 = vadd.f32 %v9432_v20, %v1424_v45  ;;  %v1427_v16 = vadd.f32 %v8195_v48, %v1426_v22 }
 0x1e1   : > { %9431 = vst [vmem:[#allocation37_spill] sm:$0xff] %v8323_v36  ;;  %v8331_v0 = vadd.f32 %v8199_v17, %v1435_v34  ;;  %v8344_v17 = vld [vmem:[%s9243_s2] ss:$0 sm:$0xff]  ;;  %v6702_v36 = vld [vmem:[#allocation3 + $0x1c8] sm:$0xff]  }
 0x1e2   : > { %v6064_v50 = vpop.f32.mrb[64].mxu1  ;;  %9433 = vst [vmem:[#allocation48_spill] sm:$0xff] %v8327_v55  ;;  %v8334_v52 = vadd.f32 %v9435_v19, %v1427_v16 }
 0x1e3   : > { %v2341_v7 = vpop.f32.mrb[65].mxu1  ;;  %9434 = vst [vmem:[#allocation44_spill] sm:$0xff] %v8331_v0  ;;  %v6683_v0 = vld [vmem:[#allocation3 + $0x48] sm:$0xff]  }
 0x1e4   : > { %v6065_v14 = vpop.f32.mrb[66].mxu1  ;;  %9436 = vst [vmem:[#allocation46_spill] sm:$0xff] %v8334_v52  ;;  %v5422_v30 = vpop.f32.mrb[96].mxu0 }
 0x1e5   : > { %v2344_v15 = vpop.f32.mrb[67].mxu1  ;;  %v5423_v2 = vpop.f32.mrb[97].mxu0 }
 0x1e6   : > { %v5424_v38 = vadd.f32 %v5423_v2, %v5422_v30  ;;  %v5425_v56 = vpop.f32.mrb[98].mxu0 }
 0x1e7   : > { %v5426_v35 = vpop.f32.mrb[99].mxu0 }
 0x1e8   : > { %v6244_v33 = vadd.f32 %v5424_v38, %v8212_v6  ;;  %v5427_v39 = vadd.f32 %v5426_v35, %v5425_v56 }
 0x1ea   : > { %v8336_v61 = vpop.f32.mrb[68].mxu1  ;;  %v6245_v9 = vadd.f32 %v6244_v33, %v2341_v7  ;;  %v6252_v60 = vadd.f32 %v5427_v39, %v8219_v46 }
 0x1eb   : > { %v2357_v10 = vpop.f32.mrb[69].mxu1 }
 0x1ec   : > { %v8339_v48 = vpop.f32.mrb[70].mxu1  ;;  %v2507_v6 = vmul.f32 %v6245_v9, %v8344_v17  ;;  %v6253_v51 = vadd.f32 %v6252_v60, %v2344_v15  ;;  %v5428_v37 = vpop.f32.mrb[100].mxu0 }
 0x1ed   : > { %v8346_v18 = vpop.f32.mrb[71].mxu1  ;;  %v5429_v26 = vpop.f32.mrb[101].mxu0 }
 0x1ee   : > { %v2546_v31 = vadd.f32 %v8352_v47, %v2507_v6  ;;  %v2508_v4 = vmul.f32 %v6253_v51, %v8344_v17  ;;  %v5430_v45 = vadd.f32 %v5429_v26, %v5428_v37  ;;  %v5431_v44 = vpop.f32.mrb[102].mxu0 }
 0x1ef   : > { %v5432_v22 = vpop.f32.mrb[103].mxu0 }
 0x1f0   : > { %v2547_v7 = vadd.f32 %v8352_v47, %v2508_v4  ;;  %v6240_v20 = vadd.f32 %v5430_v45, %v8208_v25  ;;  %v5433_v16 = vadd.f32 %v5432_v22, %v5431_v44  ;;  %v2578_v30 = vmax.f32 %v2546_v31, 0.0 }
 0x1f2   : > { %v8357_v34 = vpop.f32.mrb[72].mxu1  ;;  %v2579_v2 = vmax.f32 %v2547_v7, 0.0  ;;  %v6241_v38 = vadd.f32 %v6240_v20, %v6064_v50  ;;  %v6248_v56 = vadd.f32 %v5433_v16, %v8216_v13  ;;  %v2770_v7 = vld [vmem:[#allocation2 + $0x18] sm:$0xff]  ;;  %v2866_v20 = vld [vmem:[#allocation2 + $0x28] sm:$0xff] }
 0x1f3   : > { %v8359_v46 = vpop.f32.mrb[73].mxu1 }
 0x1f4   : > { %v8363_v19 = vpop.f32.mrb[74].mxu1  ;;  %v2610_v35 = vpack.c.bf16 %v2579_v2, %v2578_v30  ;;  %v2509_v33 = vmul.f32 %v6241_v38, %v8344_v17  ;;  %v6249_v39 = vadd.f32 %v6248_v56, %v6065_v14  ;;  %v5434_v9 = vpop.f32.mrb[104].mxu0 }
 0x1f5   : > { %v8365_v15 = vpop.f32.mrb[75].mxu1  ;;  %v5435_v60 = vpop.f32.mrb[105].mxu0 }
 0x1f6   : > { %2626 = vst [vmem:[#allocation2 + $0x20] sm:$0xff] %v2610_v35  ;;  %v2643_v6 = vshrl.u32 %v2610_v35, 16  ;;  %v2646_v51 = vshll.u32 %v2610_v35, 16  ;;  %v2548_v25 = vadd.f32 %v8352_v47, %v2509_v33  ;;  %v2510_v37 = vmul.f32 %v6249_v39, %v8344_v17  ;;  %v5437_v26 = vpop.f32.mrb[106].mxu0  ;;  %3283 = vmatprep.mubr.bf16.mxu0 %v2610_v35  ;;  %v6682_v39 = vld [vmem:[#allocation3] sm:$0xff]  }
 0x1f7   : > { %v5436_v50 = vadd.f32 %v5435_v60, %v5434_v9  ;;  %v5438_v31 = vpop.f32.mrb[107].mxu0 }
 0x1f8   : > { %v2645_v45 = vrot.slane %v2643_v6, 7  ;;  %v2818_v44 = vrot.slane %v2646_v51, 1  ;;  %v2549_v14 = vadd.f32 %v8352_v47, %v2510_v37  ;;  %v5439_v30 = vadd.f32 %v5438_v31, %v5437_v26 }
 0x1f9   : > { %v6260_v16 = vadd.f32 %v5436_v50, %v8228_v63  ;;  %v2580_v35 = vmax.f32 %v2548_v25, 0.0 }
 0x1fa   : > { %v8371_v4 = vpop.f32.mrb[76].mxu1  ;;  %v2648_v38 = vor.u32 %v2646_v51, %v2645_v45  ;;  %v2819_v56 = vor.u32 %v2818_v44, %v2643_v6  ;;  %v2581_v33 = vmax.f32 %v2549_v14, 0.0  ;;  %v6268_v60 = vadd.f32 %v5439_v30, %v8235_v58  ;;  %v6684_v45 = vld [vmem:[#allocation3 + $0x8] sm:$0xff]  }
 0x1fb   : > { %v8373_v13 = vpop.f32.mrb[77].mxu1  ;;  %v6261_v9 = vadd.f32 %v6260_v16, %v2357_v10 }
 0x1fc   : > { %v8376_v22 = vpop.f32.mrb[78].mxu1  ;;  %v2771_v37 = vsel %vm7142_vm7, %v2648_v38, %v2770_v7  ;;  %v2867_v55 = vsel %vm7705_vm12, %v2819_v56, %v2866_v20  ;;  %v2611_v5 = vpack.c.bf16 %v2581_v33, %v2580_v35  ;;  %v5440_v63 = vpop.f32.mrb[108].mxu0  ;;  %v6269_v6 = vadd.f32 %v6268_v60, %v8346_v18  ;;  %v6685_v18 = vld [vmem:[#allocation3 + $0x50] sm:$0xff]  }
 0x1fd   : > { %v8379_v2 = vpop.f32.mrb[79].mxu1  ;;  %2772 = vst [vmem:[#allocation2 + $0x18] sm:$0xff] %v2771_v37  ;;  %2868 = vst [vmem:[#allocation2 + $0x28] sm:$0xff] %v2867_v55  ;;  %v2511_v51 = vmul.f32 %v6261_v9, %v8344_v17  ;;  %v5441_v25 = vpop.f32.mrb[109].mxu0  ;;  %3284 = vmatmul.mubr.bf16.vlgmr.msra.gmra.mrb[160].mxu0 %v2771_v37  ;;  %6110 = vmatprep.mubr.bf16.mxu1 %v2867_v55  ;;  %v2869_v35 = vld [vmem:[#allocation2 + $0x40] sm:$0xff] }
 0x1fe   : > { %2627 = vst [vmem:[#allocation2 + $0x38] sm:$0xff] %v2611_v5  ;;  %v2650_v58 = vshrl.u32 %v2611_v5, 16  ;;  %v2653_v10 = vshll.u32 %v2611_v5, 16  ;;  %v5442_v26 = vadd.f32 %v5441_v25, %v5440_v63  ;;  %v5443_v50 = vpop.f32.mrb[110].mxu0  ;;  %3291 = vmatprep.mubr.bf16.mxu0 %v2611_v5  ;;  %5679 = vmatpush3.bf16.msra.mxu0 %v6682_v39  ;;  %v2512_v14 = vmul.f32 %v6269_v6, %v8344_v17  ;;  %v6677_v6 = vld [vmem:[#allocation3 + $0x88] sm:$0xff]   ;;  %v2918_v52 = vld [vmem:[#allocation2 + $0x20] sm:$0xff] }
 0x1ff   : > { %v2550_v44 = vadd.f32 %v8352_v47, %v2511_v51  ;;  %v5444_v7 = vpop.f32.mrb[111].mxu0  ;;  %5680 = vmatprep.subr.bf16.mxu0 %v6683_v0  ;;  %v6687_v0 = vld [vmem:[#allocation3 + $0x10] sm:$0xff]  }
 0x200   : > { %v2652_v55 = vrot.slane %v2650_v58, 7  ;;  %v2820_v16 = vrot.slane %v2653_v10, 1  ;;  %v6256_v30 = vadd.f32 %v5442_v26, %v8224_v41  ;;  %v5445_v38 = vadd.f32 %v5444_v7, %v5443_v50  ;;  %v6728_v41 = vld [vmem:[#allocation2 + $0x30] sm:$0xff]  ;;  %v6688_v50 = vld [vmem:[#allocation3 + $0x58] sm:$0xff]  }
 0x201   : > { %v2551_v5 = vadd.f32 %v8352_v47, %v2512_v14  ;;  %v2582_v63 = vmax.f32 %v2550_v44, 0.0 }
 0x202   : > { %v8388_v31 = vpop.f32.mrb[80].mxu1  ;;  %v2655_v39 = vor.u32 %v2653_v10, %v2652_v55  ;;  %v2821_v9 = vor.u32 %v2820_v16, %v2650_v58  ;;  %v6257_v60 = vadd.f32 %v6256_v30, %v8336_v61  ;;  %v6264_v37 = vadd.f32 %v5445_v38, %v8232_v42  ;;  %5681 = vmatpush3.bf16.msra.mxu0 %v6684_v45 }
 0x203   : > { %v8392_v20 = vpop.f32.mrb[81].mxu1  ;;  %v2583_v51 = vmax.f32 %v2551_v5, 0.0  ;;  %5682 = vmatprep.subr.bf16.mxu0 %v6685_v18  ;;  %v6678_v5 = vld [vmem:[#allocation3 + $0x90] sm:$0xff]  }
 0x204   : > { %v8395_v56 = vpop.f32.mrb[82].mxu1  ;;  %v2774_v25 = vsel %vm7142_vm7, %v2655_v39, %v6728_v41  ;;  %v2870_v26 = vsel %vm7705_vm12, %v2821_v9, %v2869_v35  ;;  %v2513_v10 = vmul.f32 %v6257_v60, %v8344_v17  ;;  %v6265_v58 = vadd.f32 %v6264_v37, %v8339_v48  ;;  %v5446_v61 = vpop.f32.mrb[112].mxu0  ;;  %v6689_v48 = vld [vmem:[#allocation3 + $0x18] sm:$0xff]   ;;  %v6690_v39 = vld [vmem:[#allocation3 + $0x60] sm:$0xff]  }
 0x205   : > { %v8398_v33 = vpop.f32.mrb[83].mxu1  ;;  %2775 = vst [vmem:[#allocation2 + $0x30] sm:$0xff] %v2774_v25  ;;  %2871 = vst [vmem:[#allocation2 + $0x40] sm:$0xff] %v2870_v26  ;;  %v2612_v42 = vpack.c.bf16 %v2583_v51, %v2582_v63  ;;  %v5447_v45 = vpop.f32.mrb[113].mxu0  ;;  %3292 = vmatmul.mubr.bf16.gmra.mrb[164].mxu0 %v2774_v25  ;;  %6111 = vmatmul.mubr.bf16.vlgmr.msra.gmra.mrb[96].mxu1 %v2870_v26  ;;  %v2776_v41 = vld [vmem:[#allocation2 + $0x48] sm:$0xff]  ;;  %v2872_v25 = vld [vmem:[#allocation2 + $0x58] sm:$0xff] }
 0x206   : > { %v2552_v44 = vadd.f32 %v8352_v47, %v2513_v10  ;;  %v2514_v14 = vmul.f32 %v6265_v58, %v8344_v17  ;;  %v5448_v7 = vadd.f32 %v5447_v45, %v5446_v61  ;;  %v5449_v18 = vpop.f32.mrb[114].mxu0  ;;  %6143 = vmatpush3.bf16.msra.mxu1 %v8303_v32  ;;  %5683 = vmatpush3.bf16.msra.mxu0 %v6687_v0 }
 0x207   : > { %2628 = vst [vmem:[#allocation2 + $0x50] sm:$0xff] %v2612_v42  ;;  %v2657_v16 = vshrl.u32 %v2612_v42, 16  ;;  %v2660_v30 = vshll.u32 %v2612_v42, 16  ;;  %v5450_v38 = vpop.f32.mrb[115].mxu0  ;;  %3299 = vmatprep.mubr.bf16.mxu0 %v2612_v42  ;;  %6144 = vmatprep.subr.bf16.mxu1 %v6677_v6 }
 0x208   : > { %v2553_v9 = vadd.f32 %v8352_v47, %v2514_v14  ;;  %v6276_v60 = vadd.f32 %v5448_v7, %v8244_v24  ;;  %v5451_v37 = vadd.f32 %v5450_v38, %v5449_v18  ;;  %5684 = vmatprep.subr.bf16.mxu0 %v6688_v50  ;;  %v2584_v26 = vmax.f32 %v2552_v44, 0.0  ;;  %v6679_v18 = vld [vmem:[#allocation3 + $0x98] sm:$0xff]   ;;  %v6692_v38 = vld [vmem:[#allocation3 + $0x20] sm:$0xff]  }
 0x209   : > { %v2659_v32 = vrot.slane %v2657_v16, 7  ;;  %v2822_v0 = vrot.slane %v2660_v30, 1 }
 0x20a   : > { %v8410_v55 = vpop.f32.mrb[84].mxu1  ;;  %v2585_v10 = vmax.f32 %v2553_v9, 0.0  ;;  %v6277_v58 = vadd.f32 %v6276_v60, %v8359_v46  ;;  %v6284_v61 = vadd.f32 %v5451_v37, %v8251_v43  ;;  %6145 = vmatpush3.bf16.msra.mxu1 %v6677_v6  ;;  %5685 = vmatpush3.bf16.msra.mxu0 %v6689_v48  ;;  %v6693_v6 = vld [vmem:[#allocation3 + $0x68] sm:$0xff]  }
 0x20b   : > { %v8413_v35 = vpop.f32.mrb[85].mxu1  ;;  %v2662_v42 = vor.u32 %v2660_v30, %v2659_v32  ;;  %v2823_v24 = vor.u32 %v2822_v0, %v2657_v16  ;;  %6146 = vmatprep.subr.bf16.mxu1 %v6678_v5  ;;  %5686 = vmatprep.subr.bf16.mxu0 %v6690_v39 }
 0x20c   : > { %v8417_v63 = vpop.f32.mrb[86].mxu1  ;;  %v2613_v45 = vpack.c.bf16 %v2585_v10, %v2584_v26  ;;  %v2515_v50 = vmul.f32 %v6277_v58, %v8344_v17  ;;  %v6285_v14 = vadd.f32 %v6284_v61, %v8365_v15  ;;  %v5452_v7 = vpop.f32.mrb[116].mxu0  ;;  %v6681_v10 = vld [vmem:[#allocation3 + $0xa0] sm:$0xff]   ;;  %v6694_v58 = vld [vmem:[#allocation3 + $0x28] sm:$0xff]   ;;  %v2779_v61 = vld [vmem:[#allocation2 + $0x60] sm:$0xff] }
 0x20d   : > { %v8419_v51 = vpop.f32.mrb[87].mxu1  ;;  %v2777_v44 = vsel %vm7142_vm7, %v2662_v42, %v2776_v41  ;;  %v2873_v43 = vsel %vm7705_vm12, %v2823_v24, %v2872_v25  ;;  %v5453_v46 = vpop.f32.mrb[117].mxu0  ;;  %v2875_v42 = vld [vmem:[#allocation2 + $0x70] sm:$0xff] }
 0x20e   : > { %2778 = vst [vmem:[#allocation2 + $0x48] sm:$0xff] %v2777_v44  ;;  %2874 = vst [vmem:[#allocation2 + $0x58] sm:$0xff] %v2873_v43  ;;  %v2664_v48 = vshrl.u32 %v2613_v45, 16  ;;  %v2667_v16 = vshll.u32 %v2613_v45, 16  ;;  %v2554_v30 = vadd.f32 %v8352_v47, %v2515_v50  ;;  %v2516_v15 = vmul.f32 %v6285_v14, %v8344_v17  ;;  %v5455_v39 = vpop.f32.mrb[118].mxu0  ;;  %3300 = vmatmul.mubr.bf16.gmra.mrb[168].mxu0 %v2777_v44 }
 0x20f   : > { %2629 = vst [vmem:[#allocation2 + $0x68] sm:$0xff] %v2613_v45  ;;  %6114 = vmatprep.mubr.bf16.mxu1 %v2873_v43  ;;  %v5454_v60 = vadd.f32 %v5453_v46, %v5452_v7  ;;  %v5456_v37 = vpop.f32.mrb[119].mxu0  ;;  %3307 = vmatprep.mubr.bf16.mxu0 %v2613_v45  ;;  %v6695_v45 = vld [vmem:[#allocation3 + $0x70] sm:$0xff]  }
 0x210   : > { %6147 = vmatpush3.bf16.msra.mxu1 %v6678_v5  ;;  %v2666_v0 = vrot.slane %v2664_v48, 7  ;;  %v2824_v41 = vrot.slane %v2667_v16, 1  ;;  %v2555_v25 = vadd.f32 %v8352_v47, %v2516_v15  ;;  %5687 = vmatpush3.bf16.msra.mxu0 %v6692_v38  ;;  %v5457_v50 = vadd.f32 %v5456_v37, %v5455_v39 }
 0x211   : > { %6148 = vmatprep.subr.bf16.mxu1 %v6679_v18  ;;  %v6272_v24 = vadd.f32 %v5454_v60, %v8240_v21  ;;  %5688 = vmatprep.subr.bf16.mxu0 %v6693_v6  ;;  %v2586_v44 = vmax.f32 %v2554_v30, 0.0  ;;  %v6686_v6 = vld [vmem:[#allocation3 + $0xa8] sm:$0xff]  }
 0x212   : > { %v8431_v9 = vpop.f32.mrb[88].mxu1  ;;  %v2669_v5 = vor.u32 %v2667_v16, %v2666_v0  ;;  %v2825_v7 = vor.u32 %v2824_v41, %v2664_v48  ;;  %v2587_v43 = vmax.f32 %v2555_v25, 0.0  ;;  %v6280_v15 = vadd.f32 %v5457_v50, %v8248_v12  ;;  %v6697_v16 = vld [vmem:[#allocation3 + $0x30] sm:$0xff]  }
 0x213   : > { %v8433_v32 = vpop.f32.mrb[89].mxu1  ;;  %v6273_v46 = vadd.f32 %v6272_v24, %v8357_v34 }
 0x214   : > { %v8436_v26 = vpop.f32.mrb[90].mxu1  ;;  %6149 = vmatpush3.bf16.msra.mxu1 %v6679_v18  ;;  %v2780_v38 = vsel %vm7142_vm7, %v2669_v5, %v2779_v61  ;;  %v2876_v21 = vsel %vm7705_vm12, %v2825_v7, %v2875_v42  ;;  %v2614_v39 = vpack.c.bf16 %v2587_v43, %v2586_v44  ;;  %v5458_v60 = vpop.f32.mrb[120].mxu0  ;;  %5689 = vmatpush3.bf16.msra.mxu0 %v6694_v58  ;;  %v6698_v18 = vld [vmem:[#allocation3 + $0x78] sm:$0xff]   ;;  %v6691_v44 = vld [vmem:[#allocation3 + $0xb0] sm:$0xff]   ;;  %v2782_v43 = vld [vmem:[#allocation2 + $0x78] sm:$0xff] }
 0x215   : > { %v8439_v14 = vpop.f32.mrb[91].mxu1  ;;  %6150 = vmatprep.subr.bf16.mxu1 %v6681_v10  ;;  %2781 = vst [vmem:[#allocation2 + $0x60] sm:$0xff] %v2780_v38  ;;  %2877 = vst [vmem:[#allocation2 + $0x70] sm:$0xff] %v2876_v21  ;;  %v2517_v48 = vmul.f32 %v6273_v46, %v8344_v17  ;;  %v6281_v34 = vadd.f32 %v6280_v15, %v8363_v19  ;;  %v5459_v12 = vpop.f32.mrb[121].mxu0  ;;  %6115 = vmatmul.mubr.bf16.gmra.mrb[100].mxu1 %v2876_v21  ;;  %v2878_v46 = vld [vmem:[#allocation2 + $0x88] sm:$0xff] }
 0x216   : > { %5690 = vmatprep.subr.bf16.mxu0 %v6695_v45  ;;  %2630 = vst [vmem:[#allocation2 + $0x80] sm:$0xff] %v2614_v39  ;;  %v2671_v30 = vshrl.u32 %v2614_v39, 16  ;;  %v2674_v37 = vshll.u32 %v2614_v39, 16  ;;  %v5460_v0 = vadd.f32 %v5459_v12, %v5458_v60  ;;  %v5461_v41 = vpop.f32.mrb[122].mxu0  ;;  %3308 = vmatmul.mubr.bf16.gmra.mrb[172].mxu0 %v2780_v38  ;;  %v6699_v21 = vld [vmem:[#allocation3 + $0x38] sm:$0xff]  }
 0x217   : > { %v2556_v58 = vadd.f32 %v8352_v47, %v2517_v48  ;;  %v2518_v61 = vmul.f32 %v6281_v34, %v8344_v17  ;;  %v5462_v42 = vpop.f32.mrb[123].mxu0  ;;  %3315 = vmatprep.mubr.bf16.mxu0 %v2614_v39 }
 0x218   : > { %6151 = vmatpush3.bf16.msra.mxu1 %v6681_v10  ;;  %v2673_v19 = vrot.slane %v2671_v30, 7  ;;  %v2826_v50 = vrot.slane %v2674_v37, 1  ;;  %v6292_v45 = vadd.f32 %v5460_v0, %v8260_v62  ;;  %v5463_v5 = vadd.f32 %v5462_v42, %v5461_v41  ;;  %5691 = vmatpush3.bf16.msra.mxu0 %v6697_v16 }
 0x219   : > { %6152 = vmatprep.subr.bf16.mxu1 %v6686_v6  ;;  %v2557_v15 = vadd.f32 %v8352_v47, %v2518_v61  ;;  %5692 = vmatprep.subr.bf16.mxu0 %v6698_v18  ;;  %v2588_v48 = vmax.f32 %v2556_v58, 0.0 }
 0x21a   : > { %v8449_v25 = vpop.f32.mrb[92].mxu1  ;;  %v2676_v39 = vor.u32 %v2674_v37, %v2673_v19  ;;  %v2827_v10 = vor.u32 %v2826_v50, %v2671_v30  ;;  %v6293_v60 = vadd.f32 %v6292_v45, %v8373_v13  ;;  %v6300_v62 = vadd.f32 %v5463_v5, %v8267_v59  ;;  %v6696_v30 = vld [vmem:[#allocation3 + $0xb8] sm:$0xff]  }
 0x21b   : > { %v8453_v24 = vpop.f32.mrb[93].mxu1  ;;  %v2589_v34 = vmax.f32 %v2557_v15, 0.0 }
 0x21c   : > { %v8456_v7 = vpop.f32.mrb[94].mxu1  ;;  %6153 = vmatpush3.bf16.msra.mxu1 %v6686_v6  ;;  %v2783_v16 = vsel %vm7142_vm7, %v2676_v39, %v2782_v43  ;;  %v2879_v12 = vsel %vm7705_vm12, %v2827_v10, %v2878_v46  ;;  %v2519_v0 = vmul.f32 %v6293_v60, %v8344_v17  ;;  %v6301_v18 = vadd.f32 %v6300_v62, %v8379_v2  ;;  %v5464_v41 = vpop.f32.mrb[124].mxu0  ;;  %v6700_v43 = vld [vmem:[#allocation3 + $0x1c0] sm:$0xff]   ;;  %v2881_v39 = vld [vmem:[#allocation2 + $0xa0] sm:$0xff] }
 0x21d   : > { %v8459_v38 = vpop.f32.mrb[95].mxu1  ;;  %6154 = vmatprep.subr.bf16.mxu1 %v6691_v44  ;;  %2784 = vst [vmem:[#allocation2 + $0x78] sm:$0xff] %v2783_v16  ;;  %2880 = vst [vmem:[#allocation2 + $0x88] sm:$0xff] %v2879_v12  ;;  %v2615_v13 = vpack.c.bf16 %v2589_v34, %v2588_v48  ;;  %v5465_v59 = vpop.f32.mrb[125].mxu0  ;;  %6118 = vmatprep.mubr.bf16.mxu1 %v2879_v12 }
 0x21e   : > { %5693 = vmatpush3.bf16.msra.mxu0 %v6699_v21  ;;  %v2558_v6 = vadd.f32 %v8352_v47, %v2519_v0  ;;  %v2520_v37 = vmul.f32 %v6301_v18, %v8344_v17  ;;  %v5466_v58 = vadd.f32 %v5465_v59, %v5464_v41  ;;  %v5467_v61 = vpop.f32.mrb[126].mxu0  ;;  %v2785_v21 = vld [vmem:[#allocation2 + $0x90] sm:$0xff] }
 0x21f   : > { %3316 = vmatmul.mubr.bf16.gmra.mrb[176].mxu0 %v2783_v16  ;;  %2631 = vst [vmem:[#allocation2 + $0x98] sm:$0xff] %v2615_v13  ;;  %v2678_v42 = vshrl.u32 %v2615_v13, 16  ;;  %v2681_v19 = vshll.u32 %v2615_v13, 16  ;;  %v5468_v2 = vpop.f32.mrb[127].mxu0 }
 0x220   : > { %3323 = vmatprep.mubr.bf16.mxu0 %v2615_v13  ;;  %6155 = vmatpush3.bf16.msra.mxu1 %v6691_v44  ;;  %v2559_v50 = vadd.f32 %v8352_v47, %v2520_v37  ;;  %v6288_v45 = vadd.f32 %v5466_v58, %v8256_v40  ;;  %v5469_v5 = vadd.f32 %v5468_v2, %v5467_v61  ;;  %v2590_v10 = vmax.f32 %v2558_v6, 0.0  ;;  %v2884_v2 = vld [vmem:[#allocation2 + $0xb8] sm:$0xff] }
 0x221   : > { %6156 = vmatprep.subr.bf16.mxu1 %v6696_v30  ;;  %v2680_v46 = vrot.slane %v2678_v42, 7  ;;  %v2828_v15 = vrot.slane %v2681_v19, 1 }
 0x222   : > { %v2591_v60 = vmax.f32 %v2559_v50, 0.0  ;;  %v6289_v62 = vadd.f32 %v6288_v45, %v8371_v4  ;;  %v6296_v48 = vadd.f32 %v5469_v5, %v8264_v54 }
 0x223   : > { %v2683_v34 = vor.u32 %v2681_v19, %v2680_v46  ;;  %v2829_v16 = vor.u32 %v2828_v15, %v2678_v42  ;;  %v2788_v19 = vld [vmem:[#allocation2 + $0xa8] sm:$0xff] }
 0x224   : > { %6157 = vmatpush3.bf16.msra.mxu1 %v6696_v30  ;;  %v2616_v44 = vpack.c.bf16 %v2591_v60, %v2590_v10  ;;  %v2521_v12 = vmul.f32 %v6289_v62, %v8344_v17  ;;  %v6297_v40 = vadd.f32 %v6296_v48, %v8376_v22  ;;  %v5470_v0 = vpop.f32.mrb[128].mxu0 }
 0x225   : > { %5814 = vmatprep.subr.bf16.mxu1 %v6700_v43  ;;  %v2786_v18 = vsel %vm7142_vm7, %v2683_v34, %v2785_v21  ;;  %v2882_v41 = vsel %vm7705_vm12, %v2829_v16, %v2881_v39  ;;  %v5471_v13 = vpop.f32.mrb[129].mxu0 }
 0x226   : > { %2787 = vst [vmem:[#allocation2 + $0x90] sm:$0xff] %v2786_v18  ;;  %2883 = vst [vmem:[#allocation2 + $0xa0] sm:$0xff] %v2882_v41  ;;  %v2685_v54 = vshrl.u32 %v2616_v44, 16  ;;  %v2688_v4 = vshll.u32 %v2616_v44, 16  ;;  %v2560_v30 = vadd.f32 %v8352_v47, %v2521_v12  ;;  %v2522_v59 = vmul.f32 %v6297_v40, %v8344_v17  ;;  %v5473_v6 = vpop.f32.mrb[130].mxu0  ;;  %6119 = vmatmul.mubr.bf16.gmra.mrb[104].mxu1 %v2882_v41 }
 0x227   : > { %2632 = vst [vmem:[#allocation2 + $0xb0] sm:$0xff] %v2616_v44  ;;  %3324 = vmatmul.mubr.bf16.gmra.mrb[180].mxu0 %v2786_v18  ;;  %v5472_v22 = vadd.f32 %v5471_v13, %v5470_v0  ;;  %v5474_v37 = vpop.f32.mrb[131].mxu0 }
 0x228   : > { %3331 = vmatprep.mubr.bf16.mxu0 %v2616_v44  ;;  %v2687_v58 = vrot.slane %v2685_v54, 7  ;;  %v2830_v61 = vrot.slane %v2688_v4, 1  ;;  %v2561_v42 = vadd.f32 %v8352_v47, %v2522_v59  ;;  %v5475_v45 = vadd.f32 %v5474_v37, %v5473_v6 }
 0x229   : > { %v6308_v50 = vadd.f32 %v5472_v22, %v8276_v57  ;;  %v2592_v46 = vmax.f32 %v2560_v30, 0.0  ;;  %v2887_v30 = vld [vmem:[#allocation2 + $0xd0] sm:$0xff] }
 0x22a   : > { %v2690_v5 = vor.u32 %v2688_v4, %v2687_v58  ;;  %v2831_v43 = vor.u32 %v2830_v61, %v2685_v54  ;;  %v2593_v15 = vmax.f32 %v2561_v42, 0.0  ;;  %v6316_v39 = vadd.f32 %v5475_v45, %v8283_v28  ;;  %v2791_v4 = vld [vmem:[#allocation2 + $0xc0] sm:$0xff] }
 0x22b   : > { %v6309_v21 = vadd.f32 %v6308_v50, %v8392_v20 }
 0x22c   : > { %v2789_v10 = vsel %vm7142_vm7, %v2690_v5, %v2788_v19  ;;  %v8491_v60 = vsel %vm7705_vm12, %v2831_v43, %v2884_v2  ;;  %v2617_v62 = vpack.c.bf16 %v2593_v15, %v2592_v46  ;;  %v5476_v48 = vpop.f32.mrb[132].mxu0  ;;  %v6317_v34 = vadd.f32 %v6316_v39, %v8398_v33 }
 0x22d   : > { %2790 = vst [vmem:[#allocation2 + $0xa8] sm:$0xff] %v2789_v10  ;;  %2886 = vst [vmem:[#allocation2 + $0xb8] sm:$0xff] %v8491_v60  ;;  %v2523_v57 = vmul.f32 %v6309_v21, %v8344_v17  ;;  %v5477_v16 = vpop.f32.mrb[133].mxu0  ;;  %6122 = vmatprep.mubr.bf16.mxu1 %v8491_v60 }
 0x22e   : > { %2633 = vst [vmem:[#allocation2 + $0xc8] sm:$0xff] %v2617_v62  ;;  %v2692_v28 = vshrl.u32 %v2617_v62, 16  ;;  %v2695_v20 = vshll.u32 %v2617_v62, 16  ;;  %v5478_v44 = vadd.f32 %v5477_v16, %v5476_v48  ;;  %v5479_v12 = vpop.f32.mrb[134].mxu0  ;;  %v2524_v0 = vmul.f32 %v6317_v34, %v8344_v17  ;;  %v2794_v16 = vld [vmem:[#allocation2 + $0xd8] sm:$0xff] }
 0x22f   : > { %3332 = vmatmul.mubr.bf16.gmra.mrb[184].mxu0 %v2789_v10  ;;  %v2562_v40 = vadd.f32 %v8352_v47, %v2523_v57  ;;  %v5480_v18 = vpop.f32.mrb[135].mxu0 }
 0x230   : > { %3339 = vmatprep.mubr.bf16.mxu0 %v2617_v62  ;;  %v2694_v41 = vrot.slane %v2692_v28, 7  ;;  %v2832_v13 = vrot.slane %v2695_v20, 1  ;;  %v6304_v54 = vadd.f32 %v5478_v44, %v8272_v23  ;;  %v5481_v33 = vadd.f32 %v5480_v18, %v5479_v12 }
 0x231   : > { %v2563_v59 = vadd.f32 %v8352_v47, %v2524_v0  ;;  %v2594_v61 = vmax.f32 %v2562_v40, 0.0 }
 0x232   : > { %v2697_v6 = vor.u32 %v2695_v20, %v2694_v41  ;;  %v2833_v22 = vor.u32 %v2832_v13, %v2692_v28  ;;  %v6305_v37 = vadd.f32 %v6304_v54, %v8388_v31  ;;  %v6312_v58 = vadd.f32 %v5481_v33, %v8280_v11  ;;  %v2890_v28 = vld [vmem:[#allocation2 + $0xe8] sm:$0xff] }
 0x233   : > { %v2595_v42 = vmax.f32 %v2563_v59, 0.0 }
 0x234   : > { %v2792_v19 = vsel %vm7142_vm7, %v2697_v6, %v2791_v4  ;;  %v8507_v2 = vsel %vm7705_vm12, %v2833_v22, %v2887_v30  ;;  %v2525_v23 = vmul.f32 %v6305_v37, %v8344_v17  ;;  %v6313_v50 = vadd.f32 %v6312_v58, %v8395_v56  ;;  %v5482_v45 = vpop.f32.mrb[136].mxu0 }
 0x235   : > { %2793 = vst [vmem:[#allocation2 + $0xc0] sm:$0xff] %v2792_v19  ;;  %2889 = vst [vmem:[#allocation2 + $0xd0] sm:$0xff] %v8507_v2  ;;  %v2618_v31 = vpack.c.bf16 %v2595_v42, %v2594_v61  ;;  %v5483_v5 = vpop.f32.mrb[137].mxu0  ;;  %6123 = vmatmul.mubr.bf16.gmra.mrb[108].mxu1 %v8507_v2 }
 0x236   : > { %v2564_v11 = vadd.f32 %v8352_v47, %v2525_v23  ;;  %v2526_v43 = vmul.f32 %v6313_v50, %v8344_v17  ;;  %v5484_v46 = vadd.f32 %v5483_v5, %v5482_v45  ;;  %v5485_v15 = vpop.f32.mrb[138].mxu0  ;;  %v2893_v23 = vld [vmem:[#allocation2 + $0x100] sm:$0xff] }
 0x237   : > { %3340 = vmatmul.mubr.bf16.gmra.mrb[188].mxu0 %v2792_v19  ;;  %2634 = vst [vmem:[#allocation2 + $0xe0] sm:$0xff] %v2618_v31  ;;  %v2699_v21 = vshrl.u32 %v2618_v31, 16  ;;  %v2702_v39 = vshll.u32 %v2618_v31, 16  ;;  %v5486_v10 = vpop.f32.mrb[139].mxu0  ;;  %v2797_v19 = vld [vmem:[#allocation2 + $0xf0] sm:$0xff] }
 0x238   : > { %3347 = vmatprep.mubr.bf16.mxu0 %v2618_v31  ;;  %v2565_v56 = vadd.f32 %v8352_v47, %v2526_v43  ;;  %v6324_v62 = vadd.f32 %v5484_v46, %v8292_v1  ;;  %v5487_v48 = vadd.f32 %v5486_v10, %v5485_v15  ;;  %v2596_v20 = vmax.f32 %v2564_v11, 0.0 }
 0x239   : > { %v2701_v57 = vrot.slane %v2699_v21, 7  ;;  %v2834_v34 = vrot.slane %v2702_v39, 1 }
 0x23a   : > { %v2597_v44 = vmax.f32 %v2565_v56, 0.0  ;;  %v6325_v12 = vadd.f32 %v6324_v62, %v8413_v35  ;;  %v6332_v40 = vadd.f32 %v5487_v48, %v8299_v53 }
 0x23b   : > { %v2704_v0 = vor.u32 %v2702_v39, %v2701_v57  ;;  %v2835_v18 = vor.u32 %v2834_v34, %v2699_v21 }
 0x23c   : > { %v8519_v41 = vpack.c.bf16 %v2597_v44, %v2596_v20  ;;  %v2527_v13 = vmul.f32 %v6325_v12, %v8344_v17  ;;  %v6333_v54 = vadd.f32 %v6332_v40, %v8419_v51  ;;  %v5488_v1 = vpop.f32.mrb[140].mxu0 }
 0x23d   : > { %v2795_v33 = vsel %vm7142_vm7, %v2704_v0, %v2794_v16  ;;  %v8527_v4 = vsel %vm7705_vm12, %v2835_v18, %v2890_v28  ;;  %v5489_v30 = vpop.f32.mrb[141].mxu0  ;;  %v2800_v0 = vld [vmem:[#allocation2 + $0x108] sm:$0xff]  ;;  %v2896_v18 = vld [vmem:[#allocation2 + $0x118] sm:$0xff] }
 0x23e   : > { %2796 = vst [vmem:[#allocation2 + $0xd8] sm:$0xff] %v2795_v33  ;;  %2892 = vst [vmem:[#allocation2 + $0xe8] sm:$0xff] %v8527_v4  ;;  %v2706_v53 = vshrl.u32 %v8519_v41, 16  ;;  %v2709_v35 = vshll.u32 %v8519_v41, 16  ;;  %v2566_v51 = vadd.f32 %v8352_v47, %v2527_v13  ;;  %v2528_v59 = vmul.f32 %v6333_v54, %v8344_v17  ;;  %v5491_v6 = vpop.f32.mrb[142].mxu0  ;;  %6126 = vmatprep.mubr.bf16.mxu1 %v8527_v4 }
 0x23f   : > { %2635 = vst [vmem:[#allocation2 + $0xf8] sm:$0xff] %v8519_v41  ;;  %3348 = vmatmul.mubr.bf16.gmra.mrb[192].mxu0 %v2795_v33  ;;  %v5490_v22 = vadd.f32 %v5489_v30, %v5488_v1  ;;  %v5492_v37 = vpop.f32.mrb[143].mxu0 }
 0x240   : > { %3355 = vmatprep.mubr.bf16.mxu0 %v8519_v41  ;;  %v2708_v58 = vrot.slane %v2706_v53, 7  ;;  %v2836_v61 = vrot.slane %v2709_v35, 1  ;;  %v2567_v42 = vadd.f32 %v8352_v47, %v2528_v59  ;;  %v5493_v45 = vadd.f32 %v5492_v37, %v5491_v6 }
 0x241   : > { %v6320_v50 = vadd.f32 %v5490_v22, %v8288_v49  ;;  %v2598_v11 = vmax.f32 %v2566_v51, 0.0 }
 0x242   : > { %v2711_v31 = vor.u32 %v2709_v35, %v2708_v58  ;;  %v2837_v5 = vor.u32 %v2836_v61, %v2706_v53  ;;  %v2599_v43 = vmax.f32 %v2567_v42, 0.0  ;;  %v6328_v15 = vadd.f32 %v5493_v45, %v8296_v3 }
 0x243   : > { %v6321_v46 = vadd.f32 %v6320_v50, %v8410_v55 }
 0x244   : > { %v8543_v21 = vsel %vm7142_vm7, %v2711_v31, %v2797_v19  ;;  %v8547_v39 = vsel %vm7705_vm12, %v2837_v5, %v2893_v23  ;;  %v8549_v10 = vpack.c.bf16 %v2599_v43, %v2598_v11  ;;  %v5494_v49 = vpop.f32.mrb[144].mxu0  ;;  %v6329_v55 = vadd.f32 %v6328_v15, %v8417_v63  ;;  %v2803_v43 = vld [vmem:[#allocation2 + $0x120] sm:$0xff] }
 0x245   : > { %2799 = vst [vmem:[#allocation2 + $0xf0] sm:$0xff] %v8543_v21  ;;  %2895 = vst [vmem:[#allocation2 + $0x100] sm:$0xff] %v8547_v39  ;;  %v2529_v56 = vmul.f32 %v6321_v46, %v8344_v17  ;;  %v5495_v3 = vpop.f32.mrb[145].mxu0  ;;  %6127 = vmatmul.mubr.bf16.gmra.mrb[112].mxu1 %v8547_v39  ;;  %v2899_v46 = vld [vmem:[#allocation2 + $0x130] sm:$0xff] }
 0x246   : > { %2636 = vst [vmem:[#allocation2 + $0x110] sm:$0xff] %v8549_v10  ;;  %v2713_v62 = vshrl.u32 %v8549_v10, 16  ;;  %v2716_v48 = vshll.u32 %v8549_v10, 16  ;;  %v5496_v57 = vadd.f32 %v5495_v3, %v5494_v49  ;;  %v5497_v34 = vpop.f32.mrb[146].mxu0  ;;  %v2530_v28 = vmul.f32 %v6329_v55, %v8344_v17  ;;  %v9439_v55 = vld [vmem:[#allocation38_spill] sm:$0xff] }
 0x247   : > { %3356 = vmatmul.mubr.bf16.gmra.mrb[196].mxu0 %v8543_v21  ;;  %v2568_v16 = vadd.f32 %v8352_v47, %v2529_v56  ;;  %v5498_v20 = vpop.f32.mrb[147].mxu0 }
 0x248   : > { %3363 = vmatprep.mubr.bf16.mxu0 %v8549_v10  ;;  %v2715_v63 = vrot.slane %v2713_v62, 7  ;;  %v2838_v44 = vrot.slane %v2716_v48, 1  ;;  %v6340_v12 = vadd.f32 %v5496_v57, %v8310_v29  ;;  %v5499_v40 = vadd.f32 %v5498_v20, %v5497_v34 }
 0x249   : > { %v2569_v13 = vadd.f32 %v8352_v47, %v2530_v28  ;;  %v2600_v53 = vmax.f32 %v2568_v16, 0.0 }
 0x24a   : > { %v2718_v54 = vor.u32 %v2716_v48, %v2715_v63  ;;  %v2839_v1 = vor.u32 %v2838_v44, %v2713_v62  ;;  %v6341_v33 = vadd.f32 %v6340_v12, %v8433_v32  ;;  %v6348_v30 = vadd.f32 %v5499_v40, %v8318_v8 }
 0x24b   : > { %v2601_v35 = vmax.f32 %v2569_v13, 0.0 }
 0x24c   : > { %v8569_v51 = vsel %vm7142_vm7, %v2718_v54, %v2800_v0  ;;  %v8573_v29 = vsel %vm7705_vm12, %v2839_v1, %v2896_v18  ;;  %v2531_v59 = vmul.f32 %v6341_v33, %v8344_v17  ;;  %v6349_v6 = vadd.f32 %v6348_v30, %v8439_v14  ;;  %v5500_v22 = vpop.f32.mrb[148].mxu0  ;;  %v2806_v33 = vld [vmem:[#allocation2 + $0x138] sm:$0xff]  ;;  %v2902_v30 = vld [vmem:[#allocation2 + $0x148] sm:$0xff] }
 0x24d   : > { %2802 = vst [vmem:[#allocation2 + $0x108] sm:$0xff] %v8569_v51  ;;  %2898 = vst [vmem:[#allocation2 + $0x118] sm:$0xff] %v8573_v29  ;;  %v8579_v8 = vpack.c.bf16 %v2601_v35, %v2600_v53  ;;  %v5501_v32 = vpop.f32.mrb[149].mxu0  ;;  %6130 = vmatprep.mubr.bf16.mxu1 %v8573_v29  ;;  %v9440_v53 = vld [vmem:[#allocation48_spill] sm:$0xff] }
 0x24e   : > { %v2570_v37 = vadd.f32 %v8352_v47, %v2531_v59  ;;  %v2532_v58 = vmul.f32 %v6349_v6, %v8344_v17  ;;  %v5502_v61 = vadd.f32 %v5501_v32, %v5500_v22  ;;  %v5503_v42 = vpop.f32.mrb[150].mxu0 }
 0x24f   : > { %3364 = vmatmul.mubr.bf16.gmra.mrb[200].mxu0 %v8569_v51  ;;  %2637 = vst [vmem:[#allocation2 + $0x128] sm:$0xff] %v8579_v8  ;;  %v2720_v14 = vshrl.u32 %v8579_v8, 16  ;;  %v2723_v19 = vshll.u32 %v8579_v8, 16  ;;  %v5504_v23 = vpop.f32.mrb[151].mxu0 }
 0x250   : > { %3371 = vmatprep.mubr.bf16.mxu0 %v8579_v8  ;;  %v2571_v50 = vadd.f32 %v8352_v47, %v2532_v58  ;;  %v6336_v45 = vadd.f32 %v5502_v61, %v8306_v27  ;;  %v5505_v31 = vadd.f32 %v5504_v23, %v5503_v42  ;;  %v2602_v15 = vmax.f32 %v2570_v37, 0.0  ;;  %v9441_v58 = vld [vmem:[#allocation46_spill] sm:$0xff] }
 0x251   : > { %v2722_v5 = vrot.slane %v2720_v14, 7  ;;  %v2840_v11 = vrot.slane %v2723_v19, 1 }
 0x252   : > { %v2603_v49 = vmax.f32 %v2571_v50, 0.0  ;;  %v6337_v56 = vadd.f32 %v6336_v45, %v8431_v9  ;;  %v6344_v3 = vadd.f32 %v5505_v31, %v9439_v55 }
 0x253   : > { %v2725_v62 = vor.u32 %v2723_v19, %v2722_v5  ;;  %v2841_v48 = vor.u32 %v2840_v11, %v2720_v14 }
 0x254   : > { %v8593_v57 = vpack.c.bf16 %v2603_v49, %v2602_v15  ;;  %v2533_v34 = vmul.f32 %v6337_v56, %v8344_v17  ;;  %v6345_v16 = vadd.f32 %v6344_v3, %v8436_v26  ;;  %v5506_v27 = vpop.f32.mrb[152].mxu0  ;;  %v9442_v3 = vld [vmem:[#allocation37_spill] sm:$0xff] }
 0x255   : > { %v8599_v28 = vsel %vm7142_vm7, %v2725_v62, %v2803_v43  ;;  %v8603_v20 = vsel %vm7705_vm12, %v2841_v48, %v2899_v46  ;;  %v5507_v9 = vpop.f32.mrb[153].mxu0  ;;  %v6730_v46 = vld [vmem:[%s9244_s3] ss:$0 sm:$0xff] }
 0x256   : > { %2805 = vst [vmem:[#allocation2 + $0x120] sm:$0xff] %v8599_v28  ;;  %2901 = vst [vmem:[#allocation2 + $0x130] sm:$0xff] %v8603_v20  ;;  %v2727_v63 = vshrl.u32 %v8593_v57, 16  ;;  %v2730_v26 = vshll.u32 %v8593_v57, 16  ;;  %v2572_v44 = vadd.f32 %v8352_v47, %v2533_v34  ;;  %v2534_v12 = vmul.f32 %v6345_v16, %v8344_v17  ;;  %v5509_v40 = vpop.f32.mrb[154].mxu0  ;;  %6131 = vmatmul.mubr.bf16.gmra.mrb[116].mxu1 %v8603_v20  ;;  %v2809_v34 = vld [vmem:[#allocation2 + $0x150] sm:$0xff] }
 0x257   : > { %2638 = vst [vmem:[#allocation2 + $0x140] sm:$0xff] %v8593_v57  ;;  %3372 = vmatmul.mubr.bf16.gmra.mrb[204].mxu0 %v8599_v28  ;;  %v5508_v0 = vadd.f32 %v5507_v9, %v5506_v27  ;;  %v5510_v18 = vpop.f32.mrb[155].mxu0  ;;  %v2905_v16 = vld [vmem:[#allocation2 + $0x160] sm:$0xff] }
 0x258   : > { %3379 = vmatprep.mubr.bf16.mxu0 %v8593_v57  ;;  %v2729_v13 = vrot.slane %v2727_v63, 7  ;;  %v2842_v54 = vrot.slane %v2730_v26, 1  ;;  %v2573_v1 = vadd.f32 %v8352_v47, %v2534_v12  ;;  %v5511_v59 = vadd.f32 %v5510_v18, %v5509_v40 }
 0x259   : > { %v6356_v35 = vadd.f32 %v5508_v0, %v9440_v53  ;;  %v2604_v22 = vmax.f32 %v2572_v44, 0.0  ;;  %v9443_v44 = vld [vmem:[#allocation44_spill] sm:$0xff] }
 0x25a   : > { %v2732_v6 = vor.u32 %v2730_v26, %v2729_v13  ;;  %v2843_v17 = vor.u32 %v2842_v54, %v2727_v63  ;;  %v2605_v32 = vmax.f32 %v2573_v1, 0.0  ;;  %v6364_v61 = vadd.f32 %v5511_v59, %v9441_v58 }
 0x25b   : > { %v6357_v37 = vadd.f32 %v6356_v35, %v8453_v24  ;;  %v6729_v24 = vld [vmem:[%s9243_s2] ss:$0 sm:$0xff] }
 0x25c   : > { %v8621_v42 = vsel %vm7142_vm7, %v2732_v6, %v2806_v33  ;;  %v8625_v47 = vsel %vm7705_vm12, %v2843_v17, %v2902_v30  ;;  %v8627_v14 = vpack.c.bf16 %v2605_v32, %v2604_v22  ;;  %v5512_v19 = vpop.f32.mrb[156].mxu0  ;;  %v6365_v50 = vadd.f32 %v6364_v61, %v8459_v38  ;;  %v2812_v17 = vld [vmem:[#allocation2 + $0x168] sm:$0xff]  ;;  %v2908_v22 = vld [vmem:[#allocation2 + $0x178] sm:$0xff] }
 0x25d   : > { %2808 = vst [vmem:[#allocation2 + $0x138] sm:$0xff] %v8621_v42  ;;  %2904 = vst [vmem:[#allocation2 + $0x148] sm:$0xff] %v8625_v47  ;;  %v2535_v23 = vmul.f32 %v6729_v24, %v6357_v37  ;;  %v5513_v45 = vpop.f32.mrb[157].mxu0  ;;  %6134 = vmatprep.mubr.bf16.mxu1 %v8625_v47 }
 0x25e   : > { %2639 = vst [vmem:[#allocation2 + $0x158] sm:$0xff] %v8627_v14  ;;  %v2734_v31 = vshrl.u32 %v8627_v14, 16  ;;  %v2737_v5 = vshll.u32 %v8627_v14, 16  ;;  %v5514_v11 = vadd.f32 %v5513_v45, %v5512_v19  ;;  %v5515_v43 = vpop.f32.mrb[158].mxu0  ;;  %v2536_v49 = vmul.f32 %v6729_v24, %v6365_v50 }
 0x25f   : > { %3380 = vmatmul.mubr.bf16.gmra.mrb[208].mxu0 %v8621_v42  ;;  %v2574_v15 = vadd.f32 %v6730_v46, %v2535_v23  ;;  %v5516_v38 = vpop.f32.mrb[159].mxu0 }
 0x260   : > { %3387 = vmatprep.mubr.bf16.mxu0 %v8627_v14  ;;  %v2736_v56 = vrot.slane %v2734_v31, 7  ;;  %v2844_v55 = vrot.slane %v2737_v5, 1  ;;  %v6352_v62 = vadd.f32 %v5514_v11, %v9442_v3  ;;  %v5517_v48 = vadd.f32 %v5516_v38, %v5515_v43  ;;  %v2815_v11 = vld [vmem:[#allocation2 + $0x180] sm:$0xff]  ;;  %v2911_v43 = vld [vmem:[#allocation2 + $0x190] sm:$0xff]  ;;  %v2919_v3 = vld [vmem:[#allocation2 + $0x28] sm:$0xff] }
 0x261   : > { %v2575_v27 = vadd.f32 %v6730_v46, %v2536_v49  ;;  %v2606_v40 = vmax.f32 %v2574_v15, 0.0 }
 0x262   : > { %v2739_v9 = vor.u32 %v2737_v5, %v2736_v56  ;;  %v2845_v63 = vor.u32 %v2844_v55, %v2734_v31  ;;  %v6353_v26 = vadd.f32 %v6352_v62, %v8449_v25  ;;  %v6360_v12 = vadd.f32 %v5517_v48, %v9443_v44  ;;  %v8690_v56 = vld [vmem:[#allocation2 + $0x8] sm:$0xff]  ;;  %v6701_v55 = vld [vmem:[#allocation3 + $0x180] sm:$0xff]   ;;  %v8694_v62 = vld [vmem:[#allocation2 + $0x40] sm:$0xff] }
 0x263   : > { %v2607_v0 = vmax.f32 %v2575_v27, 0.0  ;;  %v6703_v48 = vld [vmem:[#allocation3 + $0x188] sm:$0xff]  }
 0x264   : > { %v8649_v18 = vsel %vm7142_vm7, %v2739_v9, %v2809_v34  ;;  %v8653_v13 = vsel %vm7705_vm12, %v2845_v63, %v2905_v16  ;;  %v2537_v54 = vmul.f32 %v6729_v24, %v6353_v26  ;;  %v6361_v1 = vadd.f32 %v6360_v12, %v8456_v7  ;;  %v6704_v34 = vld [vmem:[#allocation3 + $0x1d0] sm:$0xff]   ;;  %v8698_v27 = vld [vmem:[#allocation2 + $0x58] sm:$0xff]  ;;  %v6706_v9 = vld [vmem:[#allocation3 + $0x1d8] sm:$0xff]  }
 0x265   : > { %2811 = vst [vmem:[#allocation2 + $0x150] sm:$0xff] %v8649_v18  ;;  %2907 = vst [vmem:[#allocation2 + $0x160] sm:$0xff] %v8653_v13  ;;  %v8658_v25 = vpack.c.bf16 %v2607_v0, %v2606_v40  ;;  %6135 = vmatmul.mubr.bf16.gmra.mrb[120].mxu1 %v8653_v13  ;;  %v6705_v16 = vld [vmem:[#allocation3 + $0x190] sm:$0xff]   ;;  %v2917_v63 = vld [vmem:[#allocation2 + $0x18] sm:$0xff] }
 0x266   : > { %v2576_v33 = vadd.f32 %v6730_v46, %v2537_v54  ;;  %v2538_v30 = vmul.f32 %v6729_v24, %v6361_v1  ;;  %v8701_v26 = vld [vmem:[#allocation2 + $0x70] sm:$0xff]  ;;  %v2921_v44 = vld [vmem:[#allocation2 + $0x38] sm:$0xff]  ;;  %v6707_v12 = vld [vmem:[#allocation3 + $0x198] sm:$0xff]  }
 0x267   : > { %3388 = vmatmul.mubr.bf16.gmra.mrb[212].mxu0 %v8649_v18  ;;  %v2741_v53 = vshrl.u32 %v8658_v25, 16  ;;  %v2744_v35 = vshll.u32 %v8658_v25, 16  ;;  %v6708_v40 = vld [vmem:[#allocation3 + $0x1e0] sm:$0xff]   ;;  %v8704_v54 = vld [vmem:[#allocation2 + $0x88] sm:$0xff]  ;;  %v6710_v1 = vld [vmem:[#allocation3 + $0x1e8] sm:$0xff]  }
 0x268   : > { %3395 = vmatprep.mubr.bf16.mxu0 %v8658_v25  ;;  %v2577_v59 = vadd.f32 %v6730_v46, %v2538_v30  ;;  %v2608_v32 = vmax.f32 %v2576_v33, 0.0  ;;  %v6709_v0 = vld [vmem:[#allocation3 + $0x1a0] sm:$0xff]   ;;  %v8707_v30 = vld [vmem:[#allocation2 + $0xa0] sm:$0xff] }
 0x269   : > { %v2743_v7 = vrot.slane %v2741_v53, 7  ;;  %v2846_v6 = vrot.slane %v2744_v35, 1  ;;  %v2920_v33 = vld [vmem:[#allocation2 + $0x30] sm:$0xff] }
 0x26a   : > { %v2609_v37 = vmax.f32 %v2577_v59, 0.0  ;;  %v6712_v59 = vld [vmem:[#allocation3 + $0x1f0] sm:$0xff]  }
 0x26b   : > { %v2746_v58 = vor.u32 %v2744_v35, %v2743_v7  ;;  %v2847_v61 = vor.u32 %v2846_v6, %v2741_v53  ;;  %v2924_v53 = vld [vmem:[#allocation2 + $0x50] sm:$0xff]  ;;  %v6711_v35 = vld [vmem:[#allocation3 + $0x1a8] sm:$0xff]   ;;  %v6713_v7 = vld [vmem:[#allocation3 + $0x1b0] sm:$0xff]  }
 0x26c   : > { %v8665_v19 = vpack.c.bf16 %v2609_v37, %v2608_v32  ;;  %v6714_v6 = vld [vmem:[#allocation3 + $0x1f8] sm:$0xff]   ;;  %v6716_v37 = vld [vmem:[#allocation3 + $0x200] sm:$0xff]  }
 0x26d   : > { %v8669_v24 = vsel %vm7142_vm7, %v2746_v58, %v2812_v17  ;;  %v8673_v23 = vsel %vm7705_vm12, %v2847_v61, %v2908_v22  ;;  %v2923_v17 = vld [vmem:[#allocation2 + $0x48] sm:$0xff]  ;;  %v2926_v58 = vld [vmem:[#allocation2 + $0x60] sm:$0xff] }
 0x26e   : > { %2814 = vst [vmem:[#allocation2 + $0x168] sm:$0xff] %v8669_v24  ;;  %2910 = vst [vmem:[#allocation2 + $0x178] sm:$0xff] %v8673_v23  ;;  %v2748_v50 = vshrl.u32 %v8665_v19, 16  ;;  %v2751_v45 = vshll.u32 %v8665_v19, 16  ;;  %6138 = vmatprep.mubr.bf16.mxu1 %v8673_v23  ;;  %v2927_v22 = vld [vmem:[#allocation2 + $0x68] sm:$0xff]  ;;  %v2930_v61 = vld [vmem:[#allocation2 + $0x80] sm:$0xff] }
 0x26f   : > { %3396 = vmatmul.mubr.bf16.gmra.mrb[216].mxu0 %v8669_v24  ;;  %v6715_v32 = vld [vmem:[#allocation3 + $0x1b8] sm:$0xff]  }
 0x270   : > { %3403 = vmatprep.mubr.bf16.mxu0 %v8665_v19  ;;  %v2750_v31 = vrot.slane %v2748_v50, 7  ;;  %v2848_v5 = vrot.slane %v2751_v45, 1 }
 0x272   : > { %v2753_v46 = vor.u32 %v2751_v45, %v2750_v31  ;;  %v2849_v15 = vor.u32 %v2848_v5, %v2748_v50  ;;  %v8716_v50 = vld [vmem:[#allocation2 + $0x90] sm:$0xff]  ;;  %v6719_v45 = vld [vmem:[#allocation3 + $0x218] sm:$0xff]   ;;  %v8737_v31 = vld [vmem:[#allocation2 + $0xd8] sm:$0xff] }
 0x273   : > { %v6720_v5 = vld [vmem:[#allocation3 + $0x220] sm:$0xff]  }
 0x274   : > { %v8684_v49 = vsel %vm7142_vm7, %v2753_v46, %v2815_v11  ;;  %v2912_v38 = vsel %vm7705_vm12, %v2849_v15, %v2911_v43  ;;  %v6721_v11 = vld [vmem:[#allocation3 + $0x228] sm:$0xff]   ;;  %v6722_v46 = vld [vmem:[#allocation3 + $0x230] sm:$0xff]  }
 0x275   : > { %2817 = vst [vmem:[#allocation2 + $0x180] sm:$0xff] %v8684_v49  ;;  %2913 = vst [vmem:[#allocation2 + $0x190] sm:$0xff] %v2912_v38  ;;  %6139 = vmatmul.mubr.bf16.gmra.mrb[124].mxu1 %v2912_v38 }
 0x276   : > { %6158 = vmatprep.mubr.bf16.mxu1 %v8690_v56 }
 0x277   : > { %3404 = vmatmul.mubr.bf16.gmra.mrb[220].mxu0 %v8684_v49 }
 0x278   : > { %3749 = vmatprep.mubr.bf16.mxu0 %v8690_v56 }
 0x27d   : > { %6159 = vmatmul.mubr.bf16.vlgmr.msra.gmra.mrb[96].mxu1 %v2919_v3 }
 0x27e   : > { %6162 = vmatprep.mubr.bf16.mxu1 %v8694_v62  ;;  %5815 = vmatpush3.bf16.msra.mxu1 %v6701_v55 }
 0x27f   : > { %3750 = vmatmul.mubr.bf16.vlgmr.msra.gmra.mrb[224].mxu0 %v8690_v56  ;;  %5816 = vmatprep.subr.bf16.mxu1 %v6702_v36  ;;  %v6723_v36 = vld [vmem:[#allocation3 + $0x238] sm:$0xff]  }
 0x280   : > { %3757 = vmatprep.mubr.bf16.mxu0 %v2918_v52 }
 0x282   : > { %5817 = vmatpush3.bf16.msra.mxu1 %v6703_v48 }
 0x283   : > { %5818 = vmatprep.subr.bf16.mxu1 %v6704_v34 }
 0x285   : > { %6163 = vmatmul.mubr.bf16.gmra.mrb[100].mxu1 %v8698_v27 }
 0x286   : > { %6166 = vmatprep.mubr.bf16.mxu1 %v8701_v26  ;;  %5819 = vmatpush3.bf16.msra.mxu1 %v6705_v16 }
 0x287   : > { %3758 = vmatmul.mubr.bf16.gmra.mrb[228].mxu0 %v2917_v63  ;;  %5820 = vmatprep.subr.bf16.mxu1 %v6706_v9 }
 0x288   : > { %3765 = vmatprep.mubr.bf16.mxu0 %v2921_v44 }
 0x28a   : > { %5821 = vmatpush3.bf16.msra.mxu1 %v6707_v12 }
 0x28b   : > { %5822 = vmatprep.subr.bf16.mxu1 %v6708_v40 }
 0x28d   : > { %6167 = vmatmul.mubr.bf16.gmra.mrb[104].mxu1 %v8704_v54 }
 0x28e   : > { %6170 = vmatprep.mubr.bf16.mxu1 %v8707_v30  ;;  %5823 = vmatpush3.bf16.msra.mxu1 %v6709_v0 }
 0x28f   : > { %3766 = vmatmul.mubr.bf16.gmra.mrb[232].mxu0 %v2920_v33  ;;  %5824 = vmatprep.subr.bf16.mxu1 %v6710_v1 }
 0x290   : > { %3773 = vmatprep.mubr.bf16.mxu0 %v2924_v53 }
 0x292   : > { %5825 = vmatpush3.bf16.msra.mxu1 %v6711_v35 }
 0x293   : > { %5826 = vmatprep.subr.bf16.mxu1 %v6712_v59 }
 0x295   : > { %6171 = vmatmul.mubr.bf16.gmra.mrb[108].mxu1 %v8491_v60  ;;  %v2929_v60 = vld [vmem:[#allocation2 + $0x78] sm:$0xff] }
 0x296   : > { %6174 = vmatprep.mubr.bf16.mxu1 %v8507_v2  ;;  %5827 = vmatpush3.bf16.msra.mxu1 %v6713_v7  ;;  %v2933_v2 = vld [vmem:[#allocation2 + $0x98] sm:$0xff] }
 0x297   : > { %3774 = vmatmul.mubr.bf16.gmra.mrb[236].mxu0 %v2923_v17  ;;  %5828 = vmatprep.subr.bf16.mxu1 %v6714_v6 }
 0x298   : > { %3781 = vmatprep.mubr.bf16.mxu0 %v2927_v22 }
 0x29a   : > { %5829 = vmatpush3.bf16.msra.mxu1 %v6715_v32 }
 0x29b   : > { %6190 = vmatprep.subr.bf16.mxu1 %v6716_v37 }
 0x29d   : > { %6175 = vmatmul.mubr.bf16.gmra.mrb[112].mxu1 %v8527_v4  ;;  %v8720_v4 = vld [vmem:[#allocation2 + $0xb0] sm:$0xff] }
 0x29e   : > { %6178 = vmatprep.mubr.bf16.mxu1 %v8547_v39  ;;  %v8724_v39 = vld [vmem:[#allocation2 + $0xa8] sm:$0xff] }
 0x29f   : > { %3782 = vmatmul.mubr.bf16.gmra.mrb[240].mxu0 %v2926_v58 }
 0x2a0   : > { %3789 = vmatprep.mubr.bf16.mxu0 %v2930_v61 }
 0x2a5   : > { %6179 = vmatmul.mubr.bf16.gmra.mrb[116].mxu1 %v8573_v29  ;;  %v8728_v29 = vld [vmem:[#allocation2 + $0xc8] sm:$0xff] }
 0x2a6   : > { %6182 = vmatprep.mubr.bf16.mxu1 %v8603_v20  ;;  %v6717_v20 = vld [vmem:[#allocation3 + $0x208] sm:$0xff]  }
 0x2a7   : > { %3790 = vmatmul.mubr.bf16.gmra.mrb[244].mxu0 %v2929_v60 }
 0x2a8   : > { %3797 = vmatprep.mubr.bf16.mxu0 %v2933_v2 }
 0x2ad   : > { %6183 = vmatmul.mubr.bf16.gmra.mrb[120].mxu1 %v8625_v47  ;;  %v8731_v47 = vld [vmem:[#allocation2 + $0xc0] sm:$0xff] }
 0x2ae   : > { %6186 = vmatprep.mubr.bf16.mxu1 %v8653_v13  ;;  %v8734_v13 = vld [vmem:[#allocation2 + $0xe0] sm:$0xff] }
 0x2af   : > { %3798 = vmatmul.mubr.bf16.gmra.mrb[248].mxu0 %v8716_v50 }
 0x2b0   : > { %3805 = vmatprep.mubr.bf16.mxu0 %v8720_v4 }
 0x2b5   : > { %6187 = vmatmul.mubr.bf16.gmra.mrb[124].mxu1 %v8673_v23  ;;  %v6718_v23 = vld [vmem:[#allocation3 + $0x210] sm:$0xff]  }
 0x2b6   : > { %4312 = vmatprep.mubr.bf16.mxu1 %v2921_v44 }
 0x2b7   : > { %3806 = vmatmul.mubr.bf16.gmra.mrb[252].mxu0 %v8724_v39 }
 0x2b8   : > { %3813 = vmatprep.mubr.bf16.mxu0 %v8728_v29 }
 0x2bd   : > { %4313 = vmatmul.mubr.bf16.vlgmr.msra.gmra.mrb[128].mxu1 %v2920_v33 }
 0x2be   : > { %4320 = vmatprep.mubr.bf16.mxu1 %v2924_v53  ;;  %6191 = vmatpush3.bf16.msra.mxu1 %v6716_v37 }
 0x2bf   : > { %3814 = vmatmul.mubr.bf16.gmra.mrb[0].mxu0 %v8731_v47  ;;  %6192 = vmatprep.subr.bf16.mxu1 %v6717_v20 }
 0x2c0   : > { %3821 = vmatprep.mubr.bf16.mxu0 %v8734_v13 }
 0x2c2   : > { %6193 = vmatpush3.bf16.msra.mxu1 %v6717_v20 }
 0x2c3   : > { %6194 = vmatprep.subr.bf16.mxu1 %v6718_v23 }
 0x2c5   : > { %4321 = vmatmul.mubr.bf16.gmra.mrb[132].mxu1 %v2923_v17  ;;  %v4064_v17 = vld [vmem:[#allocation2 + $0xf8] sm:$0xff] }
 0x2c6   : > { %4328 = vmatprep.mubr.bf16.mxu1 %v2927_v22  ;;  %6195 = vmatpush3.bf16.msra.mxu1 %v6718_v23 }
 0x2c7   : > { %3822 = vmatmul.mubr.bf16.gmra.mrb[4].mxu0 %v8737_v31  ;;  %6196 = vmatprep.subr.bf16.mxu1 %v6719_v45 }
 0x2c8   : > { %3829 = vmatprep.mubr.bf16.mxu0 %v8519_v41 }
 0x2ca   : > { %6197 = vmatpush3.bf16.msra.mxu1 %v6719_v45  ;;  %v4070_v45 = vld [vmem:[#allocation2 + $0x128] sm:$0xff] }
 0x2cb   : > { %6198 = vmatprep.subr.bf16.mxu1 %v6720_v5 }
 0x2cd   : > { %4329 = vmatmul.mubr.bf16.gmra.mrb[136].mxu1 %v2926_v58 }
 0x2ce   : > { %4336 = vmatprep.mubr.bf16.mxu1 %v2930_v61  ;;  %6199 = vmatpush3.bf16.msra.mxu1 %v6720_v5 }
 0x2cf   : > { %3830 = vmatmul.mubr.bf16.gmra.mrb[8].mxu0 %v8543_v21  ;;  %6200 = vmatprep.subr.bf16.mxu1 %v6721_v11 }
 0x2d0   : > { %3837 = vmatprep.mubr.bf16.mxu0 %v8549_v10  ;;  %v5558_v43 = vpop.f32.mrb[160].mxu0 }
 0x2d1   : > { %v5559_v15 = vpop.f32.mrb[161].mxu0 }
 0x2d2   : > { %v8743_v38 = vadd.f32 %v5559_v15, %v5558_v43  ;;  %v5561_v41 = vpop.f32.mrb[162].mxu0  ;;  %6201 = vmatpush3.bf16.msra.mxu1 %v6721_v11  ;;  %v4069_v15 = vld [vmem:[#allocation2 + $0x120] sm:$0xff] }
 0x2d3   : > { %v5562_v55 = vpop.f32.mrb[163].mxu0  ;;  %6202 = vmatprep.subr.bf16.mxu1 %v6722_v46 }
 0x2d4   : > { %v8745_v3 = vadd.f32 %v5562_v55, %v5561_v41  ;;  %v4073_v55 = vld [vmem:[#allocation2 + $0x140] sm:$0xff] }
 0x2d5   : > { %4337 = vmatmul.mubr.bf16.gmra.mrb[140].mxu1 %v2929_v60  ;;  %v4063_v60 = vld [vmem:[#allocation2 + $0xf0] sm:$0xff] }
 0x2d6   : > { %4344 = vmatprep.mubr.bf16.mxu1 %v2933_v2  ;;  %6203 = vmatpush3.bf16.msra.mxu1 %v6722_v46 }
 0x2d7   : > { %3838 = vmatmul.mubr.bf16.gmra.mrb[12].mxu0 %v8569_v51  ;;  %6204 = vmatprep.subr.bf16.mxu1 %v6723_v36 }
 0x2d8   : > { %3845 = vmatprep.mubr.bf16.mxu0 %v8579_v8  ;;  %v5564_v21 = vpop.f32.mrb[164].mxu0 }
 0x2d9   : > { %v5565_v10 = vpop.f32.mrb[165].mxu0 }
 0x2da   : > { %v8749_v52 = vadd.f32 %v5565_v10, %v5564_v21  ;;  %v5567_v48 = vpop.f32.mrb[166].mxu0  ;;  %6205 = vmatpush3.bf16.msra.mxu1 %v6723_v36 }
 0x2db   : > { %v5568_v34 = vpop.f32.mrb[167].mxu0 }
 0x2dc   : > { %v8751_v16 = vadd.f32 %v5568_v34, %v5567_v48 }
 0x2dd   : > { %4345 = vmatmul.mubr.bf16.gmra.mrb[144].mxu1 %v8716_v50  ;;  %v4067_v50 = vld [vmem:[#allocation2 + $0x110] sm:$0xff] }
 0x2de   : > { %4352 = vmatprep.mubr.bf16.mxu1 %v8720_v4 }
 0x2df   : > { %3846 = vmatmul.mubr.bf16.gmra.mrb[16].mxu0 %v8599_v28 }
 0x2e0   : > { %3853 = vmatprep.mubr.bf16.mxu0 %v8593_v57 }
 0x2e1   : > { %v5570_v51 = vpop.f32.mrb[168].mxu0 }
 0x2e2   : > { %v5571_v8 = vpop.f32.mrb[169].mxu0 }
 0x2e3   : > { %v8757_v9 = vadd.f32 %v5571_v8, %v5570_v51  ;;  %v5573_v63 = vpop.f32.mrb[170].mxu0  ;;  %v4072_v51 = vld [vmem:[#allocation2 + $0x138] sm:$0xff] }
 0x2e4   : > { %v5574_v44 = vpop.f32.mrb[171].mxu0 }
 0x2e5   : > { %v8759_v12 = vadd.f32 %v5574_v44, %v5573_v63  ;;  %4353 = vmatmul.mubr.bf16.gmra.mrb[148].mxu1 %v8724_v39 }
 0x2e6   : > { %4360 = vmatprep.mubr.bf16.mxu1 %v8728_v29 }
 0x2e7   : > { %3854 = vmatmul.mubr.bf16.gmra.mrb[20].mxu0 %v8621_v42 }
 0x2e8   : > { %3861 = vmatprep.mubr.bf16.mxu0 %v8627_v14 }
 0x2e9   : > { %v5576_v28 = vpop.f32.mrb[172].mxu0 }
 0x2ea   : > { %v5577_v40 = vpop.f32.mrb[173].mxu0 }
 0x2eb   : > { %v8765_v0 = vadd.f32 %v5577_v40, %v5576_v28  ;;  %v5579_v57 = vpop.f32.mrb[174].mxu0 }
 0x2ec   : > { %v5580_v1 = vpop.f32.mrb[175].mxu0 }
 0x2ed   : > { %v8767_v33 = vadd.f32 %v5580_v1, %v5579_v57  ;;  %4361 = vmatmul.mubr.bf16.gmra.mrb[152].mxu1 %v8731_v47 }
 0x2ee   : > { %4368 = vmatprep.mubr.bf16.mxu1 %v8734_v13  ;;  %v4066_v13 = vld [vmem:[#allocation2 + $0x108] sm:$0xff] }
 0x2ef   : > { %3862 = vmatmul.mubr.bf16.gmra.mrb[24].mxu0 %v8649_v18 }
 0x2f0   : > { %3869 = vmatprep.mubr.bf16.mxu0 %v8658_v25 }
 0x2f2   : > { %v5582_v42 = vpop.f32.mrb[176].mxu0 }
 0x2f3   : > { %v5583_v53 = vpop.f32.mrb[177].mxu0 }
 0x2f4   : > { %v8773_v35 = vadd.f32 %v5583_v53, %v5582_v42  ;;  %v5585_v59 = vpop.f32.mrb[178].mxu0 }
 0x2f5   : > { %v5586_v7 = vpop.f32.mrb[179].mxu0  ;;  %4369 = vmatmul.mubr.bf16.gmra.mrb[156].mxu1 %v8737_v31 }
 0x2f6   : > { %v8775_v6 = vadd.f32 %v5586_v7, %v5585_v59  ;;  %4376 = vmatprep.mubr.bf16.mxu1 %v4064_v17 }
 0x2f7   : > { %3870 = vmatmul.mubr.bf16.gmra.mrb[28].mxu0 %v8669_v24 }
 0x2fa   : > { %v5588_v22 = vpop.f32.mrb[180].mxu0 }
 0x2fb   : > { %v5589_v32 = vpop.f32.mrb[181].mxu0 }
 0x2fc   : > { %v8779_v37 = vadd.f32 %v5589_v32, %v5588_v22  ;;  %v5591_v58 = vpop.f32.mrb[182].mxu0 }
 0x2fd   : > { %v5592_v61 = vpop.f32.mrb[183].mxu0  ;;  %4377 = vmatmul.mubr.bf16.gmra.mrb[160].mxu1 %v4063_v60 }
 0x2fe   : > { %v8781_v2 = vadd.f32 %v5592_v61, %v5591_v58  ;;  %4384 = vmatprep.mubr.bf16.mxu1 %v4067_v50 }
 0x302   : > { %v5594_v4 = vpop.f32.mrb[184].mxu0 }
 0x303   : > { %v5595_v39 = vpop.f32.mrb[185].mxu0 }
 0x304   : > { %v8783_v29 = vadd.f32 %v5595_v39, %v5594_v4  ;;  %v5597_v20 = vpop.f32.mrb[186].mxu0 }
 0x305   : > { %v5598_v47 = vpop.f32.mrb[187].mxu0  ;;  %4385 = vmatmul.mubr.bf16.gmra.mrb[164].mxu1 %v4066_v13 }
 0x306   : > { %v8785_v23 = vadd.f32 %v5598_v47, %v5597_v20  ;;  %4392 = vmatprep.mubr.bf16.mxu1 %v4070_v45 }
 0x30a   : > { %v5600_v31 = vpop.f32.mrb[188].mxu0 }
 0x30b   : > { %v5601_v5 = vpop.f32.mrb[189].mxu0 }
 0x30c   : > { %v8787_v11 = vadd.f32 %v5601_v5, %v5600_v31  ;;  %v5603_v43 = vpop.f32.mrb[190].mxu0 }
 0x30d   : > { %v5604_v46 = vpop.f32.mrb[191].mxu0  ;;  %4393 = vmatmul.mubr.bf16.gmra.mrb[168].mxu1 %v4069_v15 }
 0x30e   : > { %v8789_v41 = vadd.f32 %v5604_v46, %v5603_v43  ;;  %4400 = vmatprep.mubr.bf16.mxu1 %v4073_v55 }
 0x312   : > { %v5606_v36 = vpop.f32.mrb[192].mxu0 }
 0x313   : > { %v5607_v21 = vpop.f32.mrb[193].mxu0 }
 0x314   : > { %v8791_v10 = vadd.f32 %v5607_v21, %v5606_v36  ;;  %v5609_v48 = vpop.f32.mrb[194].mxu0 }
 0x315   : > { %v5610_v34 = vpop.f32.mrb[195].mxu0  ;;  %4401 = vmatmul.mubr.bf16.gmra.mrb[172].mxu1 %v4072_v51  ;;  %v4056_v51 = vld [vmem:[#allocation2 + $0xb8] sm:$0xff] }
 0x316   : > { %v8793_v8 = vadd.f32 %v5610_v34, %v5609_v48  ;;  %4408 = vmatprep.mubr.bf16.mxu1 %v8627_v14 }
 0x31a   : > { %v5612_v63 = vpop.f32.mrb[196].mxu0 }
 0x31b   : > { %v5613_v44 = vpop.f32.mrb[197].mxu0 }
 0x31c   : > { %v8796_v28 = vadd.f32 %v5613_v44, %v5612_v63  ;;  %v5615_v40 = vpop.f32.mrb[198].mxu0  ;;  %v4059_v63 = vld [vmem:[#allocation2 + $0xd0] sm:$0xff] }
 0x31d   : > { %v5616_v57 = vpop.f32.mrb[199].mxu0  ;;  %4409 = vmatmul.mubr.bf16.gmra.mrb[176].mxu1 %v8649_v18 }
 0x31e   : > { %v8798_v1 = vadd.f32 %v5616_v57, %v5615_v40  ;;  %4416 = vmatprep.mubr.bf16.mxu1 %v8658_v25 }
 0x322   : > { %v5618_v42 = vpop.f32.mrb[200].mxu0 }
 0x323   : > { %v5619_v53 = vpop.f32.mrb[201].mxu0 }
 0x324   : > { %v8802_v59 = vadd.f32 %v5619_v53, %v5618_v42  ;;  %v5621_v7 = vpop.f32.mrb[202].mxu0 }
 0x325   : > { %v5622_v17 = vpop.f32.mrb[203].mxu0  ;;  %4417 = vmatmul.mubr.bf16.gmra.mrb[180].mxu1 %v8669_v24 }
 0x326   : > { %v8804_v22 = vadd.f32 %v5622_v17, %v5621_v7  ;;  %4424 = vmatprep.mubr.bf16.mxu1 %v8665_v19  ;;  %v4065_v17 = vld [vmem:[#allocation2 + $0x100] sm:$0xff] }
 0x32a   : > { %v5624_v14 = vpop.f32.mrb[204].mxu0 }
 0x32b   : > { %v5625_v32 = vpop.f32.mrb[205].mxu0 }
 0x32c   : > { %v8808_v58 = vadd.f32 %v5625_v32, %v5624_v14  ;;  %v5627_v61 = vpop.f32.mrb[206].mxu0 }
 0x32d   : > { %v5628_v18 = vpop.f32.mrb[207].mxu0  ;;  %4425 = vmatmul.mubr.bf16.gmra.mrb[184].mxu1 %v8684_v49 }
 0x32e   : > { %v8810_v60 = vadd.f32 %v5628_v18, %v5627_v61  ;;  %4432 = vmatprep.mubr.bf16.mxu1 %v8690_v56 }
 0x332   : > { %v5630_v25 = vpop.f32.mrb[208].mxu0 }
 0x333   : > { %v5631_v50 = vpop.f32.mrb[209].mxu0 }
 0x334   : > { %v8814_v4 = vadd.f32 %v5631_v50, %v5630_v25  ;;  %v5633_v39 = vpop.f32.mrb[210].mxu0 }
 0x335   : > { %v5634_v24 = vpop.f32.mrb[211].mxu0  ;;  %4433 = vmatmul.mubr.bf16.gmra.mrb[188].mxu1 %v8690_v56 }
 0x336   : > { %v8816_v20 = vadd.f32 %v5634_v24, %v5633_v39  ;;  %6206 = vmatprep.mubr.bf16.mxu1 %v8694_v62  ;;  %v4068_v39 = vld [vmem:[#allocation2 + $0x118] sm:$0xff] }
 0x33a   : > { %v5636_v19 = vpop.f32.mrb[212].mxu0 }
 0x33b   : > { %v5637_v47 = vpop.f32.mrb[213].mxu0 }
 0x33c   : > { %v8820_v13 = vadd.f32 %v5637_v47, %v5636_v19  ;;  %v5639_v45 = vpop.f32.mrb[214].mxu0 }
 0x33d   : > { %v5640_v49 = vpop.f32.mrb[215].mxu0  ;;  %6207 = vmatmul.mubr.bf16.vlgmr.msra.gmra.mrb[96].mxu1 %v8698_v27 }
 0x33e   : > { %v8822_v31 = vadd.f32 %v5640_v49, %v5639_v45  ;;  %6210 = vmatprep.mubr.bf16.mxu1 %v8701_v26 }
 0x342   : > { %v5642_v5 = vpop.f32.mrb[216].mxu0 }
 0x343   : > { %v5643_v43 = vpop.f32.mrb[217].mxu0 }
 0x344   : > { %v8826_v46 = vadd.f32 %v5643_v43, %v5642_v5  ;;  %v5645_v15 = vpop.f32.mrb[218].mxu0 }
 0x345   : > { %v5646_v55 = vpop.f32.mrb[219].mxu0  ;;  %6211 = vmatmul.mubr.bf16.gmra.mrb[100].mxu1 %v8704_v54  ;;  %v4062_v54 = vld [vmem:[#allocation2 + $0xe8] sm:$0xff] }
 0x346   : > { %v8828_v36 = vadd.f32 %v5646_v55, %v5645_v15  ;;  %6214 = vmatprep.mubr.bf16.mxu1 %v8707_v30  ;;  %v4074_v15 = vld [vmem:[#allocation2 + $0x148] sm:$0xff] }
 0x34a   : > { %v5648_v62 = vpop.f32.mrb[220].mxu0 }
 0x34b   : > { %v5649_v21 = vpop.f32.mrb[221].mxu0 }
 0x34c   : > { %v8832_v48 = vadd.f32 %v5649_v21, %v5648_v62  ;;  %v5651_v34 = vpop.f32.mrb[222].mxu0 }
 0x34d   : > { %v5652_v27 = vpop.f32.mrb[223].mxu0  ;;  %6215 = vmatmul.mubr.bf16.gmra.mrb[104].mxu1 %v4056_v51 }
 0x34e   : > { %v8834_v26 = vadd.f32 %v5652_v27, %v5651_v34  ;;  %6218 = vmatprep.mubr.bf16.mxu1 %v4059_v63 }
 0x352   : > { %v5694_v44 = vpop.f32.mrb[224].mxu0 }
 0x353   : > { %v5695_v40 = vpop.f32.mrb[225].mxu0 }
 0x354   : > { %v5696_v57 = vadd.f32 %v5695_v40, %v5694_v44  ;;  %v5697_v42 = vpop.f32.mrb[226].mxu0  ;;  %v4080_v44 = vld [vmem:[#allocation2 + $0x178] sm:$0xff] }
 0x355   : > { %v5698_v53 = vpop.f32.mrb[227].mxu0  ;;  %6219 = vmatmul.mubr.bf16.gmra.mrb[108].mxu1 %v4062_v54 }
 0x356   : > { %v8837_v30 = vadd.f32 %v5696_v57, %v8743_v38  ;;  %v5699_v7 = vadd.f32 %v5698_v53, %v5697_v42  ;;  %6222 = vmatprep.mubr.bf16.mxu1 %v4065_v17  ;;  %v4071_v38 = vld [vmem:[#allocation2 + $0x130] sm:$0xff] }
 0x358   : > { %v8840_v14 = vadd.f32 %v5699_v7, %v8745_v3 }
 0x35a   : > { %v5700_v32 = vpop.f32.mrb[228].mxu0 }
 0x35b   : > { %v5701_v61 = vpop.f32.mrb[229].mxu0 }
 0x35c   : > { %v5702_v18 = vadd.f32 %v5701_v61, %v5700_v32  ;;  %v5703_v25 = vpop.f32.mrb[230].mxu0 }
 0x35d   : > { %v5704_v50 = vpop.f32.mrb[231].mxu0  ;;  %6223 = vmatmul.mubr.bf16.gmra.mrb[112].mxu1 %v4068_v39 }
 0x35e   : > { %v8843_v24 = vadd.f32 %v5702_v18, %v8749_v52  ;;  %v5705_v19 = vadd.f32 %v5704_v50, %v5703_v25  ;;  %6226 = vmatprep.mubr.bf16.mxu1 %v4071_v38  ;;  %v4077_v52 = vld [vmem:[#allocation2 + $0x160] sm:$0xff] }
 0x360   : > { %v8846_v47 = vadd.f32 %v5705_v19, %v8751_v16 }
 0x362   : > { %v5706_v45 = vpop.f32.mrb[232].mxu0 }
 0x363   : > { %v5707_v49 = vpop.f32.mrb[233].mxu0 }
 0x364   : > { %v5708_v3 = vadd.f32 %v5707_v49, %v5706_v45  ;;  %v5709_v5 = vpop.f32.mrb[234].mxu0 }
 0x365   : > { %v5710_v43 = vpop.f32.mrb[235].mxu0  ;;  %6227 = vmatmul.mubr.bf16.gmra.mrb[116].mxu1 %v4074_v15 }
 0x366   : > { %v8849_v55 = vadd.f32 %v5708_v3, %v8757_v9  ;;  %v5711_v62 = vadd.f32 %v5710_v43, %v5709_v5  ;;  %6230 = vmatprep.mubr.bf16.mxu1 %v4077_v52  ;;  %v4083_v9 = vld [vmem:[#allocation2 + $0x190] sm:$0xff] }
 0x368   : > { %v8852_v21 = vadd.f32 %v5711_v62, %v8759_v12 }
 0x36a   : > { %v5712_v34 = vpop.f32.mrb[236].mxu0 }
 0x36b   : > { %v5713_v27 = vpop.f32.mrb[237].mxu0 }
 0x36c   : > { %v5714_v16 = vadd.f32 %v5713_v27, %v5712_v34  ;;  %v5715_v51 = vpop.f32.mrb[238].mxu0 }
 0x36d   : > { %v5716_v63 = vpop.f32.mrb[239].mxu0  ;;  %6231 = vmatmul.mubr.bf16.gmra.mrb[120].mxu1 %v4080_v44 }
 0x36e   : > { %v8855_v40 = vadd.f32 %v5714_v16, %v8765_v0  ;;  %v5717_v57 = vadd.f32 %v5716_v63, %v5715_v51  ;;  %6234 = vmatprep.mubr.bf16.mxu1 %v4083_v9 }
 0x370   : > { %v8858_v42 = vadd.f32 %v5717_v57, %v8767_v33 }
 0x372   : > { %v5718_v53 = vpop.f32.mrb[240].mxu0 }
 0x373   : > { %v5719_v54 = vpop.f32.mrb[241].mxu0 }
 0x374   : > { %v5720_v12 = vadd.f32 %v5719_v54, %v5718_v53  ;;  %v5721_v7 = vpop.f32.mrb[242].mxu0 }
 0x375   : > { %v5722_v17 = vpop.f32.mrb[243].mxu0  ;;  %6235 = vmatmul.mubr.bf16.gmra.mrb[124].mxu1 %v8690_v56 }
 0x376   : > { %v8861_v32 = vadd.f32 %v5720_v12, %v8773_v35  ;;  %v5723_v61 = vadd.f32 %v5722_v17, %v5721_v7 }
 0x378   : > { %v8865_v0 = vadd.f32 %v5723_v61, %v8775_v6 }
 0x37a   : > { %v5724_v18 = vpop.f32.mrb[244].mxu0 }
 0x37b   : > { %v5725_v25 = vpop.f32.mrb[245].mxu0 }
 0x37c   : > { %v5726_v50 = vadd.f32 %v5725_v25, %v5724_v18  ;;  %v5727_v39 = vpop.f32.mrb[246].mxu0 }
 0x37d   : > { %v5728_v33 = vpop.f32.mrb[247].mxu0 }
 0x37e   : > { %v8868_v19 = vadd.f32 %v5726_v50, %v8779_v37  ;;  %v5729_v38 = vadd.f32 %v5728_v33, %v5727_v39 }
 0x380   : > { %v8871_v45 = vadd.f32 %v5729_v38, %v8781_v2 }
 0x382   : > { %v5730_v35 = vpop.f32.mrb[248].mxu0 }
 0x383   : > { %v5731_v49 = vpop.f32.mrb[249].mxu0 }
 0x384   : > { %v5732_v3 = vadd.f32 %v5731_v49, %v5730_v35  ;;  %v5733_v5 = vpop.f32.mrb[250].mxu0 }
 0x385   : > { %v5734_v56 = vpop.f32.mrb[251].mxu0 }
 0x386   : > { %v8874_v6 = vadd.f32 %v5732_v3, %v8783_v29  ;;  %v5735_v43 = vadd.f32 %v5734_v56, %v5733_v5 }
 0x388   : > { %v8877_v15 = vadd.f32 %v5735_v43, %v8785_v23 }
 0x38a   : > { %v5736_v62 = vpop.f32.mrb[252].mxu0 }
 0x38b   : > { %v5737_v52 = vpop.f32.mrb[253].mxu0 }
 0x38c   : > { %v5738_v37 = vadd.f32 %v5737_v52, %v5736_v62  ;;  %v5739_v34 = vpop.f32.mrb[254].mxu0 }
 0x38d   : > { %v5740_v27 = vpop.f32.mrb[255].mxu0 }
 0x38e   : > { %v8880_v2 = vadd.f32 %v5738_v37, %v8787_v11  ;;  %v5741_v16 = vadd.f32 %v5740_v27, %v5739_v34 }
 0x390   : > { %v8883_v51 = vadd.f32 %v5741_v16, %v8789_v41  ;;  %v5830_v63 = vpop.f32.mrb[128].mxu1 }
 0x391   : > { %v5831_v29 = vpop.f32.mrb[129].mxu1 }
 0x392   : > { %v5742_v44 = vpop.f32.mrb[0].mxu0  ;;  %v5832_v9 = vadd.f32 %v5831_v29, %v5830_v63  ;;  %v5833_v53 = vpop.f32.mrb[130].mxu1 }
 0x393   : > { %v5743_v57 = vpop.f32.mrb[1].mxu0  ;;  %v5834_v12 = vpop.f32.mrb[131].mxu1 }
 0x394   : > { %v5744_v23 = vadd.f32 %v5743_v57, %v5742_v44  ;;  %v5745_v54 = vpop.f32.mrb[2].mxu0  ;;  %v5835_v17 = vadd.f32 %v5834_v12, %v5833_v53  ;;  %v8886_v61 = vadd.f32 %v8837_v30, %v5832_v9 }
 0x395   : > { %v5746_v7 = vpop.f32.mrb[3].mxu0 }
 0x396   : > { %v8889_v11 = vadd.f32 %v5744_v23, %v8791_v10  ;;  %v5747_v18 = vadd.f32 %v5746_v7, %v5745_v54  ;;  %v8892_v41 = vadd.f32 %v8840_v14, %v5835_v17 }
 0x398   : > { %v8895_v25 = vadd.f32 %v5747_v18, %v8793_v8  ;;  %v5836_v50 = vpop.f32.mrb[132].mxu1 }
 0x399   : > { %v5837_v33 = vpop.f32.mrb[133].mxu1 }
 0x39a   : > { %v5748_v39 = vpop.f32.mrb[4].mxu0  ;;  %v5838_v35 = vadd.f32 %v5837_v33, %v5836_v50  ;;  %v5839_v49 = vpop.f32.mrb[134].mxu1 }
 0x39b   : > { %v5749_v38 = vpop.f32.mrb[5].mxu0  ;;  %v5840_v30 = vpop.f32.mrb[135].mxu1 }
 0x39c   : > { %v5750_v3 = vadd.f32 %v5749_v38, %v5748_v39  ;;  %v5751_v5 = vpop.f32.mrb[6].mxu0  ;;  %v5841_v43 = vadd.f32 %v5840_v30, %v5839_v49  ;;  %v8898_v10 = vadd.f32 %v8843_v24, %v5838_v35 }
 0x39d   : > { %v5752_v56 = vpop.f32.mrb[7].mxu0 }
 0x39e   : > { %v8901_v14 = vadd.f32 %v5750_v3, %v8796_v28  ;;  %v5753_v62 = vadd.f32 %v5752_v56, %v5751_v5  ;;  %v8904_v8 = vadd.f32 %v8846_v47, %v5841_v43 }
 0x3a0   : > { %v8907_v52 = vadd.f32 %v5753_v62, %v8798_v1  ;;  %v5842_v37 = vpop.f32.mrb[136].mxu1 }
 0x3a1   : > { %v5843_v27 = vpop.f32.mrb[137].mxu1 }
 0x3a2   : > { %v5754_v34 = vpop.f32.mrb[8].mxu0  ;;  %v5844_v63 = vadd.f32 %v5843_v27, %v5842_v37  ;;  %v5845_v44 = vpop.f32.mrb[138].mxu1 }
 0x3a3   : > { %v5755_v16 = vpop.f32.mrb[9].mxu0  ;;  %v5846_v24 = vpop.f32.mrb[139].mxu1 }
 0x3a4   : > { %v5756_v29 = vadd.f32 %v5755_v16, %v5754_v34  ;;  %v5757_v57 = vpop.f32.mrb[10].mxu0  ;;  %v5847_v53 = vadd.f32 %v5846_v24, %v5845_v44  ;;  %v8910_v28 = vadd.f32 %v8849_v55, %v5844_v63 }
 0x3a5   : > { %v5758_v9 = vpop.f32.mrb[11].mxu0 }
 0x3a6   : > { %v8913_v47 = vadd.f32 %v5756_v29, %v8802_v59  ;;  %v5759_v23 = vadd.f32 %v5758_v9, %v5757_v57  ;;  %v8916_v1 = vadd.f32 %v8852_v21, %v5847_v53 }
 0x3a8   : > { %v8919_v54 = vadd.f32 %v5759_v23, %v8804_v22  ;;  %v5848_v12 = vpop.f32.mrb[140].mxu1 }
 0x3a9   : > { %v5849_v17 = vpop.f32.mrb[141].mxu1 }
 0x3aa   : > { %v5760_v7 = vpop.f32.mrb[12].mxu0  ;;  %v5850_v50 = vadd.f32 %v5849_v17, %v5848_v12  ;;  %v5851_v39 = vpop.f32.mrb[142].mxu1 }
 0x3ab   : > { %v5761_v18 = vpop.f32.mrb[13].mxu0  ;;  %v5852_v55 = vpop.f32.mrb[143].mxu1 }
 0x3ac   : > { %v5762_v33 = vadd.f32 %v5761_v18, %v5760_v7  ;;  %v5763_v38 = vpop.f32.mrb[14].mxu0  ;;  %v5853_v49 = vadd.f32 %v5852_v55, %v5851_v39  ;;  %v8922_v59 = vadd.f32 %v8855_v40, %v5850_v50 }
 0x3ad   : > { %v5764_v35 = vpop.f32.mrb[15].mxu0 }
 0x3ae   : > { %v8925_v21 = vadd.f32 %v5762_v33, %v8808_v58  ;;  %v5765_v3 = vadd.f32 %v5764_v35, %v5763_v38  ;;  %v8928_v22 = vadd.f32 %v8858_v42, %v5853_v49 }
 0x3b0   : > { %v8931_v5 = vadd.f32 %v5765_v3, %v8810_v60  ;;  %v5854_v30 = vpop.f32.mrb[144].mxu1 }
 0x3b1   : > { %v5855_v43 = vpop.f32.mrb[145].mxu1 }
 0x3b2   : > { %v5766_v56 = vpop.f32.mrb[16].mxu0  ;;  %v5856_v37 = vadd.f32 %v5855_v43, %v5854_v30  ;;  %v5857_v34 = vpop.f32.mrb[146].mxu1 }
 0x3b3   : > { %v5767_v62 = vpop.f32.mrb[17].mxu0  ;;  %v5858_v40 = vpop.f32.mrb[147].mxu1 }
 0x3b4   : > { %v5768_v27 = vadd.f32 %v5767_v62, %v5766_v56  ;;  %v5769_v16 = vpop.f32.mrb[18].mxu0  ;;  %v5859_v44 = vadd.f32 %v5858_v40, %v5857_v34  ;;  %v8934_v58 = vadd.f32 %v8861_v32, %v5856_v37 }
 0x3b5   : > { %v5770_v63 = vpop.f32.mrb[19].mxu0 }
 0x3b6   : > { %v8937_v42 = vadd.f32 %v5768_v27, %v8814_v4  ;;  %v5771_v29 = vadd.f32 %v5770_v63, %v5769_v16  ;;  %v8940_v60 = vadd.f32 %v8865_v0, %v5859_v44 }
 0x3b8   : > { %v8943_v57 = vadd.f32 %v5771_v29, %v8816_v20  ;;  %v5860_v24 = vpop.f32.mrb[148].mxu1 }
 0x3b9   : > { %v5861_v53 = vpop.f32.mrb[149].mxu1 }
 0x3ba   : > { %v5772_v9 = vpop.f32.mrb[20].mxu0  ;;  %v5862_v12 = vadd.f32 %v5861_v53, %v5860_v24  ;;  %v5863_v7 = vpop.f32.mrb[150].mxu1 }
 0x3bb   : > { %v5773_v23 = vpop.f32.mrb[21].mxu0  ;;  %v5864_v32 = vpop.f32.mrb[151].mxu1 }
 0x3bc   : > { %v5774_v17 = vadd.f32 %v5773_v23, %v5772_v9  ;;  %v5775_v18 = vpop.f32.mrb[22].mxu0  ;;  %v5865_v39 = vadd.f32 %v5864_v32, %v5863_v7  ;;  %v8946_v4 = vadd.f32 %v8868_v19, %v5862_v12 }
 0x3bd   : > { %v5776_v50 = vpop.f32.mrb[23].mxu0 }
 0x3be   : > { %v8949_v0 = vadd.f32 %v5774_v17, %v8820_v13  ;;  %v5777_v33 = vadd.f32 %v5776_v50, %v5775_v18  ;;  %v8952_v20 = vadd.f32 %v8871_v45, %v5865_v39 }
 0x3c0   : > { %v8955_v38 = vadd.f32 %v5777_v33, %v8822_v31  ;;  %v5866_v55 = vpop.f32.mrb[152].mxu1 }
 0x3c1   : > { %v5867_v49 = vpop.f32.mrb[153].mxu1 }
 0x3c2   : > { %v5778_v35 = vpop.f32.mrb[24].mxu0  ;;  %v5868_v30 = vadd.f32 %v5867_v49, %v5866_v55  ;;  %v5869_v56 = vpop.f32.mrb[154].mxu1 }
 0x3c3   : > { %v5779_v3 = vpop.f32.mrb[25].mxu0  ;;  %v5870_v19 = vpop.f32.mrb[155].mxu1 }
 0x3c4   : > { %v5780_v43 = vadd.f32 %v5779_v3, %v5778_v35  ;;  %v5781_v62 = vpop.f32.mrb[26].mxu0  ;;  %v5871_v34 = vadd.f32 %v5870_v19, %v5869_v56  ;;  %v8958_v13 = vadd.f32 %v8874_v6, %v5868_v30 }
 0x3c5   : > { %v5782_v37 = vpop.f32.mrb[27].mxu0 }
 0x3c6   : > { %v8961_v45 = vadd.f32 %v5780_v43, %v8826_v46  ;;  %v5783_v27 = vadd.f32 %v5782_v37, %v5781_v62  ;;  %v8964_v31 = vadd.f32 %v8877_v15, %v5871_v34 }
 0x3c8   : > { %v8967_v16 = vadd.f32 %v5783_v27, %v8828_v36  ;;  %v5872_v40 = vpop.f32.mrb[156].mxu1 }
 0x3c9   : > { %v5873_v44 = vpop.f32.mrb[157].mxu1 }
 0x3ca   : > { %v5784_v63 = vpop.f32.mrb[28].mxu0  ;;  %v5874_v24 = vadd.f32 %v5873_v44, %v5872_v40  ;;  %v5875_v9 = vpop.f32.mrb[158].mxu1 }
 0x3cb   : > { %v5785_v29 = vpop.f32.mrb[29].mxu0  ;;  %v5876_v6 = vpop.f32.mrb[159].mxu1 }
 0x3cc   : > { %v5786_v53 = vadd.f32 %v5785_v29, %v5784_v63  ;;  %v5787_v23 = vpop.f32.mrb[30].mxu0  ;;  %v5877_v7 = vadd.f32 %v5876_v6, %v5875_v9  ;;  %v8970_v46 = vadd.f32 %v8880_v2, %v5874_v24 }
 0x3cd   : > { %v5788_v12 = vpop.f32.mrb[31].mxu0 }
 0x3ce   : > { %v8973_v15 = vadd.f32 %v5786_v53, %v8832_v48  ;;  %v5789_v17 = vadd.f32 %v5788_v12, %v5787_v23  ;;  %v8976_v36 = vadd.f32 %v8883_v51, %v5877_v7 }
 0x3d0   : > { %v8979_v18 = vadd.f32 %v5789_v17, %v8834_v26  ;;  %v5878_v32 = vpop.f32.mrb[160].mxu1 }
 0x3d1   : > { %v5879_v50 = vpop.f32.mrb[161].mxu1 }
 0x3d2   : > { %v5880_v39 = vadd.f32 %v5879_v50, %v5878_v32  ;;  %v5881_v33 = vpop.f32.mrb[162].mxu1 }
 0x3d3   : > { %v5882_v55 = vpop.f32.mrb[163].mxu1 }
 0x3d4   : > { %v5883_v35 = vadd.f32 %v5882_v55, %v5881_v33  ;;  %v8982_v49 = vadd.f32 %v8889_v11, %v5880_v39 }
 0x3d6   : > { %v8985_v2 = vadd.f32 %v8895_v25, %v5883_v35 }
 0x3d8   : > { %v5884_v48 = vpop.f32.mrb[164].mxu1 }
 0x3d9   : > { %v5885_v3 = vpop.f32.mrb[165].mxu1 }
 0x3da   : > { %v5886_v30 = vadd.f32 %v5885_v3, %v5884_v48  ;;  %v5887_v51 = vpop.f32.mrb[166].mxu1 }
 0x3db   : > { %v5888_v56 = vpop.f32.mrb[167].mxu1 }
 0x3dc   : > { %v5889_v43 = vadd.f32 %v5888_v56, %v5887_v51  ;;  %v8988_v26 = vadd.f32 %v8901_v14, %v5886_v30 }
 0x3de   : > { %v8991_v62 = vadd.f32 %v8907_v52, %v5889_v43 }
 0x3e0   : > { %v5890_v19 = vpop.f32.mrb[168].mxu1 }
 0x3e1   : > { %v5891_v37 = vpop.f32.mrb[169].mxu1 }
 0x3e2   : > { %v5892_v34 = vadd.f32 %v5891_v37, %v5890_v19  ;;  %v5893_v11 = vpop.f32.mrb[170].mxu1 }
 0x3e3   : > { %v5894_v27 = vpop.f32.mrb[171].mxu1 }
 0x3e4   : > { %v5895_v40 = vadd.f32 %v5894_v27, %v5893_v11  ;;  %v8994_v25 = vadd.f32 %v8913_v47, %v5892_v34 }
 0x3e6   : > { %v8997_v63 = vadd.f32 %v8919_v54, %v5895_v40 }
 0x3e8   : > { %v5896_v44 = vpop.f32.mrb[172].mxu1 }
 0x3e9   : > { %v5897_v29 = vpop.f32.mrb[173].mxu1 }
 0x3ea   : > { %v5898_v24 = vadd.f32 %v5897_v29, %v5896_v44  ;;  %v5899_v14 = vpop.f32.mrb[174].mxu1 }
 0x3eb   : > { %v5900_v9 = vpop.f32.mrb[175].mxu1 }
 0x3ec   : > { %v5901_v53 = vadd.f32 %v5900_v9, %v5899_v14  ;;  %v9000_v52 = vadd.f32 %v8925_v21, %v5898_v24  ;;  %v9038_v9 = vld [vmem:[%s9247_s6] ss:$0 sm:$0xff] }
 0x3ee   : > { %v9003_v23 = vadd.f32 %v8931_v5, %v5901_v53 }
 0x3f0   : > { %v5902_v6 = vpop.f32.mrb[176].mxu1 }
 0x3f1   : > { %v5903_v12 = vpop.f32.mrb[177].mxu1 }
 0x3f2   : > { %v5904_v7 = vadd.f32 %v5903_v12, %v5902_v6  ;;  %v5905_v47 = vpop.f32.mrb[178].mxu1 }
 0x3f3   : > { %v5906_v17 = vpop.f32.mrb[179].mxu1 }
 0x3f4   : > { %v5907_v32 = vadd.f32 %v5906_v17, %v5905_v47  ;;  %v9006_v54 = vadd.f32 %v8937_v42, %v5904_v7 }
 0x3f6   : > { %v9009_v50 = vadd.f32 %v8943_v57, %v5907_v32 }
 0x3f8   : > { %v5908_v39 = vpop.f32.mrb[180].mxu1 }
 0x3f9   : > { %v5909_v33 = vpop.f32.mrb[181].mxu1 }
 0x3fa   : > { %v5910_v55 = vadd.f32 %v5909_v33, %v5908_v39  ;;  %v5911_v21 = vpop.f32.mrb[182].mxu1  ;;  %v9444_v33 = vld [vmem:[#allocation8_spill] sm:$0xff] }
 0x3fb   : > { %v5912_v35 = vpop.f32.mrb[183].mxu1 }
 0x3fc   : > { %v5913_v48 = vadd.f32 %v5912_v35, %v5911_v21  ;;  %v9012_v5 = vadd.f32 %v8949_v0, %v5910_v55 }
 0x3fe   : > { %v9015_v3 = vadd.f32 %v8955_v38, %v5913_v48 }
 0x400   : > { %v5914_v30 = vpop.f32.mrb[184].mxu1 }
 0x401   : > { %v5915_v51 = vpop.f32.mrb[185].mxu1 }
 0x402   : > { %v5916_v56 = vadd.f32 %v5915_v51, %v5914_v30  ;;  %v5917_v42 = vpop.f32.mrb[186].mxu1  ;;  %v9446_v30 = vld [vmem:[#allocation9_spill] sm:$0xff] }
 0x403   : > { %v5918_v43 = vpop.f32.mrb[187].mxu1 }
 0x404   : > { %v5919_v19 = vadd.f32 %v5918_v43, %v5917_v42  ;;  %v9018_v57 = vadd.f32 %v8961_v45, %v5916_v56  ;;  %v9032_v45 = vld [vmem:[%s9246_s5] ss:$0 sm:$0xff] }
 0x406   : > { %v9021_v37 = vadd.f32 %v8967_v16, %v5919_v19  ;;  %v9447_v19 = vld [vmem:[#allocation7_spill] sm:$0xff] }
 0x408   : > { %v5920_v34 = vpop.f32.mrb[188].mxu1 }
 0x409   : > { %v5921_v11 = vpop.f32.mrb[189].mxu1 }
 0x40a   : > { %v5922_v27 = vadd.f32 %v5921_v11, %v5920_v34  ;;  %v5923_v0 = vpop.f32.mrb[190].mxu1 }
 0x40b   : > { %v5924_v40 = vpop.f32.mrb[191].mxu1 }
 0x40c   : > { %v5925_v44 = vadd.f32 %v5924_v40, %v5923_v0  ;;  %v9024_v38 = vadd.f32 %v8973_v15, %v5922_v27 }
 0x40e   : > { %v9027_v29 = vadd.f32 %v8979_v18, %v5925_v44 }
 0x410   : > { %v6208_v24 = vpop.f32.mrb[96].mxu1 }
 0x411   : > { %v6368_v16 = vadd.f32 %v8898_v10, %v6208_v24  ;;  %v4475_v14 = vpop.f32.mrb[97].mxu1 }
 0x412   : > { %v6371_v15 = vadd.f32 %v8886_v61, %v4475_v14  ;;  %v6209_v53 = vpop.f32.mrb[98].mxu1 }
 0x413   : > { %v4643_v18 = vmul.f32 %v6368_v16, %v9032_v45  ;;  %v6374_v6 = vadd.f32 %v8904_v8, %v6209_v53  ;;  %v4478_v12 = vpop.f32.mrb[99].mxu1  ;;  %v9445_v8 = vld [vmem:[#allocation6_spill] sm:$0xff] }
 0x414   : > { %v4641_v7 = vmul.f32 %v6371_v15, %v9032_v45  ;;  %v6377_v47 = vadd.f32 %v8892_v41, %v4478_v12 }
 0x415   : > { %v4682_v10 = vadd.f32 %v9038_v9, %v4643_v18  ;;  %v4644_v17 = vmul.f32 %v6374_v6, %v9032_v45  ;;  %v9448_v18 = vld [vmem:[#allocation13_spill] sm:$0xff] }
 0x416   : > { %v4680_v32 = vadd.f32 %v9038_v9, %v4641_v7  ;;  %v4642_v39 = vmul.f32 %v6377_v47, %v9032_v45  ;;  %v9449_v7 = vld [vmem:[#allocation10_spill] sm:$0xff] }
 0x417   : > { %v4714_v61 = vadd.f32 %v4682_v10, %v9444_v33  ;;  %v4683_v55 = vadd.f32 %v9038_v9, %v4644_v17 }
 0x418   : > { %v4712_v41 = vadd.f32 %v4680_v32, %v9445_v8  ;;  %v4681_v21 = vadd.f32 %v9038_v9, %v4642_v39  ;;  %v6212_v35 = vpop.f32.mrb[100].mxu1  ;;  %v9450_v32 = vld [vmem:[#allocation14_spill] sm:$0xff]  ;;  %v9451_v8 = vld [vmem:[#allocation11_spill] sm:$0xff] }
 0x419   : > { %v4746_v48 = vmax.f32 %v4714_v61, 0.0  ;;  %v4715_v51 = vadd.f32 %v4683_v55, %v9446_v30  ;;  %v6380_v56 = vadd.f32 %v8922_v59, %v6212_v35  ;;  %v4491_v42 = vpop.f32.mrb[101].mxu1 }
 0x41a   : > { %v4744_v43 = vmax.f32 %v4712_v41, 0.0  ;;  %v4713_v34 = vadd.f32 %v4681_v21, %v9447_v19  ;;  %v6383_v11 = vadd.f32 %v8910_v28, %v4491_v42  ;;  %v6213_v27 = vpop.f32.mrb[102].mxu1 }
 0x41b   : > { %4778 = vst.msk [vmem:[%s9056_s18 + $0x10] sm:$0xff] %vm437_vm3, %v4746_v48  ;;  %v4747_v0 = vmax.f32 %v4715_v51, 0.0  ;;  %v4647_v40 = vmul.f32 %v6380_v56, %v9032_v45  ;;  %v6386_v44 = vadd.f32 %v8928_v22, %v6213_v27  ;;  %v4494_v24 = vpop.f32.mrb[103].mxu1 }
 0x41c   : > { %4776 = vst.msk [vmem:[%s9056_s18] sm:$0xff] %vm437_vm3, %v4744_v43  ;;  %v4745_v16 = vmax.f32 %v4713_v34, 0.0  ;;  %v4645_v59 = vmul.f32 %v6383_v11, %v9032_v45  ;;  %v6389_v14 = vadd.f32 %v8916_v1, %v4494_v24  ;;  %v9452_v11 = vld [vmem:[#allocation17_spill] sm:$0xff] }
 0x41d   : > { %4779 = vst.msk [vmem:[%s9056_s18 + $0x18] sm:$0xff] %vm437_vm3, %v4747_v0  ;;  %v4686_v28 = vadd.f32 %v9038_v9, %v4647_v40  ;;  %v4648_v15 = vmul.f32 %v6386_v44, %v9032_v45  ;;  %v9453_v40 = vld [vmem:[#allocation15_spill] sm:$0xff] }
 0x41e   : > { %4777 = vst.msk [vmem:[%s9056_s18 + $0x8] sm:$0xff] %vm437_vm3, %v4745_v16  ;;  %v4684_v53 = vadd.f32 %v9038_v9, %v4645_v59  ;;  %v4646_v22 = vmul.f32 %v6389_v14, %v9032_v45  ;;  %v9454_v59 = vld [vmem:[#allocation18_spill] sm:$0xff] }
 0x41f   : > { %v4718_v6 = vadd.f32 %v4686_v28, %v9448_v18  ;;  %v4687_v12 = vadd.f32 %v9038_v9, %v4648_v15 }
 0x420   : > { %v4716_v47 = vadd.f32 %v4684_v53, %v9449_v7  ;;  %v4685_v1 = vadd.f32 %v9038_v9, %v4646_v22  ;;  %v6216_v10 = vpop.f32.mrb[104].mxu1  ;;  %v9455_v22 = vld [vmem:[#allocation16_spill] sm:$0xff] }
 0x421   : > { %v4750_v17 = vmax.f32 %v4718_v6, 0.0  ;;  %v4719_v39 = vadd.f32 %v4687_v12, %v9450_v32  ;;  %v6392_v33 = vadd.f32 %v8946_v4, %v6216_v10  ;;  %v4507_v61 = vpop.f32.mrb[105].mxu1 }
 0x422   : > { %v4748_v55 = vmax.f32 %v4716_v47, 0.0  ;;  %v4717_v41 = vadd.f32 %v4685_v1, %v9451_v8  ;;  %v6395_v21 = vadd.f32 %v8934_v58, %v4507_v61  ;;  %v6217_v35 = vpop.f32.mrb[106].mxu1  ;;  %v9456_v61 = vld [vmem:[#allocation21_spill] sm:$0xff] }
 0x423   : > { %4782 = vst.msk [vmem:[%s9056_s18 + $0x30] sm:$0xff] %vm437_vm3, %v4750_v17  ;;  %v4751_v48 = vmax.f32 %v4719_v39, 0.0  ;;  %v4651_v30 = vmul.f32 %v6392_v33, %v9032_v45  ;;  %v6398_v51 = vadd.f32 %v8952_v20, %v6217_v35  ;;  %v4510_v56 = vpop.f32.mrb[107].mxu1 }
 0x424   : > { %4780 = vst.msk [vmem:[%s9056_s18 + $0x20] sm:$0xff] %vm437_vm3, %v4748_v55  ;;  %v4749_v42 = vmax.f32 %v4717_v41, 0.0  ;;  %v4649_v4 = vmul.f32 %v6395_v21, %v9032_v45  ;;  %v6401_v43 = vadd.f32 %v8940_v60, %v4510_v56  ;;  %v9457_v41 = vld [vmem:[#allocation19_spill] sm:$0xff] }
 0x425   : > { %4783 = vst.msk [vmem:[%s9056_s18 + $0x38] sm:$0xff] %vm437_vm3, %v4751_v48  ;;  %v4690_v58 = vadd.f32 %v9038_v9, %v4651_v30  ;;  %v4652_v19 = vmul.f32 %v6398_v51, %v9032_v45  ;;  %v9458_v30 = vld [vmem:[#allocation22_spill] sm:$0xff] }
 0x426   : > { %4781 = vst.msk [vmem:[%s9056_s18 + $0x28] sm:$0xff] %vm437_vm3, %v4749_v42  ;;  %v4688_v34 = vadd.f32 %v9038_v9, %v4649_v4  ;;  %v4650_v20 = vmul.f32 %v6401_v43, %v9032_v45  ;;  %v9459_v43 = vld [vmem:[#allocation20_spill] sm:$0xff] }
 0x427   : > { %v4722_v27 = vadd.f32 %v4690_v58, %v9452_v11  ;;  %v4691_v0 = vadd.f32 %v9038_v9, %v4652_v19 }
 0x428   : > { %v4720_v44 = vadd.f32 %v4688_v34, %v9453_v40  ;;  %v4689_v60 = vadd.f32 %v9038_v9, %v4650_v20  ;;  %v6220_v24 = vpop.f32.mrb[108].mxu1 }
 0x429   : > { %v4754_v16 = vmax.f32 %v4722_v27, 0.0  ;;  %v4723_v14 = vadd.f32 %v4691_v0, %v9454_v59  ;;  %v6404_v28 = vadd.f32 %v8970_v46, %v6220_v24  ;;  %v4523_v15 = vpop.f32.mrb[109].mxu1 }
 0x42a   : > { %v4752_v53 = vmax.f32 %v4720_v44, 0.0  ;;  %v4721_v18 = vadd.f32 %v4689_v60, %v9455_v22  ;;  %v6407_v6 = vadd.f32 %v8958_v13, %v4523_v15  ;;  %v6221_v12 = vpop.f32.mrb[110].mxu1 }
 0x42b   : > { %4786 = vst.msk [vmem:[%s9056_s18 + $0x50] sm:$0xff] %vm437_vm3, %v4754_v16  ;;  %v4755_v7 = vmax.f32 %v4723_v14, 0.0  ;;  %v4655_v47 = vmul.f32 %v6404_v28, %v9032_v45  ;;  %v6410_v1 = vadd.f32 %v8976_v36, %v6221_v12  ;;  %v4526_v10 = vpop.f32.mrb[111].mxu1  ;;  %v9460_v16 = vld [vmem:[#allocation25_spill] sm:$0xff]  ;;  %v9461_v28 = vld [vmem:[#allocation23_spill] sm:$0xff] }
 0x42c   : > { %4784 = vst.msk [vmem:[%s9056_s18 + $0x40] sm:$0xff] %vm437_vm3, %v4752_v53  ;;  %v4753_v17 = vmax.f32 %v4721_v18, 0.0  ;;  %v4653_v46 = vmul.f32 %v6407_v6, %v9032_v45  ;;  %v6413_v32 = vadd.f32 %v8964_v31, %v4526_v10  ;;  %v9462_v18 = vld [vmem:[#allocation26_spill] sm:$0xff] }
 0x42d   : > { %4787 = vst.msk [vmem:[%s9056_s18 + $0x58] sm:$0xff] %vm437_vm3, %v4755_v7  ;;  %v4694_v13 = vadd.f32 %v9038_v9, %v4655_v47  ;;  %v4656_v39 = vmul.f32 %v6410_v1, %v9032_v45  ;;  %v9463_v1 = vld [vmem:[#allocation24_spill] sm:$0xff] }
 0x42e   : > { %4785 = vst.msk [vmem:[%s9056_s18 + $0x48] sm:$0xff] %vm437_vm3, %v4753_v17  ;;  %v4692_v33 = vadd.f32 %v9038_v9, %v4653_v46  ;;  %v4654_v36 = vmul.f32 %v6413_v32, %v9032_v45 }
 0x42f   : > { %v4726_v55 = vadd.f32 %v4694_v13, %v9456_v61  ;;  %v4695_v8 = vadd.f32 %v9038_v9, %v4656_v39 }
 0x430   : > { %v4724_v21 = vadd.f32 %v4692_v33, %v9457_v41  ;;  %v4693_v31 = vadd.f32 %v9038_v9, %v4654_v36  ;;  %v6224_v35 = vpop.f32.mrb[112].mxu1  ;;  %v9464_v41 = vld [vmem:[#allocation29_spill] sm:$0xff] }
 0x431   : > { %v4758_v48 = vmax.f32 %v4726_v55, 0.0  ;;  %v4727_v51 = vadd.f32 %v4695_v8, %v9458_v30  ;;  %v6416_v56 = vadd.f32 %v8988_v26, %v6224_v35  ;;  %v4539_v42 = vpop.f32.mrb[113].mxu1  ;;  %v9465_v35 = vld [vmem:[#allocation27_spill] sm:$0xff] }
 0x432   : > { %v4756_v4 = vmax.f32 %v4724_v21, 0.0  ;;  %v4725_v58 = vadd.f32 %v4693_v31, %v9459_v43  ;;  %v6419_v19 = vadd.f32 %v8982_v49, %v4539_v42  ;;  %v6225_v34 = vpop.f32.mrb[114].mxu1 }
 0x433   : > { %4790 = vst.msk [vmem:[%s9056_s18 + $0x70] sm:$0xff] %vm437_vm3, %v4758_v48  ;;  %v4759_v20 = vmax.f32 %v4727_v51, 0.0  ;;  %v4659_v11 = vmul.f32 %v6416_v56, %v9032_v45  ;;  %v6422_v27 = vadd.f32 %v8991_v62, %v6225_v34  ;;  %v4542_v0 = vpop.f32.mrb[115].mxu1  ;;  %v9466_v56 = vld [vmem:[#allocation30_spill] sm:$0xff] }
 0x434   : > { %4788 = vst.msk [vmem:[%s9056_s18 + $0x60] sm:$0xff] %vm437_vm3, %v4756_v4  ;;  %v4757_v40 = vmax.f32 %v4725_v58, 0.0  ;;  %v4657_v26 = vmul.f32 %v6419_v19, %v9032_v45  ;;  %v6425_v44 = vadd.f32 %v8985_v2, %v4542_v0  ;;  %v9467_v19 = vld [vmem:[#allocation28_spill] sm:$0xff] }
 0x435   : > { %4791 = vst.msk [vmem:[%s9056_s18 + $0x78] sm:$0xff] %vm437_vm3, %v4759_v20  ;;  %v4698_v49 = vadd.f32 %v9038_v9, %v4659_v11  ;;  %v4660_v60 = vmul.f32 %v6422_v27, %v9032_v45 }
 0x436   : > { %4789 = vst.msk [vmem:[%s9056_s18 + $0x68] sm:$0xff] %vm437_vm3, %v4757_v40  ;;  %v4696_v24 = vadd.f32 %v9038_v9, %v4657_v26  ;;  %v4658_v62 = vmul.f32 %v6425_v44, %v9032_v45 }
 0x437   : > { %v4730_v59 = vadd.f32 %v4698_v49, %v9460_v16  ;;  %v4699_v14 = vadd.f32 %v9038_v9, %v4660_v60 }
 0x438   : > { %v4728_v15 = vadd.f32 %v4696_v24, %v9461_v28  ;;  %v4697_v2 = vadd.f32 %v9038_v9, %v4658_v62  ;;  %v6228_v53 = vpop.f32.mrb[116].mxu1  ;;  %v9468_v62 = vld [vmem:[#allocation33_spill] sm:$0xff] }
 0x439   : > { %v4762_v22 = vmax.f32 %v4730_v59, 0.0  ;;  %v4731_v6 = vadd.f32 %v4699_v14, %v9462_v18  ;;  %v6428_v12 = vadd.f32 %v9000_v52, %v6228_v53  ;;  %v4555_v7 = vpop.f32.mrb[117].mxu1  ;;  %v9469_v14 = vld [vmem:[#allocation31_spill] sm:$0xff]  ;;  %v9470_v53 = vld [vmem:[#allocation34_spill] sm:$0xff] }
 0x43a   : > { %v4760_v47 = vmax.f32 %v4728_v15, 0.0  ;;  %v4729_v10 = vadd.f32 %v4697_v2, %v9463_v1  ;;  %v6431_v17 = vadd.f32 %v8994_v25, %v4555_v7  ;;  %v6229_v46 = vpop.f32.mrb[118].mxu1  ;;  %v9471_v7 = vld [vmem:[#allocation32_spill] sm:$0xff] }
 0x43b   : > { %4794 = vst.msk [vmem:[%s9056_s18 + $0x90] sm:$0xff] %vm437_vm3, %v4762_v22  ;;  %v4763_v32 = vmax.f32 %v4731_v6, 0.0  ;;  %v4663_v13 = vmul.f32 %v6428_v12, %v9032_v45  ;;  %v6434_v39 = vadd.f32 %v9003_v23, %v6229_v46  ;;  %v4558_v33 = vpop.f32.mrb[119].mxu1 }
 0x43c   : > { %4792 = vst.msk [vmem:[%s9056_s18 + $0x80] sm:$0xff] %vm437_vm3, %v4760_v47  ;;  %v4761_v36 = vmax.f32 %v4729_v10, 0.0  ;;  %v4661_v52 = vmul.f32 %v6431_v17, %v9032_v45  ;;  %v6437_v61 = vadd.f32 %v8997_v63, %v4558_v33 }
 0x43d   : > { %4795 = vst.msk [vmem:[%s9056_s18 + $0x98] sm:$0xff] %vm437_vm3, %v4763_v32  ;;  %v4702_v25 = vadd.f32 %v9038_v9, %v4663_v13  ;;  %v4664_v55 = vmul.f32 %v6434_v39, %v9032_v45 }
 0x43e   : > { %4793 = vst.msk [vmem:[%s9056_s18 + $0x88] sm:$0xff] %vm437_vm3, %v4761_v36  ;;  %v4700_v8 = vadd.f32 %v9038_v9, %v4661_v52  ;;  %v4662_v23 = vmul.f32 %v6437_v61, %v9032_v45  ;;  %v9472_v61 = vld [vmem:[#allocation39_spill] sm:$0xff] }
 0x43f   : > { %v4734_v21 = vadd.f32 %v4702_v25, %v9464_v41  ;;  %v4703_v31 = vadd.f32 %v9038_v9, %v4664_v55 }
 0x440   : > { %v4732_v48 = vadd.f32 %v4700_v8, %v9465_v35  ;;  %v4701_v63 = vadd.f32 %v9038_v9, %v4662_v23  ;;  %v6232_v30 = vpop.f32.mrb[120].mxu1 }
 0x441   : > { %v4766_v51 = vmax.f32 %v4734_v21, 0.0  ;;  %v4735_v42 = vadd.f32 %v4703_v31, %v9466_v56  ;;  %v6440_v4 = vadd.f32 %v9012_v5, %v6232_v30  ;;  %v4571_v43 = vpop.f32.mrb[121].mxu1  ;;  %v9474_v21 = vld [vmem:[#allocation40_spill] sm:$0xff] }
 0x442   : > { %v4764_v58 = vmax.f32 %v4732_v48, 0.0  ;;  %v4733_v34 = vadd.f32 %v4701_v63, %v9467_v19  ;;  %v6443_v20 = vadd.f32 %v9006_v54, %v4571_v43  ;;  %v6233_v11 = vpop.f32.mrb[122].mxu1  ;;  %v9475_v48 = vld [vmem:[#allocation36_spill] sm:$0xff] }
 0x443   : > { %4798 = vst.msk [vmem:[%s9056_s18 + $0xb0] sm:$0xff] %vm437_vm3, %v4766_v51  ;;  %v4767_v27 = vmax.f32 %v4735_v42, 0.0  ;;  %v4667_v0 = vmul.f32 %v6440_v4, %v9032_v45  ;;  %v6446_v40 = vadd.f32 %v9015_v3, %v6233_v11  ;;  %v4574_v26 = vpop.f32.mrb[123].mxu1 }
 0x444   : > { %4796 = vst.msk [vmem:[%s9056_s18 + $0xa0] sm:$0xff] %vm437_vm3, %v4764_v58  ;;  %v4765_v44 = vmax.f32 %v4733_v34, 0.0  ;;  %v4665_v5 = vmul.f32 %v6443_v20, %v9032_v45  ;;  %v6449_v49 = vadd.f32 %v9009_v50, %v4574_v26 }
 0x445   : > { %4799 = vst.msk [vmem:[%s9056_s18 + $0xb8] sm:$0xff] %vm437_vm3, %v4767_v27  ;;  %v4706_v54 = vadd.f32 %v9038_v9, %v4667_v0  ;;  %v4668_v60 = vmul.f32 %v6446_v40, %v9032_v45 }
 0x446   : > { %4797 = vst.msk [vmem:[%s9056_s18 + $0xa8] sm:$0xff] %vm437_vm3, %v4765_v44  ;;  %v4704_v24 = vadd.f32 %v9038_v9, %v4665_v5  ;;  %v4666_v3 = vmul.f32 %v6449_v49, %v9032_v45 }
 0x447   : > { %v4738_v16 = vadd.f32 %v4706_v54, %v9468_v62  ;;  %v4707_v59 = vadd.f32 %v9038_v9, %v4668_v60 }
 0x448   : > { %v4736_v28 = vadd.f32 %v4704_v24, %v9469_v14  ;;  %v4705_v50 = vadd.f32 %v9038_v9, %v4666_v3  ;;  %v6236_v15 = vpop.f32.mrb[124].mxu1 }
 0x449   : > { %v4770_v2 = vmax.f32 %v4738_v16, 0.0  ;;  %v4739_v22 = vadd.f32 %v4707_v59, %v9470_v53  ;;  %v6452_v18 = vadd.f32 %v9024_v38, %v6236_v15  ;;  %v4587_v6 = vpop.f32.mrb[125].mxu1 }
 0x44a   : > { %v4768_v12 = vmax.f32 %v4736_v28, 0.0  ;;  %v4737_v47 = vadd.f32 %v4705_v50, %v9471_v7  ;;  %v6455_v1 = vadd.f32 %v9018_v57, %v4587_v6  ;;  %v6237_v10 = vpop.f32.mrb[126].mxu1 }
 0x44b   : > { %4802 = vst.msk [vmem:[%s9056_s18 + $0xd0] sm:$0xff] %vm437_vm3, %v4770_v2  ;;  %v4771_v17 = vmax.f32 %v4739_v22, 0.0  ;;  %v4671_v46 = vmul.f32 %v6452_v18, %v9032_v45  ;;  %v6458_v32 = vadd.f32 %v9027_v29, %v6237_v10  ;;  %v4590_v13 = vpop.f32.mrb[127].mxu1 }
 0x44c   : > { %4800 = vst.msk [vmem:[%s9056_s18 + $0xc0] sm:$0xff] %vm437_vm3, %v4768_v12  ;;  %v4769_v39 = vmax.f32 %v4737_v47, 0.0  ;;  %v4669_v38 = vmul.f32 %v6455_v1, %v9032_v45  ;;  %v6461_v33 = vadd.f32 %v9021_v37, %v4590_v13  ;;  %v9473_v37 = vld [vmem:[#allocation35_spill] sm:$0xff] }
 0x44d   : > { %4803 = vst.msk [vmem:[%s9056_s18 + $0xd8] sm:$0xff] %vm437_vm3, %v4771_v17  ;;  %v4710_v57 = vadd.f32 %v9038_v9, %v4671_v46  ;;  %v4672_v36 = vmul.f32 %v6458_v32, %v9032_v45 }
 0x44e   : > { %4801 = vst.msk [vmem:[%s9056_s18 + $0xc8] sm:$0xff] %vm437_vm3, %v4769_v39  ;;  %v4708_v29 = vadd.f32 %v9038_v9, %v4669_v38  ;;  %v4670_v52 = vmul.f32 %v6461_v33, %v9032_v45 }
 0x44f   : > { %v4742_v25 = vadd.f32 %v4710_v57, %v9472_v61  ;;  %v4711_v55 = vadd.f32 %v9038_v9, %v4672_v36 }
 0x450   : > { %v4740_v8 = vadd.f32 %v4708_v29, %v9473_v37  ;;  %v4709_v23 = vadd.f32 %v9038_v9, %v4670_v52 }
 0x451   : > { %v4774_v41 = vmax.f32 %v4742_v25, 0.0  ;;  %v4743_v31 = vadd.f32 %v4711_v55, %v9474_v21 }
 0x452   : > { %v4772_v35 = vmax.f32 %v4740_v8, 0.0  ;;  %v4741_v63 = vadd.f32 %v4709_v23, %v9475_v48 }
 0x453   : > { %4806 = vst.msk [vmem:[%s9056_s18 + $0xf0] sm:$0xff] %vm437_vm3, %v4774_v41  ;;  %v4775_v30 = vmax.f32 %v4743_v31, 0.0 }
 0x454   : > { %4804 = vst.msk [vmem:[%s9056_s18 + $0xe0] sm:$0xff] %vm437_vm3, %v4772_v35  ;;  %v4773_v45 = vmax.f32 %v4741_v63, 0.0 }
 0x455   : > { %4807 = vst.msk [vmem:[%s9056_s18 + $0xf8] sm:$0xff] %vm437_vm3, %v4775_v30 }
 0x456   : > { %4805 = vst.msk [vmem:[%s9056_s18 + $0xe8] sm:$0xff] %vm437_vm3, %v4773_v45 }
 0x457 PF: > { %s18_s24 = sadd.s32 1, %s6869_s24  }
 0x458   : > { %p15_p3 = scmp.ge.s32.totalorder %s18_s24, 4  }
 0x45a   :  { %17 = sbr.rel (!%p15_p3) target bundleno = 1 (0x1), region = 90 }
 0x461   :  { %4829 = vsyncpa [#allocation4], 1 }
 0x462   :  { %4831 = vsyncpa [#allocation4 + $0x1], 1 }

</bundles_post_ra>
